<compile_context>
chip_gen: v7x
topology: tpu7x:2x2x1
jax: 0.10.0
libtpu: 0.0.40
codegen_flags: <defaults>
</compile_context>

<pallas_src>
import jax
import jax.numpy as jnp
from jax import lax
from jax.experimental import pallas as pl
from jax.experimental.pallas import tpu as pltpu

NDF = 8          # config.STAGE1_D_HDIM
EMB_DIM = 32     # config.EMBEDDING_DIM
BN_EPS = 1e-5
SLOPE = 0.2


# ----------------------------------------------------------------------------
# In-kernel elementwise helpers (kept in f32: v5e has no bf16 VPU/EUP)
# ----------------------------------------------------------------------------
def _leaky(y):
    # LeakyReLU(0.2): for slope < 1, max(y, 0.2*y) == leaky_relu(y)
    return jnp.maximum(y, SLOPE * y)


def _sigmoid(y):
    # numerically stable sigmoid routed through the EUP tanh unit
    return 0.5 * (jnp.tanh(0.5 * y) + 1.0)


# ----------------------------------------------------------------------------
# Constant packing: all weights / selection maps are packed into 3 lane-aligned
# slabs so the pallas_call has 5 operands (img, txt, 3 slabs) instead of ~31.
# ----------------------------------------------------------------------------
class _Slab:
    def __init__(self, lanes, dtype, row_align):
        self.lanes, self.dtype, self.align = lanes, dtype, row_align
        self.pieces, self.index, self.rows = [], {}, 0

    def add(self, name, arr):
        arr = jnp.asarray(arr, jnp.float32)
        r, c = arr.shape
        assert c <= self.lanes, (name, arr.shape, self.lanes)
        rp = -(-r // self.align) * self.align              # row-pad -> aligned static slices
        buf = jnp.zeros((rp, self.lanes), jnp.float32).at[:r, :c].set(arr)
        self.pieces.append(buf.astype(self.dtype))
        self.index[name] = (self.rows, r, c)
        self.rows += rp

    def build(self):
        return jnp.concatenate(self.pieces, axis=0), self.index


def _conv_qr(kernel_w, H, batch):
    """Encode a 4x4 / stride-2 / pad-1 conv (PyTorch OIHW weights) as 4 (Q_i, R_i) pairs."""
    Cout, Cin, KH, KW = kernel_w.shape
    Ho = H // 2
    w = jnp.arange(H)[:, None]
    wo = jnp.arange(Ho)[None, :]
    j = w + 1 - 2 * wo                       # kernel column tap hit by (input col w, output col wo)
    valid = (j >= 0) & (j < KW)
    jc = jnp.clip(j, 0, KW - 1)
    eye_b = jnp.eye(batch, dtype=jnp.float32)
    qs, rs = [], []
    for i in range(KH):
        ki = kernel_w[:, :, i, :]                                   # (Cout, Cin, KW)
        g = jnp.where(valid[None, None], ki[:, :, jc], 0.0)         # (Cout, Cin, H, Ho)
        qs.append(jnp.transpose(g, (2, 1, 3, 0)).reshape(H * Cin, Ho * Cout))
        h = 2 * jnp.arange(Ho) + i - 1                              # tapped input row (may be OOB)
        hvalid = (h >= 0) & (h < H)
        oh = jax.nn.one_hot(jnp.clip(h, 0, H - 1), H, dtype=jnp.float32)
        oh = jnp.where(hvalid[:, None], oh, 0.0)                    # explicit pad-row masking
        rs.append(jnp.kron(eye_b, oh))                              # block-diagonal over batch
    return qs, rs


def _group_mats(wo, co, count):
    # pooling map (w,c)-columns -> channel (1/count folded in), and its broadcast-back transpose
    g = jnp.kron(jnp.ones((wo, 1), jnp.float32), jnp.eye(co, dtype=jnp.float32))
    return g / float(count), g.T


def build_constants(params, batch, ndf=NDF):
    B = batch
    c4 = ndf * 8
    wslab = _Slab(256, jnp.bfloat16, 16)   # MXU operands: conv Q/R taps, joint 1x1 conv
    f256 = _Slab(256, jnp.float32, 8)      # lane-dense f32: broadcast-back maps, final 4x4 conv
    f64 = _Slab(64, jnp.float32, 8)        # narrow f32: pooling maps, BN affine, text linear, batch maps

    # conv stack: 64 -> 32 -> 16 -> 8 -> 4
    for li, (key, H) in enumerate((("c1_w", 64), ("c2_w", 32), ("c3_w", 16), ("c4_w", 8)), start=1):
        qs, rs = _conv_qr(params[key], H, B)
        for i in range(4):
            wslab.add(f"q{li}_{i}", qs[i])
            wslab.add(f"r{li}_{i}", rs[i])

    # joint 1x1 conv split into image-column / text-column mixing matrices
    k1 = params["j1_w"][:, :, 0, 0].T                                   # (16*ndf, 8*ndf)
    wslab.add("qj1i", jnp.kron(jnp.eye(4, dtype=jnp.float32), k1[:c4, :]))
    wslab.add("qj1t", jnp.tile(k1[c4:, :], (1, 4)))

    # BatchNorm (train-mode batch stats): pooling map, broadcast map, gamma/beta pair
    for name, wo, co, cnt, gk, bk in (("2", 16, 2 * ndf, B * 16 * 16, "c2_g", "c2_b"),
                                      ("3", 8, 4 * ndf, B * 8 * 8, "c3_g", "c3_b"),
                                      ("4", 4, 8 * ndf, B * 4 * 4, "c4_g", "c4_b"),
                                      ("j", 4, 8 * ndf, B * 4 * 4, "j1_g", "j1_b")):
        g_pool, g_bcast = _group_mats(wo, co, cnt)
        f64.add(f"g{name}", g_pool)
        f256.add(f"gt{name}", g_bcast)
        f64.add(f"gb{name}", jnp.concatenate([params[gk], params[bk]], axis=0))

    # text encoder (Linear bias omitted: exactly cancelled by train-mode BatchNorm1d)
    f64.add("wt", params["t_w"])
    f64.add("gbt", jnp.concatenate([params["t_g"], params["t_beta"]], axis=0))

    # batch replication / block row-sum maps for the joint head (0/1, f32 -> exact)
    f64.add("emat", jnp.kron(jnp.eye(B, dtype=jnp.float32), jnp.ones((4, 1), jnp.float32)))
    f64.add("etm", jnp.kron(jnp.eye(B, dtype=jnp.float32), jnp.ones((1, 4), jnp.float32)))

    # final 4x4 valid conv folded into a per-row weight map (used elementwise on the VPU -> f32)
    k2 = jnp.transpose(params["j2_w"][0], (1, 2, 0)).reshape(4, 4 * c4)
    f256.add("w2rows", jnp.tile(k2, (B, 1)))

    wbuf, widx = wslab.build()
    f256buf, f256idx = f256.build()
    f64buf, f64idx = f64.build()
    return ({"w": wbuf, "f256": f256buf, "f64": f64buf},
            {"w": widx, "f256": f256idx, "f64": f64idx})


# ----------------------------------------------------------------------------
# The fused kernel
# ----------------------------------------------------------------------------
def _make_kernel(index, batch, ndf):
    widx, f256idx, f64idx = index["w"], index["f256"], index["f64"]

    def piece(ref, idx, name):
        o, r, c = idx[name]                  # static -> zero-cost ref slice
        return ref[o:o + r, :c]

    def conv(xb, w_ref, li):
        # xb: (B*H, W*Cin) bf16.  4 accumulating bf16 MXU matmul pairs, single f32 acc chain.
        acc = None
        for i in range(4):
            r = piece(w_ref, widx, f"r{li}_{i}")                       # bf16 0/1 (B*Ho, B*H)
            q = piece(w_ref, widx, f"q{li}_{i}")                       # bf16     (W*Cin, Wo*Cout)
            xs = jnp.dot(r, xb, preferred_element_type=jnp.float32)    # exact row selection
            y = jnp.dot(xs.astype(jnp.bfloat16), q, preferred_element_type=jnp.float32)
            acc = y if acc is None else acc + y
        return acc

    def bn(y, f64_ref, f256_ref, name):
        # Train-mode BatchNorm over the fused (w, c) columns. 1/count is folded into g_pool.
        g_pool = piece(f64_ref, f64idx, f"g{name}")                    # (Wo*Co, Co) f32
        g_bcast = piece(f256_ref, f256idx, f"gt{name}")                # (Co, Wo*Co) f32
        gb = piece(f64_ref, f64idx, f"gb{name}")                       # (2, Co) f32
        s1 = jnp.sum(y, axis=0, keepdims=True)
        s2 = jnp.sum(y * y, axis=0, keepdims=True)
        mean = jnp.dot(s1, g_pool, preferred_element_type=jnp.float32)
        msq = jnp.dot(s2, g_pool, preferred_element_type=jnp.float32)
        var = jnp.maximum(msq - mean * mean, 0.0)                      # clamp: no NaN from rsqrt
        a_c = gb[0:1, :] * lax.rsqrt(var + BN_EPS)                     # gamma / std
        b_c = gb[1:2, :] - mean * a_c                                  # beta - mean*gamma/std
        a_bc = jnp.dot(a_c, g_bcast, preferred_element_type=jnp.float32)
        b_bc = jnp.dot(b_c, g_bcast, preferred_element_type=jnp.float32)
        return y * a_bc + b_bc

    def kernel(img_ref, txt_ref, w_ref, f256_ref, f64_ref, out_ref):
        # ---- img_encoder: 64 -> 32 -> 16 -> 8 -> 4 ----------------------------------
        x = _leaky(conv(img_ref[...], w_ref, 1))                                   # (B*32, 32*ndf)
        x = _leaky(bn(conv(x.astype(jnp.bfloat16), w_ref, 2), f64_ref, f256_ref, "2"))
        x = _leaky(bn(conv(x.astype(jnp.bfloat16), w_ref, 3), f64_ref, f256_ref, "3"))
        x = _leaky(bn(conv(x.astype(jnp.bfloat16), w_ref, 4), f64_ref, f256_ref, "4"))   # (B*4, 4*8ndf)

        # ---- text_encoder (Linear bias cancels against train-mode BatchNorm1d) ------
        wt = piece(f64_ref, f64idx, "wt")
        gbt = piece(f64_ref, f64idx, "gbt")
        t = jnp.dot(txt_ref[...], wt, preferred_element_type=jnp.float32)          # (B, 8ndf)
        tm = jnp.mean(t, axis=0, keepdims=True)
        tv = jnp.maximum(jnp.mean(t * t, axis=0, keepdims=True) - tm * tm, 0.0)
        t = _leaky((t - tm) * lax.rsqrt(tv + BN_EPS) * gbt[0:1, :] + gbt[1:2, :])

        # ---- joint_encoder -----------------------------------------------------------
        # 1x1 conv on cat([img, text]) == image-column mix + spatially replicated text mix
        qj1i = piece(w_ref, widx, "qj1i")
        qj1t = piece(w_ref, widx, "qj1t")
        emat = piece(f64_ref, f64idx, "emat")
        tmix = jnp.dot(t.astype(jnp.bfloat16), qj1t, preferred_element_type=jnp.float32)   # (B, 4*8ndf)
        j = (jnp.dot(x.astype(jnp.bfloat16), qj1i, preferred_element_type=jnp.float32)
             + jnp.dot(emat, tmix, preferred_element_type=jnp.float32))                    # (B*4, 4*8ndf)
        j = _leaky(bn(j, f64_ref, f256_ref, "j"))

        # final 4x4 valid conv -> scalar logit per batch element, then sigmoid
        w2 = piece(f256_ref, f256idx, "w2rows")
        etm = piece(f64_ref, f64idx, "etm")
        logit_rows = jnp.sum(j * w2, axis=1, keepdims=True)                          # (B*4, 1)
        logit = jnp.dot(etm, logit_rows, preferred_element_type=jnp.float32)         # (B, 1)
        out_ref[...] = _sigmoid(logit)

    return kernel


# ----------------------------------------------------------------------------
# Forward pass: layout prep (cheap fused XLA ops) + ONE fused pallas_call
# ----------------------------------------------------------------------------
def make_forward(index, batch, ndf=NDF):
    kernel = _make_kernel(index, batch, ndf)

    def forward(slabs, img_nchw, text_embedding):
        B = batch
        # NCHW -> "(b*h) x (w*c)" 2D layout; channels fastest; bf16 once (MXU operand).
        img2d = (jnp.transpose(img_nchw.astype(jnp.float32), (0, 2, 3, 1))
                 .reshape(B * 64, 64 * 3).astype(jnp.bfloat16))
        txt = text_embedding.astype(jnp.float32)

        args = (img2d, txt, slabs["w"], slabs["f256"], slabs["f64"])
        out = pl.pallas_call(
            kernel,
            out_shape=jax.ShapeDtypeStruct((B, 1), jnp.float32),
            grid=(1,),
            in_specs=[pl.BlockSpec(a.shape, lambda i: (0, 0)) for a in args],
            out_specs=pl.BlockSpec((B, 1), lambda i: (0, 0)),
            compiler_params=pltpu.CompilerParams(
                dimension_semantics=("arbitrary",),
                vmem_limit_bytes=16 * 1024 * 1024),
        )(*args)
        return out.reshape(-1)                                                  # (B,)

    return forward


# ----------------------------------------------------------------------------
# Deterministic parameter init (shapes mirror the nn.Module's __init__)
# ----------------------------------------------------------------------------
def init_params(key, ndf=NDF, emb_dim=EMB_DIM):
    ks = jax.random.split(key, 8)
    cw = lambda k, co, ci, kh, kw: 0.02 * jax.random.normal(k, (co, ci, kh, kw), jnp.float32)
    ones = lambda n: jnp.ones((1, n), jnp.float32)
    zeros = lambda n: jnp.zeros((1, n), jnp.float32)
    p = {}
    p["c1_w"] = cw(ks[0], ndf, 3, 4, 4)
    p["c2_w"] = cw(ks[1], ndf * 2, ndf, 4, 4)
    p["c2_g"], p["c2_b"] = ones(ndf * 2), zeros(ndf * 2)
    p["c3_w"] = cw(ks[2], ndf * 4, ndf * 2, 4, 4)
    p["c3_g"], p["c3_b"] = ones(ndf * 4), zeros(ndf * 4)
    p["c4_w"] = cw(ks[3], ndf * 8, ndf * 4, 4, 4)
    p["c4_g"], p["c4_b"] = ones(ndf * 8), zeros(ndf * 8)
    p["t_w"] = 0.02 * jax.random.normal(ks[4], (emb_dim, ndf * 8), jnp.float32)
    p["t_g"], p["t_beta"] = ones(ndf * 8), zeros(ndf * 8)
    p["j1_w"] = cw(ks[5], ndf * 8, ndf * 16, 1, 1)
    p["j1_g"], p["j1_b"] = ones(ndf * 8), zeros(ndf * 8)
    p["j2_w"] = cw(ks[6], 1, ndf * 8, 4, 4)
    return p


# ----------------------------------------------------------------------------
# Pure-JAX reference (same math as the PyTorch module in .train()) for validation
# ----------------------------------------------------------------------------
def _reference_forward(params, img, txt, ndf=NDF):
    def conv(x, w, stride, pad):
        return lax.conv_general_dilated(x, w, (stride, stride), ((pad, pad), (pad, pad)),
                                        dimension_numbers=("NCHW", "OIHW", "NCHW"))

    def bn2d(x, g, b):
        m = jnp.mean(x, axis=(0, 2, 3), keepdims=True)
        v = jnp.var(x, axis=(0, 2, 3), keepdims=True)
        return (x - m) * lax.rsqrt(v + BN_EPS) * g.reshape(1, -1, 1, 1) + b.reshape(1, -1, 1, 1)

    lrelu = lambda x: jnp.where(x >= 0, x, SLOPE * x)

    x = lrelu(conv(img, params["c1_w"], 2, 1))
    x = lrelu(bn2d(conv(x, params["c2_w"], 2, 1), params["c2_g"], params["c2_b"]))
    x = lrelu(bn2d(conv(x, params["c3_w"], 2, 1), params["c3_g"], params["c3_b"]))
    x = lrelu(bn2d(conv(x, params["c4_w"], 2, 1), params["c4_g"], params["c4_b"]))

    t = txt @ params["t_w"]
    tm = jnp.mean(t, axis=0, keepdims=True)
    tv = jnp.var(t, axis=0, keepdims=True)
    t = lrelu((t - tm) * lax.rsqrt(tv + BN_EPS) * params["t_g"] + params["t_beta"])
    trep = jnp.broadcast_to(t[:, :, None, None], (t.shape[0], t.shape[1], 4, 4))

    comb = jnp.concatenate([x, trep], axis=1)
    y = lrelu(bn2d(conv(comb, params["j1_w"], 1, 0), params["j1_g"], params["j1_b"]))
    y = conv(y, params["j2_w"], 1, 0)
    return jax.nn.sigmoid(y.reshape(-1))


if __name__ == "__main__":
    key = jax.random.PRNGKey(0)
    kp, ki, kt = jax.random.split(key, 3)
    params = init_params(kp)

    B = 2
    img = jax.random.normal(ki, (B, 3, 64, 64), jnp.float32)          # NCHW like PyTorch
    txt = jax.random.normal(kt, (B, EMB_DIM), jnp.float32)

    # one-time weight preprocessing (outside the hot path)
    slabs, index = build_constants(params, B)
    slabs = {k: v.block_until_ready() for k, v in slabs.items()}

    fwd = jax.jit(make_forward(index, B))
    out = jax.block_until_ready(fwd(slabs, img, txt))

    assert out.shape == (B,)
    assert bool(jnp.all(jnp.isfinite(out)))
    assert bool(jnp.all((out >= 0.0) & (out <= 1.0)))                 # sigmoid range

    ref = _reference_forward(params, img, txt)
    assert bool(jnp.allclose(out, ref, atol=5e-2, rtol=0.0)), (out, ref)

    print("KERNEL_OK")
</pallas_src>

<mosaic_0001>
module attributes {stable_mosaic.version = 11 : i64} {
  func.func @kernel(%arg0: i32, %arg1: memref<128x192xbf16, #tpu.memory_space<vmem>>, %arg2: memref<2x32xf32, #tpu.memory_space<vmem>>, %arg3: memref<4672x256xbf16, #tpu.memory_space<vmem>>, %arg4: memref<184x256xf32, #tpu.memory_space<vmem>>, %arg5: memref<1112x64xf32, #tpu.memory_space<vmem>>, %arg6: memref<2x1xf32, #tpu.memory_space<vmem>>) attributes {dimension_semantics = [#tpu.dimension_semantics<arbitrary>], iteration_bounds = array<i64: 1>, scalar_prefetch = 0 : i64, scratch_operands = 0 : i64, tpu.core_type = #tpu.core_type<tc>, window_params = [{pipeline_mode = #tpu.pipeline_mode<synchronous>, transform_indices = @transform_0, window_bounds = array<i64: 128, 192>}, {pipeline_mode = #tpu.pipeline_mode<synchronous>, transform_indices = @transform_1, window_bounds = array<i64: 2, 32>}, {pipeline_mode = #tpu.pipeline_mode<synchronous>, transform_indices = @transform_2, window_bounds = array<i64: 4672, 256>}, {pipeline_mode = #tpu.pipeline_mode<synchronous>, transform_indices = @transform_3, window_bounds = array<i64: 184, 256>}, {pipeline_mode = #tpu.pipeline_mode<synchronous>, transform_indices = @transform_4, window_bounds = array<i64: 1112, 64>}, {pipeline_mode = #tpu.pipeline_mode<synchronous>, transform_indices = @transform_5, window_bounds = array<i64: 2, 1>}]} {
    %c0 = arith.constant 0 : index
    %c0_0 = arith.constant 0 : index
    %0 = vector.load %arg1[%c0, %c0_0] : memref<128x192xbf16, #tpu.memory_space<vmem>>, vector<128x192xbf16>
    %c192 = arith.constant 192 : index
    %c0_1 = arith.constant 0 : index
    %1 = vector.load %arg3[%c192, %c0_1] : memref<4672x256xbf16, #tpu.memory_space<vmem>>, vector<64x128xbf16>
    %c0_2 = arith.constant 0 : index
    %c0_3 = arith.constant 0 : index
    %2 = vector.load %arg3[%c0_2, %c0_3] : memref<4672x256xbf16, #tpu.memory_space<vmem>>, vector<192x256xbf16>
    %cst = arith.constant dense<0.000000e+00> : vector<64x192xf32>
    %3 = tpu.matmul %1, %0, %cst {dimension_numbers = #tpu.dot_dimension_numbers<[1], [0], [0], [1], [0, 0, 1, 1], [], []>} : vector<64x128xbf16>, vector<128x192xbf16>, vector<64x192xf32> -> vector<64x192xf32>
    %4 = arith.truncf %3 : vector<64x192xf32> to vector<64x192xbf16>
    %cst_4 = arith.constant dense<0.000000e+00> : vector<64x256xf32>
    %5 = tpu.matmul %4, %2, %cst_4 {dimension_numbers = #tpu.dot_dimension_numbers<[1], [0], [0], [1], [0, 0, 1, 1], [], []>} : vector<64x192xbf16>, vector<192x256xbf16>, vector<64x256xf32> -> vector<64x256xf32>
    %c448 = arith.constant 448 : index
    %c0_5 = arith.constant 0 : index
    %6 = vector.load %arg3[%c448, %c0_5] : memref<4672x256xbf16, #tpu.memory_space<vmem>>, vector<64x128xbf16>
    %c256 = arith.constant 256 : index
    %c0_6 = arith.constant 0 : index
    %7 = vector.load %arg3[%c256, %c0_6] : memref<4672x256xbf16, #tpu.memory_space<vmem>>, vector<192x256xbf16>
    %cst_7 = arith.constant dense<0.000000e+00> : vector<64x192xf32>
    %8 = tpu.matmul %6, %0, %cst_7 {dimension_numbers = #tpu.dot_dimension_numbers<[1], [0], [0], [1], [0, 0, 1, 1], [], []>} : vector<64x128xbf16>, vector<128x192xbf16>, vector<64x192xf32> -> vector<64x192xf32>
    %9 = arith.truncf %8 : vector<64x192xf32> to vector<64x192xbf16>
    %cst_8 = arith.constant dense<0.000000e+00> : vector<64x256xf32>
    %10 = tpu.matmul %9, %7, %cst_8 {dimension_numbers = #tpu.dot_dimension_numbers<[1], [0], [0], [1], [0, 0, 1, 1], [], []>} : vector<64x192xbf16>, vector<192x256xbf16>, vector<64x256xf32> -> vector<64x256xf32>
    %11 = arith.addf %5, %10 : vector<64x256xf32>
    %c704 = arith.constant 704 : index
    %c0_9 = arith.constant 0 : index
    %12 = vector.load %arg3[%c704, %c0_9] : memref<4672x256xbf16, #tpu.memory_space<vmem>>, vector<64x128xbf16>
    %c512 = arith.constant 512 : index
    %c0_10 = arith.constant 0 : index
    %13 = vector.load %arg3[%c512, %c0_10] : memref<4672x256xbf16, #tpu.memory_space<vmem>>, vector<192x256xbf16>
    %cst_11 = arith.constant dense<0.000000e+00> : vector<64x192xf32>
    %14 = tpu.matmul %12, %0, %cst_11 {dimension_numbers = #tpu.dot_dimension_numbers<[1], [0], [0], [1], [0, 0, 1, 1], [], []>} : vector<64x128xbf16>, vector<128x192xbf16>, vector<64x192xf32> -> vector<64x192xf32>
    %15 = arith.truncf %14 : vector<64x192xf32> to vector<64x192xbf16>
    %cst_12 = arith.constant dense<0.000000e+00> : vector<64x256xf32>
    %16 = tpu.matmul %15, %13, %cst_12 {dimension_numbers = #tpu.dot_dimension_numbers<[1], [0], [0], [1], [0, 0, 1, 1], [], []>} : vector<64x192xbf16>, vector<192x256xbf16>, vector<64x256xf32> -> vector<64x256xf32>
    %17 = arith.addf %11, %16 : vector<64x256xf32>
    %c960 = arith.constant 960 : index
    %c0_13 = arith.constant 0 : index
    %18 = vector.load %arg3[%c960, %c0_13] : memref<4672x256xbf16, #tpu.memory_space<vmem>>, vector<64x128xbf16>
    %c768 = arith.constant 768 : index
    %c0_14 = arith.constant 0 : index
    %19 = vector.load %arg3[%c768, %c0_14] : memref<4672x256xbf16, #tpu.memory_space<vmem>>, vector<192x256xbf16>
    %cst_15 = arith.constant dense<0.000000e+00> : vector<64x192xf32>
    %20 = tpu.matmul %18, %0, %cst_15 {dimension_numbers = #tpu.dot_dimension_numbers<[1], [0], [0], [1], [0, 0, 1, 1], [], []>} : vector<64x128xbf16>, vector<128x192xbf16>, vector<64x192xf32> -> vector<64x192xf32>
    %21 = arith.truncf %20 : vector<64x192xf32> to vector<64x192xbf16>
    %cst_16 = arith.constant dense<0.000000e+00> : vector<64x256xf32>
    %22 = tpu.matmul %21, %19, %cst_16 {dimension_numbers = #tpu.dot_dimension_numbers<[1], [0], [0], [1], [0, 0, 1, 1], [], []>} : vector<64x192xbf16>, vector<192x256xbf16>, vector<64x256xf32> -> vector<64x256xf32>
    %23 = arith.addf %17, %22 : vector<64x256xf32>
    %cst_17 = arith.constant 2.000000e-01 : f32
    %24 = vector.broadcast %cst_17 : f32 to vector<64x256xf32>
    %25 = arith.mulf %24, %23 : vector<64x256xf32>
    %26 = arith.maximumf %23, %25 : vector<64x256xf32>
    %27 = arith.truncf %26 : vector<64x256xf32> to vector<64x256xbf16>
    %c1280 = arith.constant 1280 : index
    %c0_18 = arith.constant 0 : index
    %28 = vector.load %arg3[%c1280, %c0_18] : memref<4672x256xbf16, #tpu.memory_space<vmem>>, vector<32x64xbf16>
    %c1024 = arith.constant 1024 : index
    %c0_19 = arith.constant 0 : index
    %29 = vector.load %arg3[%c1024, %c0_19] : memref<4672x256xbf16, #tpu.memory_space<vmem>>, vector<256x256xbf16>
    %cst_20 = arith.constant dense<0.000000e+00> : vector<32x256xf32>
    %30 = tpu.matmul %28, %27, %cst_20 {dimension_numbers = #tpu.dot_dimension_numbers<[1], [0], [0], [1], [0, 0, 1, 1], [], []>} : vector<32x64xbf16>, vector<64x256xbf16>, vector<32x256xf32> -> vector<32x256xf32>
    %31 = arith.truncf %30 : vector<32x256xf32> to vector<32x256xbf16>
    %cst_21 = arith.constant dense<0.000000e+00> : vector<32x256xf32>
    %32 = tpu.matmul %31, %29, %cst_21 {dimension_numbers = #tpu.dot_dimension_numbers<[1], [0], [0], [1], [0, 0, 1, 1], [], []>} : vector<32x256xbf16>, vector<256x256xbf16>, vector<32x256xf32> -> vector<32x256xf32>
    %c1568 = arith.constant 1568 : index
    %c0_22 = arith.constant 0 : index
    %33 = vector.load %arg3[%c1568, %c0_22] : memref<4672x256xbf16, #tpu.memory_space<vmem>>, vector<32x64xbf16>
    %c1312 = arith.constant 1312 : index
    %c0_23 = arith.constant 0 : index
    %34 = vector.load %arg3[%c1312, %c0_23] : memref<4672x256xbf16, #tpu.memory_space<vmem>>, vector<256x256xbf16>
    %cst_24 = arith.constant dense<0.000000e+00> : vector<32x256xf32>
    %35 = tpu.matmul %33, %27, %cst_24 {dimension_numbers = #tpu.dot_dimension_numbers<[1], [0], [0], [1], [0, 0, 1, 1], [], []>} : vector<32x64xbf16>, vector<64x256xbf16>, vector<32x256xf32> -> vector<32x256xf32>
    %36 = arith.truncf %35 : vector<32x256xf32> to vector<32x256xbf16>
    %cst_25 = arith.constant dense<0.000000e+00> : vector<32x256xf32>
    %37 = tpu.matmul %36, %34, %cst_25 {dimension_numbers = #tpu.dot_dimension_numbers<[1], [0], [0], [1], [0, 0, 1, 1], [], []>} : vector<32x256xbf16>, vector<256x256xbf16>, vector<32x256xf32> -> vector<32x256xf32>
    %38 = arith.addf %32, %37 : vector<32x256xf32>
    %c1856 = arith.constant 1856 : index
    %c0_26 = arith.constant 0 : index
    %39 = vector.load %arg3[%c1856, %c0_26] : memref<4672x256xbf16, #tpu.memory_space<vmem>>, vector<32x64xbf16>
    %c1600 = arith.constant 1600 : index
    %c0_27 = arith.constant 0 : index
    %40 = vector.load %arg3[%c1600, %c0_27] : memref<4672x256xbf16, #tpu.memory_space<vmem>>, vector<256x256xbf16>
    %cst_28 = arith.constant dense<0.000000e+00> : vector<32x256xf32>
    %41 = tpu.matmul %39, %27, %cst_28 {dimension_numbers = #tpu.dot_dimension_numbers<[1], [0], [0], [1], [0, 0, 1, 1], [], []>} : vector<32x64xbf16>, vector<64x256xbf16>, vector<32x256xf32> -> vector<32x256xf32>
    %42 = arith.truncf %41 : vector<32x256xf32> to vector<32x256xbf16>
    %cst_29 = arith.constant dense<0.000000e+00> : vector<32x256xf32>
    %43 = tpu.matmul %42, %40, %cst_29 {dimension_numbers = #tpu.dot_dimension_numbers<[1], [0], [0], [1], [0, 0, 1, 1], [], []>} : vector<32x256xbf16>, vector<256x256xbf16>, vector<32x256xf32> -> vector<32x256xf32>
    %44 = arith.addf %38, %43 : vector<32x256xf32>
    %c2144 = arith.constant 2144 : index
    %c0_30 = arith.constant 0 : index
    %45 = vector.load %arg3[%c2144, %c0_30] : memref<4672x256xbf16, #tpu.memory_space<vmem>>, vector<32x64xbf16>
    %c1888 = arith.constant 1888 : index
    %c0_31 = arith.constant 0 : index
    %46 = vector.load %arg3[%c1888, %c0_31] : memref<4672x256xbf16, #tpu.memory_space<vmem>>, vector<256x256xbf16>
    %cst_32 = arith.constant dense<0.000000e+00> : vector<32x256xf32>
    %47 = tpu.matmul %45, %27, %cst_32 {dimension_numbers = #tpu.dot_dimension_numbers<[1], [0], [0], [1], [0, 0, 1, 1], [], []>} : vector<32x64xbf16>, vector<64x256xbf16>, vector<32x256xf32> -> vector<32x256xf32>
    %48 = arith.truncf %47 : vector<32x256xf32> to vector<32x256xbf16>
    %cst_33 = arith.constant dense<0.000000e+00> : vector<32x256xf32>
    %49 = tpu.matmul %48, %46, %cst_33 {dimension_numbers = #tpu.dot_dimension_numbers<[1], [0], [0], [1], [0, 0, 1, 1], [], []>} : vector<32x256xbf16>, vector<256x256xbf16>, vector<32x256xf32> -> vector<32x256xf32>
    %50 = arith.addf %44, %49 : vector<32x256xf32>
    %c0_34 = arith.constant 0 : index
    %c0_35 = arith.constant 0 : index
    %51 = vector.load %arg5[%c0_34, %c0_35] : memref<1112x64xf32, #tpu.memory_space<vmem>>, vector<256x16xf32>
    %c0_36 = arith.constant 0 : index
    %c0_37 = arith.constant 0 : index
    %52 = vector.load %arg4[%c0_36, %c0_37] : memref<184x256xf32, #tpu.memory_space<vmem>>, vector<16x256xf32>
    %c256_38 = arith.constant 256 : index
    %c0_39 = arith.constant 0 : index
    %53 = vector.load %arg5[%c256_38, %c0_39] : memref<1112x64xf32, #tpu.memory_space<vmem>>, vector<2x16xf32>
    %cst_40 = arith.constant dense<0.000000e+00> : vector<256xf32>
    %54 = vector.multi_reduction <add>, %50, %cst_40 [0] : vector<32x256xf32> to vector<256xf32>
    %55 = vector.shape_cast %54 : vector<256xf32> to vector<1x256xf32>
    %56 = arith.mulf %50, %50 : vector<32x256xf32>
    %cst_41 = arith.constant dense<0.000000e+00> : vector<256xf32>
    %57 = vector.multi_reduction <add>, %56, %cst_41 [0] : vector<32x256xf32> to vector<256xf32>
    %58 = vector.shape_cast %57 : vector<256xf32> to vector<1x256xf32>
    %cst_42 = arith.constant dense<0.000000e+00> : vector<1x16xf32>
    %59 = tpu.matmul %55, %51, %cst_42 {dimension_numbers = #tpu.dot_dimension_numbers<[1], [0], [0], [1], [0, 0, 1, 1], [], []>} : vector<1x256xf32>, vector<256x16xf32>, vector<1x16xf32> -> vector<1x16xf32>
    %cst_43 = arith.constant dense<0.000000e+00> : vector<1x16xf32>
    %60 = tpu.matmul %58, %51, %cst_43 {dimension_numbers = #tpu.dot_dimension_numbers<[1], [0], [0], [1], [0, 0, 1, 1], [], []>} : vector<1x256xf32>, vector<256x16xf32>, vector<1x16xf32> -> vector<1x16xf32>
    %61 = arith.mulf %59, %59 : vector<1x16xf32>
    %62 = arith.subf %60, %61 : vector<1x16xf32>
    %cst_44 = arith.constant 0.000000e+00 : f32
    %63 = vector.broadcast %cst_44 : f32 to vector<1x16xf32>
    %64 = arith.maximumf %62, %63 : vector<1x16xf32>
    %65 = vector.extract_strided_slice %53 {offsets = [0, 0], sizes = [1, 16], strides = [1, 1]} : vector<2x16xf32> to vector<1x16xf32>
    %cst_45 = arith.constant 9.99999974E-6 : f32
    %66 = vector.broadcast %cst_45 : f32 to vector<1x16xf32>
    %67 = arith.addf %64, %66 : vector<1x16xf32>
    %68 = math.rsqrt %67 : vector<1x16xf32>
    %69 = arith.mulf %65, %68 : vector<1x16xf32>
    %70 = vector.extract_strided_slice %53 {offsets = [1, 0], sizes = [1, 16], strides = [1, 1]} : vector<2x16xf32> to vector<1x16xf32>
    %71 = arith.mulf %59, %69 : vector<1x16xf32>
    %72 = arith.subf %70, %71 : vector<1x16xf32>
    %cst_46 = arith.constant dense<0.000000e+00> : vector<1x256xf32>
    %73 = tpu.matmul %69, %52, %cst_46 {dimension_numbers = #tpu.dot_dimension_numbers<[1], [0], [0], [1], [0, 0, 1, 1], [], []>} : vector<1x16xf32>, vector<16x256xf32>, vector<1x256xf32> -> vector<1x256xf32>
    %cst_47 = arith.constant dense<0.000000e+00> : vector<1x256xf32>
    %74 = tpu.matmul %72, %52, %cst_47 {dimension_numbers = #tpu.dot_dimension_numbers<[1], [0], [0], [1], [0, 0, 1, 1], [], []>} : vector<1x16xf32>, vector<16x256xf32>, vector<1x256xf32> -> vector<1x256xf32>
    %75 = vector.broadcast %73 : vector<1x256xf32> to vector<32x256xf32>
    %76 = arith.mulf %50, %75 : vector<32x256xf32>
    %77 = vector.broadcast %74 : vector<1x256xf32> to vector<32x256xf32>
    %78 = arith.addf %76, %77 : vector<32x256xf32>
    %cst_48 = arith.constant 2.000000e-01 : f32
    %79 = vector.broadcast %cst_48 : f32 to vector<32x256xf32>
    %80 = arith.mulf %79, %78 : vector<32x256xf32>
    %81 = arith.maximumf %78, %80 : vector<32x256xf32>
    %82 = arith.truncf %81 : vector<32x256xf32> to vector<32x256xbf16>
    %c2432 = arith.constant 2432 : index
    %c0_49 = arith.constant 0 : index
    %83 = vector.load %arg3[%c2432, %c0_49] : memref<4672x256xbf16, #tpu.memory_space<vmem>>, vector<16x32xbf16>
    %c2176 = arith.constant 2176 : index
    %c0_50 = arith.constant 0 : index
    %84 = vector.load %arg3[%c2176, %c0_50] : memref<4672x256xbf16, #tpu.memory_space<vmem>>, vector<256x256xbf16>
    %cst_51 = arith.constant dense<0.000000e+00> : vector<16x256xf32>
    %85 = tpu.matmul %83, %82, %cst_51 {dimension_numbers = #tpu.dot_dimension_numbers<[1], [0], [0], [1], [0, 0, 1, 1], [], []>} : vector<16x32xbf16>, vector<32x256xbf16>, vector<16x256xf32> -> vector<16x256xf32>
    %86 = arith.truncf %85 : vector<16x256xf32> to vector<16x256xbf16>
    %cst_52 = arith.constant dense<0.000000e+00> : vector<16x256xf32>
    %87 = tpu.matmul %86, %84, %cst_52 {dimension_numbers = #tpu.dot_dimension_numbers<[1], [0], [0], [1], [0, 0, 1, 1], [], []>} : vector<16x256xbf16>, vector<256x256xbf16>, vector<16x256xf32> -> vector<16x256xf32>
    %c2704 = arith.constant 2704 : index
    %c0_53 = arith.constant 0 : index
    %88 = vector.load %arg3[%c2704, %c0_53] : memref<4672x256xbf16, #tpu.memory_space<vmem>>, vector<16x32xbf16>
    %c2448 = arith.constant 2448 : index
    %c0_54 = arith.constant 0 : index
    %89 = vector.load %arg3[%c2448, %c0_54] : memref<4672x256xbf16, #tpu.memory_space<vmem>>, vector<256x256xbf16>
    %cst_55 = arith.constant dense<0.000000e+00> : vector<16x256xf32>
    %90 = tpu.matmul %88, %82, %cst_55 {dimension_numbers = #tpu.dot_dimension_numbers<[1], [0], [0], [1], [0, 0, 1, 1], [], []>} : vector<16x32xbf16>, vector<32x256xbf16>, vector<16x256xf32> -> vector<16x256xf32>
    %91 = arith.truncf %90 : vector<16x256xf32> to vector<16x256xbf16>
    %cst_56 = arith.constant dense<0.000000e+00> : vector<16x256xf32>
    %92 = tpu.matmul %91, %89, %cst_56 {dimension_numbers = #tpu.dot_dimension_numbers<[1], [0], [0], [1], [0, 0, 1, 1], [], []>} : vector<16x256xbf16>, vector<256x256xbf16>, vector<16x256xf32> -> vector<16x256xf32>
    %93 = arith.addf %87, %92 : vector<16x256xf32>
    %c2976 = arith.constant 2976 : index
    %c0_57 = arith.constant 0 : index
    %94 = vector.load %arg3[%c2976, %c0_57] : memref<4672x256xbf16, #tpu.memory_space<vmem>>, vector<16x32xbf16>
    %c2720 = arith.constant 2720 : index
    %c0_58 = arith.constant 0 : index
    %95 = vector.load %arg3[%c2720, %c0_58] : memref<4672x256xbf16, #tpu.memory_space<vmem>>, vector<256x256xbf16>
    %cst_59 = arith.constant dense<0.000000e+00> : vector<16x256xf32>
    %96 = tpu.matmul %94, %82, %cst_59 {dimension_numbers = #tpu.dot_dimension_numbers<[1], [0], [0], [1], [0, 0, 1, 1], [], []>} : vector<16x32xbf16>, vector<32x256xbf16>, vector<16x256xf32> -> vector<16x256xf32>
    %97 = arith.truncf %96 : vector<16x256xf32> to vector<16x256xbf16>
    %cst_60 = arith.constant dense<0.000000e+00> : vector<16x256xf32>
    %98 = tpu.matmul %97, %95, %cst_60 {dimension_numbers = #tpu.dot_dimension_numbers<[1], [0], [0], [1], [0, 0, 1, 1], [], []>} : vector<16x256xbf16>, vector<256x256xbf16>, vector<16x256xf32> -> vector<16x256xf32>
    %99 = arith.addf %93, %98 : vector<16x256xf32>
    %c3248 = arith.constant 3248 : index
    %c0_61 = arith.constant 0 : index
    %100 = vector.load %arg3[%c3248, %c0_61] : memref<4672x256xbf16, #tpu.memory_space<vmem>>, vector<16x32xbf16>
    %c2992 = arith.constant 2992 : index
    %c0_62 = arith.constant 0 : index
    %101 = vector.load %arg3[%c2992, %c0_62] : memref<4672x256xbf16, #tpu.memory_space<vmem>>, vector<256x256xbf16>
    %cst_63 = arith.constant dense<0.000000e+00> : vector<16x256xf32>
    %102 = tpu.matmul %100, %82, %cst_63 {dimension_numbers = #tpu.dot_dimension_numbers<[1], [0], [0], [1], [0, 0, 1, 1], [], []>} : vector<16x32xbf16>, vector<32x256xbf16>, vector<16x256xf32> -> vector<16x256xf32>
    %103 = arith.truncf %102 : vector<16x256xf32> to vector<16x256xbf16>
    %cst_64 = arith.constant dense<0.000000e+00> : vector<16x256xf32>
    %104 = tpu.matmul %103, %101, %cst_64 {dimension_numbers = #tpu.dot_dimension_numbers<[1], [0], [0], [1], [0, 0, 1, 1], [], []>} : vector<16x256xbf16>, vector<256x256xbf16>, vector<16x256xf32> -> vector<16x256xf32>
    %105 = arith.addf %99, %104 : vector<16x256xf32>
    %c264 = arith.constant 264 : index
    %c0_65 = arith.constant 0 : index
    %106 = vector.load %arg5[%c264, %c0_65] : memref<1112x64xf32, #tpu.memory_space<vmem>>, vector<256x32xf32>
    %c16 = arith.constant 16 : index
    %c0_66 = arith.constant 0 : index
    %107 = vector.load %arg4[%c16, %c0_66] : memref<184x256xf32, #tpu.memory_space<vmem>>, vector<32x256xf32>
    %c520 = arith.constant 520 : index
    %c0_67 = arith.constant 0 : index
    %108 = vector.load %arg5[%c520, %c0_67] : memref<1112x64xf32, #tpu.memory_space<vmem>>, vector<2x32xf32>
    %cst_68 = arith.constant dense<0.000000e+00> : vector<256xf32>
    %109 = vector.multi_reduction <add>, %105, %cst_68 [0] : vector<16x256xf32> to vector<256xf32>
    %110 = vector.shape_cast %109 : vector<256xf32> to vector<1x256xf32>
    %111 = arith.mulf %105, %105 : vector<16x256xf32>
    %cst_69 = arith.constant dense<0.000000e+00> : vector<256xf32>
    %112 = vector.multi_reduction <add>, %111, %cst_69 [0] : vector<16x256xf32> to vector<256xf32>
    %113 = vector.shape_cast %112 : vector<256xf32> to vector<1x256xf32>
    %cst_70 = arith.constant dense<0.000000e+00> : vector<1x32xf32>
    %114 = tpu.matmul %110, %106, %cst_70 {dimension_numbers = #tpu.dot_dimension_numbers<[1], [0], [0], [1], [0, 0, 1, 1], [], []>} : vector<1x256xf32>, vector<256x32xf32>, vector<1x32xf32> -> vector<1x32xf32>
    %cst_71 = arith.constant dense<0.000000e+00> : vector<1x32xf32>
    %115 = tpu.matmul %113, %106, %cst_71 {dimension_numbers = #tpu.dot_dimension_numbers<[1], [0], [0], [1], [0, 0, 1, 1], [], []>} : vector<1x256xf32>, vector<256x32xf32>, vector<1x32xf32> -> vector<1x32xf32>
    %116 = arith.mulf %114, %114 : vector<1x32xf32>
    %117 = arith.subf %115, %116 : vector<1x32xf32>
    %cst_72 = arith.constant 0.000000e+00 : f32
    %118 = vector.broadcast %cst_72 : f32 to vector<1x32xf32>
    %119 = arith.maximumf %117, %118 : vector<1x32xf32>
    %120 = vector.extract_strided_slice %108 {offsets = [0, 0], sizes = [1, 32], strides = [1, 1]} : vector<2x32xf32> to vector<1x32xf32>
    %cst_73 = arith.constant 9.99999974E-6 : f32
    %121 = vector.broadcast %cst_73 : f32 to vector<1x32xf32>
    %122 = arith.addf %119, %121 : vector<1x32xf32>
    %123 = math.rsqrt %122 : vector<1x32xf32>
    %124 = arith.mulf %120, %123 : vector<1x32xf32>
    %125 = vector.extract_strided_slice %108 {offsets = [1, 0], sizes = [1, 32], strides = [1, 1]} : vector<2x32xf32> to vector<1x32xf32>
    %126 = arith.mulf %114, %124 : vector<1x32xf32>
    %127 = arith.subf %125, %126 : vector<1x32xf32>
    %cst_74 = arith.constant dense<0.000000e+00> : vector<1x256xf32>
    %128 = tpu.matmul %124, %107, %cst_74 {dimension_numbers = #tpu.dot_dimension_numbers<[1], [0], [0], [1], [0, 0, 1, 1], [], []>} : vector<1x32xf32>, vector<32x256xf32>, vector<1x256xf32> -> vector<1x256xf32>
    %cst_75 = arith.constant dense<0.000000e+00> : vector<1x256xf32>
    %129 = tpu.matmul %127, %107, %cst_75 {dimension_numbers = #tpu.dot_dimension_numbers<[1], [0], [0], [1], [0, 0, 1, 1], [], []>} : vector<1x32xf32>, vector<32x256xf32>, vector<1x256xf32> -> vector<1x256xf32>
    %130 = vector.broadcast %128 : vector<1x256xf32> to vector<16x256xf32>
    %131 = arith.mulf %105, %130 : vector<16x256xf32>
    %132 = vector.broadcast %129 : vector<1x256xf32> to vector<16x256xf32>
    %133 = arith.addf %131, %132 : vector<16x256xf32>
    %cst_76 = arith.constant 2.000000e-01 : f32
    %134 = vector.broadcast %cst_76 : f32 to vector<16x256xf32>
    %135 = arith.mulf %134, %133 : vector<16x256xf32>
    %136 = arith.maximumf %133, %135 : vector<16x256xf32>
    %137 = arith.truncf %136 : vector<16x256xf32> to vector<16x256xbf16>
    %c3520 = arith.constant 3520 : index
    %c0_77 = arith.constant 0 : index
    %138 = vector.load %arg3[%c3520, %c0_77] : memref<4672x256xbf16, #tpu.memory_space<vmem>>, vector<8x16xbf16>
    %c3264 = arith.constant 3264 : index
    %c0_78 = arith.constant 0 : index
    %139 = vector.load %arg3[%c3264, %c0_78] : memref<4672x256xbf16, #tpu.memory_space<vmem>>, vector<256x256xbf16>
    %cst_79 = arith.constant dense<0.000000e+00> : vector<8x256xf32>
    %140 = tpu.matmul %138, %137, %cst_79 {dimension_numbers = #tpu.dot_dimension_numbers<[1], [0], [0], [1], [0, 0, 1, 1], [], []>} : vector<8x16xbf16>, vector<16x256xbf16>, vector<8x256xf32> -> vector<8x256xf32>
    %141 = arith.truncf %140 : vector<8x256xf32> to vector<8x256xbf16>
    %cst_80 = arith.constant dense<0.000000e+00> : vector<8x256xf32>
    %142 = tpu.matmul %141, %139, %cst_80 {dimension_numbers = #tpu.dot_dimension_numbers<[1], [0], [0], [1], [0, 0, 1, 1], [], []>} : vector<8x256xbf16>, vector<256x256xbf16>, vector<8x256xf32> -> vector<8x256xf32>
    %c3792 = arith.constant 3792 : index
    %c0_81 = arith.constant 0 : index
    %143 = vector.load %arg3[%c3792, %c0_81] : memref<4672x256xbf16, #tpu.memory_space<vmem>>, vector<8x16xbf16>
    %c3536 = arith.constant 3536 : index
    %c0_82 = arith.constant 0 : index
    %144 = vector.load %arg3[%c3536, %c0_82] : memref<4672x256xbf16, #tpu.memory_space<vmem>>, vector<256x256xbf16>
    %cst_83 = arith.constant dense<0.000000e+00> : vector<8x256xf32>
    %145 = tpu.matmul %143, %137, %cst_83 {dimension_numbers = #tpu.dot_dimension_numbers<[1], [0], [0], [1], [0, 0, 1, 1], [], []>} : vector<8x16xbf16>, vector<16x256xbf16>, vector<8x256xf32> -> vector<8x256xf32>
    %146 = arith.truncf %145 : vector<8x256xf32> to vector<8x256xbf16>
    %cst_84 = arith.constant dense<0.000000e+00> : vector<8x256xf32>
    %147 = tpu.matmul %146, %144, %cst_84 {dimension_numbers = #tpu.dot_dimension_numbers<[1], [0], [0], [1], [0, 0, 1, 1], [], []>} : vector<8x256xbf16>, vector<256x256xbf16>, vector<8x256xf32> -> vector<8x256xf32>
    %148 = arith.addf %142, %147 : vector<8x256xf32>
    %c4064 = arith.constant 4064 : index
    %c0_85 = arith.constant 0 : index
    %149 = vector.load %arg3[%c4064, %c0_85] : memref<4672x256xbf16, #tpu.memory_space<vmem>>, vector<8x16xbf16>
    %c3808 = arith.constant 3808 : index
    %c0_86 = arith.constant 0 : index
    %150 = vector.load %arg3[%c3808, %c0_86] : memref<4672x256xbf16, #tpu.memory_space<vmem>>, vector<256x256xbf16>
    %cst_87 = arith.constant dense<0.000000e+00> : vector<8x256xf32>
    %151 = tpu.matmul %149, %137, %cst_87 {dimension_numbers = #tpu.dot_dimension_numbers<[1], [0], [0], [1], [0, 0, 1, 1], [], []>} : vector<8x16xbf16>, vector<16x256xbf16>, vector<8x256xf32> -> vector<8x256xf32>
    %152 = arith.truncf %151 : vector<8x256xf32> to vector<8x256xbf16>
    %cst_88 = arith.constant dense<0.000000e+00> : vector<8x256xf32>
    %153 = tpu.matmul %152, %150, %cst_88 {dimension_numbers = #tpu.dot_dimension_numbers<[1], [0], [0], [1], [0, 0, 1, 1], [], []>} : vector<8x256xbf16>, vector<256x256xbf16>, vector<8x256xf32> -> vector<8x256xf32>
    %154 = arith.addf %148, %153 : vector<8x256xf32>
    %c4336 = arith.constant 4336 : index
    %c0_89 = arith.constant 0 : index
    %155 = vector.load %arg3[%c4336, %c0_89] : memref<4672x256xbf16, #tpu.memory_space<vmem>>, vector<8x16xbf16>
    %c4080 = arith.constant 4080 : index
    %c0_90 = arith.constant 0 : index
    %156 = vector.load %arg3[%c4080, %c0_90] : memref<4672x256xbf16, #tpu.memory_space<vmem>>, vector<256x256xbf16>
    %cst_91 = arith.constant dense<0.000000e+00> : vector<8x256xf32>
    %157 = tpu.matmul %155, %137, %cst_91 {dimension_numbers = #tpu.dot_dimension_numbers<[1], [0], [0], [1], [0, 0, 1, 1], [], []>} : vector<8x16xbf16>, vector<16x256xbf16>, vector<8x256xf32> -> vector<8x256xf32>
    %158 = arith.truncf %157 : vector<8x256xf32> to vector<8x256xbf16>
    %cst_92 = arith.constant dense<0.000000e+00> : vector<8x256xf32>
    %159 = tpu.matmul %158, %156, %cst_92 {dimension_numbers = #tpu.dot_dimension_numbers<[1], [0], [0], [1], [0, 0, 1, 1], [], []>} : vector<8x256xbf16>, vector<256x256xbf16>, vector<8x256xf32> -> vector<8x256xf32>
    %160 = arith.addf %154, %159 : vector<8x256xf32>
    %c528 = arith.constant 528 : index
    %c0_93 = arith.constant 0 : index
    %161 = vector.load %arg5[%c528, %c0_93] : memref<1112x64xf32, #tpu.memory_space<vmem>>, vector<256x64xf32>
    %c48 = arith.constant 48 : index
    %c0_94 = arith.constant 0 : index
    %162 = vector.load %arg4[%c48, %c0_94] : memref<184x256xf32, #tpu.memory_space<vmem>>, vector<64x256xf32>
    %c784 = arith.constant 784 : index
    %c0_95 = arith.constant 0 : index
    %163 = vector.load %arg5[%c784, %c0_95] : memref<1112x64xf32, #tpu.memory_space<vmem>>, vector<2x64xf32>
    %cst_96 = arith.constant dense<0.000000e+00> : vector<256xf32>
    %164 = vector.multi_reduction <add>, %160, %cst_96 [0] : vector<8x256xf32> to vector<256xf32>
    %165 = vector.shape_cast %164 : vector<256xf32> to vector<1x256xf32>
    %166 = arith.mulf %160, %160 : vector<8x256xf32>
    %cst_97 = arith.constant dense<0.000000e+00> : vector<256xf32>
    %167 = vector.multi_reduction <add>, %166, %cst_97 [0] : vector<8x256xf32> to vector<256xf32>
    %168 = vector.shape_cast %167 : vector<256xf32> to vector<1x256xf32>
    %cst_98 = arith.constant dense<0.000000e+00> : vector<1x64xf32>
    %169 = tpu.matmul %165, %161, %cst_98 {dimension_numbers = #tpu.dot_dimension_numbers<[1], [0], [0], [1], [0, 0, 1, 1], [], []>} : vector<1x256xf32>, vector<256x64xf32>, vector<1x64xf32> -> vector<1x64xf32>
    %cst_99 = arith.constant dense<0.000000e+00> : vector<1x64xf32>
    %170 = tpu.matmul %168, %161, %cst_99 {dimension_numbers = #tpu.dot_dimension_numbers<[1], [0], [0], [1], [0, 0, 1, 1], [], []>} : vector<1x256xf32>, vector<256x64xf32>, vector<1x64xf32> -> vector<1x64xf32>
    %171 = arith.mulf %169, %169 : vector<1x64xf32>
    %172 = arith.subf %170, %171 : vector<1x64xf32>
    %cst_100 = arith.constant 0.000000e+00 : f32
    %173 = vector.broadcast %cst_100 : f32 to vector<1x64xf32>
    %174 = arith.maximumf %172, %173 : vector<1x64xf32>
    %175 = vector.extract_strided_slice %163 {offsets = [0, 0], sizes = [1, 64], strides = [1, 1]} : vector<2x64xf32> to vector<1x64xf32>
    %cst_101 = arith.constant 9.99999974E-6 : f32
    %176 = vector.broadcast %cst_101 : f32 to vector<1x64xf32>
    %177 = arith.addf %174, %176 : vector<1x64xf32>
    %178 = math.rsqrt %177 : vector<1x64xf32>
    %179 = arith.mulf %175, %178 : vector<1x64xf32>
    %180 = vector.extract_strided_slice %163 {offsets = [1, 0], sizes = [1, 64], strides = [1, 1]} : vector<2x64xf32> to vector<1x64xf32>
    %181 = arith.mulf %169, %179 : vector<1x64xf32>
    %182 = arith.subf %180, %181 : vector<1x64xf32>
    %cst_102 = arith.constant dense<0.000000e+00> : vector<1x256xf32>
    %183 = tpu.matmul %179, %162, %cst_102 {dimension_numbers = #tpu.dot_dimension_numbers<[1], [0], [0], [1], [0, 0, 1, 1], [], []>} : vector<1x64xf32>, vector<64x256xf32>, vector<1x256xf32> -> vector<1x256xf32>
    %cst_103 = arith.constant dense<0.000000e+00> : vector<1x256xf32>
    %184 = tpu.matmul %182, %162, %cst_103 {dimension_numbers = #tpu.dot_dimension_numbers<[1], [0], [0], [1], [0, 0, 1, 1], [], []>} : vector<1x64xf32>, vector<64x256xf32>, vector<1x256xf32> -> vector<1x256xf32>
    %185 = vector.broadcast %183 : vector<1x256xf32> to vector<8x256xf32>
    %186 = arith.mulf %160, %185 : vector<8x256xf32>
    %187 = vector.broadcast %184 : vector<1x256xf32> to vector<8x256xf32>
    %188 = arith.addf %186, %187 : vector<8x256xf32>
    %cst_104 = arith.constant 2.000000e-01 : f32
    %189 = vector.broadcast %cst_104 : f32 to vector<8x256xf32>
    %190 = arith.mulf %189, %188 : vector<8x256xf32>
    %191 = arith.maximumf %188, %190 : vector<8x256xf32>
    %c1056 = arith.constant 1056 : index
    %c0_105 = arith.constant 0 : index
    %192 = vector.load %arg5[%c1056, %c0_105] : memref<1112x64xf32, #tpu.memory_space<vmem>>, vector<32x64xf32>
    %c1088 = arith.constant 1088 : index
    %c0_106 = arith.constant 0 : index
    %193 = vector.load %arg5[%c1088, %c0_106] : memref<1112x64xf32, #tpu.memory_space<vmem>>, vector<2x64xf32>
    %c0_107 = arith.constant 0 : index
    %c0_108 = arith.constant 0 : index
    %194 = vector.load %arg2[%c0_107, %c0_108] : memref<2x32xf32, #tpu.memory_space<vmem>>, vector<2x32xf32>
    %cst_109 = arith.constant dense<0.000000e+00> : vector<2x64xf32>
    %195 = tpu.matmul %194, %192, %cst_109 {dimension_numbers = #tpu.dot_dimension_numbers<[1], [0], [0], [1], [0, 0, 1, 1], [], []>} : vector<2x32xf32>, vector<32x64xf32>, vector<2x64xf32> -> vector<2x64xf32>
    %cst_110 = arith.constant dense<0.000000e+00> : vector<64xf32>
    %196 = vector.multi_reduction <add>, %195, %cst_110 [0] : vector<2x64xf32> to vector<64xf32>
    %197 = vector.shape_cast %196 : vector<64xf32> to vector<1x64xf32>
    %cst_111 = arith.constant 2.000000e+00 : f32
    %198 = vector.broadcast %cst_111 : f32 to vector<1x64xf32>
    %199 = arith.divf %197, %198 : vector<1x64xf32>
    %200 = arith.mulf %195, %195 : vector<2x64xf32>
    %cst_112 = arith.constant dense<0.000000e+00> : vector<64xf32>
    %201 = vector.multi_reduction <add>, %200, %cst_112 [0] : vector<2x64xf32> to vector<64xf32>
    %202 = vector.shape_cast %201 : vector<64xf32> to vector<1x64xf32>
    %cst_113 = arith.constant 2.000000e+00 : f32
    %203 = vector.broadcast %cst_113 : f32 to vector<1x64xf32>
    %204 = arith.divf %202, %203 : vector<1x64xf32>
    %205 = arith.mulf %199, %199 : vector<1x64xf32>
    %206 = arith.subf %204, %205 : vector<1x64xf32>
    %cst_114 = arith.constant 0.000000e+00 : f32
    %207 = vector.broadcast %cst_114 : f32 to vector<1x64xf32>
    %208 = arith.maximumf %206, %207 : vector<1x64xf32>
    %209 = vector.broadcast %199 : vector<1x64xf32> to vector<2x64xf32>
    %210 = arith.subf %195, %209 : vector<2x64xf32>
    %cst_115 = arith.constant 9.99999974E-6 : f32
    %211 = vector.broadcast %cst_115 : f32 to vector<1x64xf32>
    %212 = arith.addf %208, %211 : vector<1x64xf32>
    %213 = math.rsqrt %212 : vector<1x64xf32>
    %214 = vector.broadcast %213 : vector<1x64xf32> to vector<2x64xf32>
    %215 = arith.mulf %210, %214 : vector<2x64xf32>
    %216 = vector.extract_strided_slice %193 {offsets = [0, 0], sizes = [1, 64], strides = [1, 1]} : vector<2x64xf32> to vector<1x64xf32>
    %217 = vector.broadcast %216 : vector<1x64xf32> to vector<2x64xf32>
    %218 = arith.mulf %215, %217 : vector<2x64xf32>
    %219 = vector.extract_strided_slice %193 {offsets = [1, 0], sizes = [1, 64], strides = [1, 1]} : vector<2x64xf32> to vector<1x64xf32>
    %220 = vector.broadcast %219 : vector<1x64xf32> to vector<2x64xf32>
    %221 = arith.addf %218, %220 : vector<2x64xf32>
    %cst_116 = arith.constant 2.000000e-01 : f32
    %222 = vector.broadcast %cst_116 : f32 to vector<2x64xf32>
    %223 = arith.mulf %222, %221 : vector<2x64xf32>
    %224 = arith.maximumf %221, %223 : vector<2x64xf32>
    %c4352 = arith.constant 4352 : index
    %c0_117 = arith.constant 0 : index
    %225 = vector.load %arg3[%c4352, %c0_117] : memref<4672x256xbf16, #tpu.memory_space<vmem>>, vector<256x256xbf16>
    %c4608 = arith.constant 4608 : index
    %c0_118 = arith.constant 0 : index
    %226 = vector.load %arg3[%c4608, %c0_118] : memref<4672x256xbf16, #tpu.memory_space<vmem>>, vector<64x256xbf16>
    %c1096 = arith.constant 1096 : index
    %c0_119 = arith.constant 0 : index
    %227 = vector.load %arg5[%c1096, %c0_119] : memref<1112x64xf32, #tpu.memory_space<vmem>>, vector<8x2xf32>
    %228 = arith.truncf %224 : vector<2x64xf32> to vector<2x64xbf16>
    %cst_120 = arith.constant dense<0.000000e+00> : vector<2x256xf32>
    %229 = tpu.matmul %228, %226, %cst_120 {dimension_numbers = #tpu.dot_dimension_numbers<[1], [0], [0], [1], [0, 0, 1, 1], [], []>} : vector<2x64xbf16>, vector<64x256xbf16>, vector<2x256xf32> -> vector<2x256xf32>
    %230 = arith.truncf %191 : vector<8x256xf32> to vector<8x256xbf16>
    %cst_121 = arith.constant dense<0.000000e+00> : vector<8x256xf32>
    %231 = tpu.matmul %230, %225, %cst_121 {dimension_numbers = #tpu.dot_dimension_numbers<[1], [0], [0], [1], [0, 0, 1, 1], [], []>} : vector<8x256xbf16>, vector<256x256xbf16>, vector<8x256xf32> -> vector<8x256xf32>
    %cst_122 = arith.constant dense<0.000000e+00> : vector<8x256xf32>
    %232 = tpu.matmul %227, %229, %cst_122 {dimension_numbers = #tpu.dot_dimension_numbers<[1], [0], [0], [1], [0, 0, 1, 1], [], []>} : vector<8x2xf32>, vector<2x256xf32>, vector<8x256xf32> -> vector<8x256xf32>
    %233 = arith.addf %231, %232 : vector<8x256xf32>
    %c792 = arith.constant 792 : index
    %c0_123 = arith.constant 0 : index
    %234 = vector.load %arg5[%c792, %c0_123] : memref<1112x64xf32, #tpu.memory_space<vmem>>, vector<256x64xf32>
    %c112 = arith.constant 112 : index
    %c0_124 = arith.constant 0 : index
    %235 = vector.load %arg4[%c112, %c0_124] : memref<184x256xf32, #tpu.memory_space<vmem>>, vector<64x256xf32>
    %c1048 = arith.constant 1048 : index
    %c0_125 = arith.constant 0 : index
    %236 = vector.load %arg5[%c1048, %c0_125] : memref<1112x64xf32, #tpu.memory_space<vmem>>, vector<2x64xf32>
    %cst_126 = arith.constant dense<0.000000e+00> : vector<256xf32>
    %237 = vector.multi_reduction <add>, %233, %cst_126 [0] : vector<8x256xf32> to vector<256xf32>
    %238 = vector.shape_cast %237 : vector<256xf32> to vector<1x256xf32>
    %239 = arith.mulf %233, %233 : vector<8x256xf32>
    %cst_127 = arith.constant dense<0.000000e+00> : vector<256xf32>
    %240 = vector.multi_reduction <add>, %239, %cst_127 [0] : vector<8x256xf32> to vector<256xf32>
    %241 = vector.shape_cast %240 : vector<256xf32> to vector<1x256xf32>
    %cst_128 = arith.constant dense<0.000000e+00> : vector<1x64xf32>
    %242 = tpu.matmul %238, %234, %cst_128 {dimension_numbers = #tpu.dot_dimension_numbers<[1], [0], [0], [1], [0, 0, 1, 1], [], []>} : vector<1x256xf32>, vector<256x64xf32>, vector<1x64xf32> -> vector<1x64xf32>
    %cst_129 = arith.constant dense<0.000000e+00> : vector<1x64xf32>
    %243 = tpu.matmul %241, %234, %cst_129 {dimension_numbers = #tpu.dot_dimension_numbers<[1], [0], [0], [1], [0, 0, 1, 1], [], []>} : vector<1x256xf32>, vector<256x64xf32>, vector<1x64xf32> -> vector<1x64xf32>
    %244 = arith.mulf %242, %242 : vector<1x64xf32>
    %245 = arith.subf %243, %244 : vector<1x64xf32>
    %cst_130 = arith.constant 0.000000e+00 : f32
    %246 = vector.broadcast %cst_130 : f32 to vector<1x64xf32>
    %247 = arith.maximumf %245, %246 : vector<1x64xf32>
    %248 = vector.extract_strided_slice %236 {offsets = [0, 0], sizes = [1, 64], strides = [1, 1]} : vector<2x64xf32> to vector<1x64xf32>
    %cst_131 = arith.constant 9.99999974E-6 : f32
    %249 = vector.broadcast %cst_131 : f32 to vector<1x64xf32>
    %250 = arith.addf %247, %249 : vector<1x64xf32>
    %251 = math.rsqrt %250 : vector<1x64xf32>
    %252 = arith.mulf %248, %251 : vector<1x64xf32>
    %253 = vector.extract_strided_slice %236 {offsets = [1, 0], sizes = [1, 64], strides = [1, 1]} : vector<2x64xf32> to vector<1x64xf32>
    %254 = arith.mulf %242, %252 : vector<1x64xf32>
    %255 = arith.subf %253, %254 : vector<1x64xf32>
    %cst_132 = arith.constant dense<0.000000e+00> : vector<1x256xf32>
    %256 = tpu.matmul %252, %235, %cst_132 {dimension_numbers = #tpu.dot_dimension_numbers<[1], [0], [0], [1], [0, 0, 1, 1], [], []>} : vector<1x64xf32>, vector<64x256xf32>, vector<1x256xf32> -> vector<1x256xf32>
    %cst_133 = arith.constant dense<0.000000e+00> : vector<1x256xf32>
    %257 = tpu.matmul %255, %235, %cst_133 {dimension_numbers = #tpu.dot_dimension_numbers<[1], [0], [0], [1], [0, 0, 1, 1], [], []>} : vector<1x64xf32>, vector<64x256xf32>, vector<1x256xf32> -> vector<1x256xf32>
    %258 = vector.broadcast %256 : vector<1x256xf32> to vector<8x256xf32>
    %259 = arith.mulf %233, %258 : vector<8x256xf32>
    %260 = vector.broadcast %257 : vector<1x256xf32> to vector<8x256xf32>
    %261 = arith.addf %259, %260 : vector<8x256xf32>
    %cst_134 = arith.constant 2.000000e-01 : f32
    %262 = vector.broadcast %cst_134 : f32 to vector<8x256xf32>
    %263 = arith.mulf %262, %261 : vector<8x256xf32>
    %264 = arith.maximumf %261, %263 : vector<8x256xf32>
    %c176 = arith.constant 176 : index
    %c0_135 = arith.constant 0 : index
    %265 = vector.load %arg4[%c176, %c0_135] : memref<184x256xf32, #tpu.memory_space<vmem>>, vector<8x256xf32>
    %c1104 = arith.constant 1104 : index
    %c0_136 = arith.constant 0 : index
    %266 = vector.load %arg5[%c1104, %c0_136] : memref<1112x64xf32, #tpu.memory_space<vmem>>, vector<2x8xf32>
    %267 = arith.mulf %264, %265 : vector<8x256xf32>
    %cst_137 = arith.constant dense<0.000000e+00> : vector<8xf32>
    %268 = vector.multi_reduction <add>, %267, %cst_137 [1] : vector<8x256xf32> to vector<8xf32>
    %269 = vector.shape_cast %268 : vector<8xf32> to vector<8x1xf32>
    %cst_138 = arith.constant dense<0.000000e+00> : vector<2x1xf32>
    %270 = tpu.matmul %266, %269, %cst_138 {dimension_numbers = #tpu.dot_dimension_numbers<[1], [0], [0], [1], [0, 0, 1, 1], [], []>} : vector<2x8xf32>, vector<8x1xf32>, vector<2x1xf32> -> vector<2x1xf32>
    %cst_139 = arith.constant 5.000000e-01 : f32
    %271 = vector.broadcast %cst_139 : f32 to vector<2x1xf32>
    %272 = arith.mulf %271, %270 : vector<2x1xf32>
    %273 = math.tanh %272 : vector<2x1xf32>
    %cst_140 = arith.constant 1.000000e+00 : f32
    %274 = vector.broadcast %cst_140 : f32 to vector<2x1xf32>
    %275 = arith.addf %273, %274 : vector<2x1xf32>
    %cst_141 = arith.constant 5.000000e-01 : f32
    %276 = vector.broadcast %cst_141 : f32 to vector<2x1xf32>
    %277 = arith.mulf %276, %275 : vector<2x1xf32>
    %c0_142 = arith.constant 0 : index
    %c0_143 = arith.constant 0 : index
    %278 = vector.load %arg6[%c0_142, %c0_143] : memref<2x1xf32, #tpu.memory_space<vmem>>, vector<2x1xf32>
    tpu.vector_store %arg6[%c0_142, %c0_143], %277 {strides = array<i32>} : memref<2x1xf32, #tpu.memory_space<vmem>>, vector<2x1xf32>,
    return
  }
  func.func @transform_0(%arg0: i32) -> (i32, i32) {
    %c0_i32 = arith.constant 0 : i32
    %c0_i32_0 = arith.constant 0 : i32
    %c0_i32_1 = arith.constant 0 : i32
    return %c0_i32, %c0_i32_0 : i32, i32
  }
  func.func @transform_1(%arg0: i32) -> (i32, i32) {
    %c0_i32 = arith.constant 0 : i32
    %c0_i32_0 = arith.constant 0 : i32
    %c0_i32_1 = arith.constant 0 : i32
    return %c0_i32, %c0_i32_0 : i32, i32
  }
  func.func @transform_2(%arg0: i32) -> (i32, i32) {
    %c0_i32 = arith.constant 0 : i32
    %c0_i32_0 = arith.constant 0 : i32
    %c0_i32_1 = arith.constant 0 : i32
    return %c0_i32, %c0_i32_0 : i32, i32
  }
  func.func @transform_3(%arg0: i32) -> (i32, i32) {
    %c0_i32 = arith.constant 0 : i32
    %c0_i32_0 = arith.constant 0 : i32
    %c0_i32_1 = arith.constant 0 : i32
    return %c0_i32, %c0_i32_0 : i32, i32
  }
  func.func @transform_4(%arg0: i32) -> (i32, i32) {
    %c0_i32 = arith.constant 0 : i32
    %c0_i32_0 = arith.constant 0 : i32
    %c0_i32_1 = arith.constant 0 : i32
    return %c0_i32, %c0_i32_0 : i32, i32
  }
  func.func @transform_5(%arg0: i32) -> (i32, i32) {
    %c0_i32 = arith.constant 0 : i32
    %c0_i32_0 = arith.constant 0 : i32
    %c0_i32_1 = arith.constant 0 : i32
    return %c0_i32, %c0_i32_0 : i32, i32
  }
}

</mosaic_0001>

<bundles_post_ra>
// kernel: forward.1
= control target key start
LH: loop header
LB: loop body
LE: loop exit
PB: predicated region body
PF: predicated region fallthrough
CT: control target
= control target key end

     0   :  { %10 = vsyncpa [#allocation3], 0  ;;  %s11178_s0 = inlined_call_operand.vmem [shape: bf16[128,192], index: 0, kind: input, shape index: {}]   ;;  %s11179_s1 = inlined_call_operand.hbm [shape: f32[2,32], index: 1, kind: input, shape index: {}]   ;;  %s11180_s2 = inlined_call_operand.hbm [shape: bf16[4672,256], index: 2, kind: input, shape index: {}]   ;;  %s11181_s3 = inlined_call_operand.hbm [shape: f32[184,256], index: 3, kind: input, shape index: {}]   ;;  %s11182_s4 = inlined_call_operand.vmem [shape: f32[1112,64], index: 4, kind: input, shape index: {}]   ;;  %s11183_s5 = inlined_call_operand.vmem [shape: f32[2,1], index: 5, kind: output, shape index: {}]  }
   0x1   :  { %11 = vsyncpa [#allocation5], 0  ;;  %s9739_s18 = smov [#allocation4]   ;;  %s9669_s22 = scalar_lea.hbm %s11180_s2, 74752 }
   0x2   :  { %s29_s19 = sshll.u32 %s9739_s18, 4  ;;  %p9670_p0 = scmp.ne.s32.totalorder %s11180_s2, %s9669_s22  ;;  %s30_s19 = int_to_ptr.vmem [resolvable:$true] %s29_s19 }
   0x3   :  { %p9673_p1 = scmp.lt.u32.totalorder %s9669_s22, %s11180_s2 }
   0x5   :  { %p9675_p2 = pnand %p9673_p1, %p9670_p0 }
   0x7   :  { %9678 = shalt.err (!%p9675_p2)
}
   0x8   :  { %s9679_s27 = scalar_lea.vmem %s30_s19, 74752  ;;  %p9684_p4 = scmp.lt.s32.totalorder %s30_s19, %s30_s19 }
   0x9   :  { %p9680_p3 = scmp.ne.s32.totalorder %s30_s19, %s9679_s27  ;;  %p9685_p5 = scmp.lt.s32.totalorder %s9679_s27, %s9679_s27 }
   0xb   :  { %p9686_p6 = por %p9685_p5, %p9684_p4 }
   0xd   :  { %p9687_p7 = pnand %p9686_p6, %p9680_p3 }
   0xf   :  { %9690 = shalt.err (!%p9687_p7)
}
  0x10   :  { %s9740_s28 = smov 128   ;;  %s9741_s29 = smov 8  }
  0x11   :  { %35 = dma.hbm_to_vmem [thread:$0]  %s11180_s2, 74752, %s30_s19, [#allocation5], %s9740_s28, %s9740_s28, %s9741_s29  }
  0x12   :  { %s9742_s7 = smov [#allocation2]   ;;  %s9743_s9 = smov [#allocation6]  }
  0x13   :  { %s20_s8 = sshll.u32 %s9742_s7, 4  ;;  %s41_s10 = sshll.u32 %s9743_s9, 4  ;;  %s21_s8 = int_to_ptr.vmem [resolvable:$true] %s20_s8  ;;  %s42_s10 = int_to_ptr.vmem [resolvable:$true] %s41_s10 }
  0x14   :  { %s9691_s13 = scalar_lea.hbm %s11179_s1, 32 }
  0x15   :  { %p9692_p8 = scmp.ne.s32.totalorder %s11179_s1, %s9691_s13  ;;  %p9695_p9 = scmp.lt.u32.totalorder %s9691_s13, %s11179_s1 }
  0x17   :  { %p9697_p10 = pnand %p9695_p9, %p9692_p8 }
  0x19   :  { %9700 = shalt.err (!%p9697_p10)
}
  0x1a   :  { %s9701_s2 = scalar_lea.vmem %s21_s8, 32  ;;  %p9706_p12 = scmp.lt.s32.totalorder %s21_s8, %s21_s8 }
  0x1b   :  { %p9702_p11 = scmp.ne.s32.totalorder %s21_s8, %s9701_s2  ;;  %p9707_p13 = scmp.lt.s32.totalorder %s9701_s2, %s9701_s2 }
  0x1d   :  { %p9708_p0 = por %p9707_p13, %p9706_p12 }
  0x1f   :  { %p9709_p1 = pnand %p9708_p0, %p9702_p11 }
  0x21   :  { %9712 = shalt.err (!%p9709_p1)
}
  0x22   :  { %23 = dma.hbm_to_vmem [thread:$0]  %s11179_s1, 32, %s21_s8, [#allocation3]  }
  0x23   :  { %s9713_s22 = scalar_lea.hbm %s11181_s3, 5888 }
  0x24   :  { %p9714_p2 = scmp.ne.s32.totalorder %s11181_s3, %s9713_s22  ;;  %p9717_p3 = scmp.lt.u32.totalorder %s9713_s22, %s11181_s3 }
  0x26   :  { %p9719_p4 = pnand %p9717_p3, %p9714_p2 }
  0x28   :  { %9722 = shalt.err (!%p9719_p4)
}
  0x29   :  { %s9723_s27 = scalar_lea.vmem %s42_s10, 5888  ;;  %p9728_p6 = scmp.lt.s32.totalorder %s42_s10, %s42_s10 }
  0x2a   :  { %p9724_p5 = scmp.ne.s32.totalorder %s42_s10, %s9723_s27  ;;  %p9729_p7 = scmp.lt.s32.totalorder %s9723_s27, %s9723_s27 }
  0x2c   :  { %p9730_p8 = por %p9729_p7, %p9728_p6 }
  0x2e   :  { %p9731_p9 = pnand %p9730_p8, %p9724_p5 }
  0x30   :  { %9734 = shalt.err (!%p9731_p9)
}
  0x31   :  { %s9744_s1 = smov 256   ;;  %s9745_s28 = smov 16  }
  0x32   :  { %47 = dma.hbm_to_vmem [thread:$0]  %s11181_s3, 5888, %s42_s10, [#allocation5], %s9744_s1, %s9744_s1, %s9745_s28  }
  0x33   :  { %9735 = dma.done.wait [#allocation3], 32  }
  0x34   :  { %9736 = vsyncadd [#allocation3], 4294967264 }
  0x35   :  { %9737 = dma.done.wait [#allocation5], 80640  }
  0x36   :  { %9738 = vsyncadd [#allocation5], 4294886656  ;;  %v9746_v0 = vmov 0   ;;  %v9821_v1 = vld [vmem:[%s11178_s0 + $0x4] ss:$8 sps:$4 sm:$0xff]   ;;  %vm550_vm0 = vcmask 523264  }
  0x37   :  { %381 = vmatprep.mubr.bf16.mxu1 %v9746_v0  ;;  %244 = vmatprep.mubr.bf16.mxu0 %v9746_v0  ;;  %v9826_v2 = vld [vmem:[%s11178_s0] ss:$8 sps:$4 sm:$0xff]   ;;  %v9832_v3 = vld [vmem:[%s11178_s0 + $0x14] ss:$8 sps:$4 sm:$0xff]   ;;  %v9839_v4 = vld [vmem:[%s11178_s0 + $0x10] ss:$8 sps:$4 sm:$0xff]  }
  0x38   :  { %349 = vmatprep.subr.bf16.mxu1 %v9821_v1  ;;  %212 = vmatprep.subr.bf16.mxu0 %v9821_v1  ;;  %v9846_v5 = vld [vmem:[%s11178_s0 + $0x24] ss:$8 sps:$4 sm:$0xff]   ;;  %v9853_v6 = vld [vmem:[%s11178_s0 + $0x20] ss:$8 sps:$4 sm:$0xff]   ;;  %v9860_v7 = vld [vmem:[%s11178_s0 + $0x34] ss:$8 sps:$4 sm:$0xff]  }
  0x39   :  { %350 = vmatpush1.bf16.msra.mxu1 %v9826_v2  ;;  %213 = vmatpush1.bf16.msra.mxu0 %v9826_v2  ;;  %v9867_v8 = vld [vmem:[%s11178_s0 + $0x30] ss:$8 sps:$4 sm:$0xff]   ;;  %v9874_v9 = vld [vmem:[%s11178_s0 + $0x44] ss:$8 sps:$4 sm:$0xff]   ;;  %v9881_v10 = vld [vmem:[%s11178_s0 + $0x40] ss:$8 sps:$4 sm:$0xff]  }
  0x3a   :  { %351 = vmatprep.subr.bf16.mxu1 %v9832_v3  ;;  %214 = vmatprep.subr.bf16.mxu0 %v9832_v3  ;;  %v9888_v11 = vld [vmem:[%s11178_s0 + $0x54] ss:$8 sps:$4 sm:$0xff]   ;;  %v9895_v12 = vld [vmem:[%s11178_s0 + $0x50] ss:$8 sps:$4 sm:$0xff]   ;;  %v9902_v13 = vld [vmem:[%s11178_s0 + $0x64] ss:$8 sps:$4 sm:$0xff]  }
  0x3b   :  { %v9909_v14 = vld [vmem:[%s11178_s0 + $0x60] ss:$8 sps:$4 sm:$0xff]   ;;  %v9916_v15 = vld [vmem:[%s11178_s0 + $0x74] ss:$8 sps:$4 sm:$0xff]   ;;  %v9923_v16 = vld [vmem:[%s11178_s0 + $0x70] ss:$8 sps:$4 sm:$0xff]  }
  0x3c   :  { %v8867_v17 = vld [vmem:[#allocation4 + $0x104] ss:$8 sps:$4 sm:$0xff]   ;;  %v8849_v18 = vld [vmem:[#allocation4 + $0x1c0] ss:$8 sps:$4 sm:$0xff]   ;;  %v8870_v21 = vld [vmem:[#allocation4 + $0x114] ss:$8 sps:$4 sm:$0xff]  }
  0x3d   :  { %352 = vmatpush1.bf16.msra.mxu1 %v9839_v4  ;;  %215 = vmatpush1.bf16.msra.mxu0 %v9839_v4  ;;  %v8853_v19 = vld [vmem:[#allocation4 + $0xc0] ss:$8 sps:$4 sm:$0xff]   ;;  %v8868_v22 = vld [vmem:[#allocation4 + $0x110] ss:$8 sps:$4 sm:$0xff]   ;;  %v8873_v26 = vld [vmem:[#allocation4 + $0x124] ss:$8 sps:$4 sm:$0xff]  }
  0x3e   :  { %353 = vmatprep.subr.bf16.mxu1 %v9846_v5  ;;  %216 = vmatprep.subr.bf16.mxu0 %v9846_v5  ;;  %v8865_v20 = vld [vmem:[#allocation4 + $0x100] ss:$8 sps:$4 sm:$0xff]   ;;  %v8850_v23 = vld [vmem:[#allocation4 + $0x1d0] ss:$8 sps:$4 sm:$0xff]   ;;  %v8876_v27 = vld [vmem:[#allocation4 + $0x134] ss:$8 sps:$4 sm:$0xff]  }
  0x3f   :  { %v8854_v24 = vld [vmem:[#allocation4 + $0xd0] ss:$8 sps:$4 sm:$0xff]   ;;  %v8871_v25 = vld [vmem:[#allocation4 + $0x120] ss:$8 sps:$4 sm:$0xff]   ;;  %v8879_v31 = vld [vmem:[#allocation4 + $0x144] ss:$8 sps:$4 sm:$0xff]  }
  0x40   :  { %v8851_v28 = vld [vmem:[#allocation4 + $0x1e0] ss:$8 sps:$4 sm:$0xff]   ;;  %v8874_v30 = vld [vmem:[#allocation4 + $0x130] ss:$8 sps:$4 sm:$0xff]   ;;  %v8882_v35 = vld [vmem:[#allocation4 + $0x154] ss:$8 sps:$4 sm:$0xff]  }
  0x41   :  { %354 = vmatpush1.bf16.msra.mxu1 %v9853_v6  ;;  %217 = vmatpush1.bf16.msra.mxu0 %v9853_v6  ;;  %v8855_v29 = vld [vmem:[#allocation4 + $0xe0] ss:$8 sps:$4 sm:$0xff]   ;;  %v8852_v33 = vld [vmem:[#allocation4 + $0x1f0] ss:$8 sps:$4 sm:$0xff]   ;;  %v8885_v37 = vld [vmem:[#allocation4 + $0x164] ss:$8 sps:$4 sm:$0xff]  }
  0x42   :  { %355 = vmatprep.subr.bf16.mxu1 %v9860_v7  ;;  %218 = vmatprep.subr.bf16.mxu0 %v9860_v7  ;;  %v8877_v32 = vld [vmem:[#allocation4 + $0x140] ss:$8 sps:$4 sm:$0xff]   ;;  %v8856_v34 = vld [vmem:[#allocation4 + $0xf0] ss:$8 sps:$4 sm:$0xff]   ;;  %v8888_v40 = vld [vmem:[#allocation4 + $0x174] ss:$8 sps:$4 sm:$0xff]  }
  0x43   :  { %v8880_v36 = vld [vmem:[#allocation4 + $0x150] ss:$8 sps:$4 sm:$0xff]   ;;  %v8883_v38 = vld [vmem:[#allocation4 + $0x160] ss:$8 sps:$4 sm:$0xff]   ;;  %v8891_v42 = vld [vmem:[#allocation4 + $0x184] ss:$8 sps:$4 sm:$0xff]  }
  0x44   :  { %v8857_v39 = vld [vmem:[#allocation4 + $0x2c0] ss:$8 sps:$4 sm:$0xff]   ;;  %v8886_v41 = vld [vmem:[#allocation4 + $0x170] ss:$8 sps:$4 sm:$0xff]   ;;  %v8894_v45 = vld [vmem:[#allocation4 + $0x194] ss:$8 sps:$4 sm:$0xff]  }
  0x45   :  { %356 = vmatpush1.bf16.msra.mxu1 %v9867_v8  ;;  %219 = vmatpush1.bf16.msra.mxu0 %v9867_v8  ;;  %v8889_v43 = vld [vmem:[#allocation4 + $0x180] ss:$8 sps:$4 sm:$0xff]   ;;  %v8858_v44 = vld [vmem:[#allocation4 + $0x2d0] ss:$8 sps:$4 sm:$0xff]   ;;  %v8897_v47 = vld [vmem:[#allocation4 + $0x1a4] ss:$8 sps:$4 sm:$0xff]  }
  0x46   :  { %357 = vmatprep.subr.bf16.mxu1 %v9874_v9  ;;  %220 = vmatprep.subr.bf16.mxu0 %v9874_v9  ;;  %v8892_v46 = vld [vmem:[#allocation4 + $0x190] ss:$8 sps:$4 sm:$0xff]   ;;  %v8895_v48 = vld [vmem:[#allocation4 + $0x1a0] ss:$8 sps:$4 sm:$0xff]   ;;  %v8900_v55 = vld [vmem:[#allocation4 + $0x1b4] ss:$8 sps:$4 sm:$0xff]  }
  0x47   :  { %v8859_v49 = vld [vmem:[#allocation4 + $0x2e0] ss:$8 sps:$4 sm:$0xff]   ;;  %v8860_v50 = vld [vmem:[#allocation4 + $0x2f0] ss:$8 sps:$4 sm:$0xff]   ;;  %v8903_v57 = vld [vmem:[#allocation4 + $0x4] ss:$8 sps:$4 sm:$0xff]  }
  0x48   :  { %v8861_v51 = vld [vmem:[#allocation4 + $0x3c0] ss:$8 sps:$4 sm:$0xff]   ;;  %v8862_v52 = vld [vmem:[#allocation4 + $0x3d0] ss:$8 sps:$4 sm:$0xff]   ;;  %vm3133_vm1 = vcmask 130048   ;;  %vm3374_vm2 = vcmask 261120  }
  0x49   :  { %358 = vmatpush1.bf16.msra.mxu1 %v9881_v10  ;;  %221 = vmatpush1.bf16.msra.mxu0 %v9881_v10  ;;  %v8863_v53 = vld [vmem:[#allocation4 + $0x3e0] ss:$8 sps:$4 sm:$0xff]   ;;  %v8864_v54 = vld [vmem:[#allocation4 + $0x3f0] ss:$8 sps:$4 sm:$0xff]   ;;  %vm9749_vm3 = vmmov 0   ;;  %vm6513_vm4 = vcmask 517120  }
  0x4a   :  { %359 = vmatprep.subr.bf16.mxu1 %v9888_v11  ;;  %222 = vmatprep.subr.bf16.mxu0 %v9888_v11  ;;  %v8898_v56 = vld [vmem:[#allocation4 + $0x1b0] ss:$8 sps:$4 sm:$0xff]   ;;  %vm6683_vm5 = vcmask 1041408   ;;  %vm6679_vm6 = vcmask 15360   ;;  %vm7369_vm7 = vcmask 64512   ;;  %vm7447_vm8 = vcmask 1024  }
  0x4d   :  { %360 = vmatpush1.bf16.msra.mxu1 %v9895_v12  ;;  %223 = vmatpush1.bf16.msra.mxu0 %v9895_v12 }
  0x4e   :  { %361 = vmatprep.subr.bf16.mxu1 %v9902_v13  ;;  %224 = vmatprep.subr.bf16.mxu0 %v9902_v13 }
  0x51   :  { %362 = vmatpush1.bf16.msra.mxu1 %v9909_v14  ;;  %225 = vmatpush1.bf16.msra.mxu0 %v9909_v14 }
  0x52   :  { %363 = vmatprep.subr.bf16.mxu1 %v9916_v15  ;;  %226 = vmatprep.subr.bf16.mxu0 %v9916_v15 }
  0x55   :  { %364 = vmatpush1.bf16.msra.mxu1 %v9923_v16  ;;  %227 = vmatpush1.bf16.msra.mxu0 %v9923_v16 }
  0x56   :  { %897 = vmatprep.subr.bf16.mxu1 %v9821_v1  ;;  %563 = vmatprep.subr.bf16.mxu0 %v8867_v17 }
  0x58   :  { %382 = vmatmul.mubr.bf16.vlgmr.msra.gmra.mrb[0].mxu1 %v8849_v18  ;;  %245 = vmatmul.mubr.bf16.vlgmr.msra.gmra.mrb[0].mxu0 %v8853_v19 }
  0x59   :  { %391 = vmatprep.mubr.bf16.mxu1 %v9746_v0  ;;  %898 = vmatpush1.bf16.msra.mxu1 %v9826_v2 }
  0x5a   :  { %899 = vmatprep.subr.bf16.mxu1 %v9832_v3  ;;  %254 = vmatprep.mubr.bf16.mxu0 %v9746_v0 }
  0x5b   :  { %564 = vmatpush1.bf16.msra.mxu0 %v8865_v20 }
  0x5c   :  { %565 = vmatprep.subr.bf16.mxu0 %v8870_v21  ;;  %v8907_v21 = vld [vmem:[#allocation4 + $0x20] ss:$8 sps:$4 sm:$0xff]  }
  0x5d   :  { %900 = vmatpush1.bf16.msra.mxu1 %v9839_v4 }
  0x5e   :  { %901 = vmatprep.subr.bf16.mxu1 %v9846_v5 }
  0x5f   :  { %566 = vmatpush1.bf16.msra.mxu0 %v8868_v22 }
  0x60   :  { %392 = vmatmul.mubr.bf16.gmra.mrb[4].mxu1 %v8850_v23  ;;  %255 = vmatmul.mubr.bf16.gmra.mrb[4].mxu0 %v8854_v24  ;;  %v8912_v24 = vld [vmem:[#allocation4 + $0x34] ss:$8 sps:$4 sm:$0xff]  }
  0x61   :  { %401 = vmatprep.mubr.bf16.mxu1 %v9746_v0  ;;  %902 = vmatpush1.bf16.msra.mxu1 %v9853_v6 }
  0x62   :  { %903 = vmatprep.subr.bf16.mxu1 %v9860_v7  ;;  %264 = vmatprep.mubr.bf16.mxu0 %v9746_v0 }
  0x63   :  { %567 = vmatprep.subr.bf16.mxu0 %v8873_v26 }
  0x64   :  { %568 = vmatpush1.bf16.msra.mxu0 %v8871_v25  ;;  %v8910_v25 = vld [vmem:[#allocation4 + $0x30] ss:$8 sps:$4 sm:$0xff]  }
  0x65   :  { %904 = vmatpush1.bf16.msra.mxu1 %v9867_v8  ;;  %569 = vmatprep.subr.bf16.mxu0 %v8876_v27 }
  0x66   :  { %905 = vmatprep.subr.bf16.mxu1 %v9874_v9 }
  0x68   :  { %402 = vmatmul.mubr.bf16.gmra.mrb[8].mxu1 %v8851_v28  ;;  %265 = vmatmul.mubr.bf16.gmra.mrb[8].mxu0 %v8855_v29  ;;  %v8915_v28 = vld [vmem:[#allocation4 + $0x44] ss:$8 sps:$4 sm:$0xff]  }
  0x69   :  { %411 = vmatprep.mubr.bf16.mxu1 %v9746_v0  ;;  %906 = vmatpush1.bf16.msra.mxu1 %v9881_v10 }
  0x6a   :  { %907 = vmatprep.subr.bf16.mxu1 %v9888_v11  ;;  %274 = vmatprep.mubr.bf16.mxu0 %v9746_v0 }
  0x6b   :  { %570 = vmatpush1.bf16.msra.mxu0 %v8874_v30 }
  0x6c   :  { %571 = vmatprep.subr.bf16.mxu0 %v8879_v31 }
  0x6d   :  { %908 = vmatpush1.bf16.msra.mxu1 %v9895_v12 }
  0x6e   :  { %909 = vmatprep.subr.bf16.mxu1 %v9902_v13 }
  0x6f   :  { %572 = vmatpush1.bf16.msra.mxu0 %v8877_v32 }
  0x70   :  { %412 = vmatmul.mubr.bf16.gmra.mrb[12].mxu1 %v8852_v33  ;;  %275 = vmatmul.mubr.bf16.gmra.mrb[12].mxu0 %v8856_v34 }
  0x71   :  { %910 = vmatpush1.bf16.msra.mxu1 %v9909_v14  ;;  %929 = vmatprep.mubr.bf16.mxu1 %v9746_v0 }
  0x72   :  { %911 = vmatprep.subr.bf16.mxu1 %v9916_v15  ;;  %573 = vmatprep.subr.bf16.mxu0 %v8882_v35 }
  0x73   :  { %574 = vmatpush1.bf16.msra.mxu0 %v8880_v36 }
  0x74   :  { %575 = vmatprep.subr.bf16.mxu0 %v8885_v37  ;;  %v8913_v37 = vld [vmem:[#allocation4 + $0x40] ss:$8 sps:$4 sm:$0xff]  }
  0x75   :  { %912 = vmatpush1.bf16.msra.mxu1 %v9923_v16 }
  0x76   :  { %1255 = vmatprep.subr.bf16.mxu1 %v9821_v1 }
  0x77   :  { %576 = vmatpush1.bf16.msra.mxu0 %v8883_v38 }
  0x78   :  { %930 = vmatmul.mubr.bf16.vlgmr.msra.gmra.mrb[16].mxu1 %v8857_v39  ;;  %577 = vmatprep.subr.bf16.mxu0 %v8888_v40  ;;  %v8918_v40 = vld [vmem:[#allocation4 + $0x54] ss:$8 sps:$4 sm:$0xff]  }
  0x79   :  { %1256 = vmatpush1.bf16.msra.mxu1 %v9826_v2  ;;  %939 = vmatprep.mubr.bf16.mxu1 %v9746_v0 }
  0x7a   :  { %1257 = vmatprep.subr.bf16.mxu1 %v9832_v3 }
  0x7b   :  { %578 = vmatpush1.bf16.msra.mxu0 %v8886_v41  ;;  %v8916_v41 = vld [vmem:[#allocation4 + $0x50] ss:$8 sps:$4 sm:$0xff]  }
  0x7c   :  { %579 = vmatprep.subr.bf16.mxu0 %v8891_v42 }
  0x7d   :  { %1258 = vmatpush1.bf16.msra.mxu1 %v9839_v4 }
  0x7e   :  { %1259 = vmatprep.subr.bf16.mxu1 %v9846_v5 }
  0x7f   :  { %580 = vmatpush1.bf16.msra.mxu0 %v8889_v43 }
  0x80   :  { %940 = vmatmul.mubr.bf16.gmra.mrb[20].mxu1 %v8858_v44  ;;  %581 = vmatprep.subr.bf16.mxu0 %v8894_v45  ;;  %v8921_v44 = vld [vmem:[#allocation4 + $0x64] ss:$8 sps:$4 sm:$0xff]  }
  0x81   :  { %1260 = vmatpush1.bf16.msra.mxu1 %v9853_v6  ;;  %949 = vmatprep.mubr.bf16.mxu1 %v9746_v0  ;;  %v8901_v6 = vld [vmem:[#allocation4] ss:$8 sps:$4 sm:$0xff]  }
  0x82   :  { %1261 = vmatprep.subr.bf16.mxu1 %v9860_v7 }
  0x83   :  { %582 = vmatpush1.bf16.msra.mxu0 %v8892_v46 }
  0x84   :  { %583 = vmatprep.subr.bf16.mxu0 %v8897_v47 }
  0x85   :  { %1262 = vmatpush1.bf16.msra.mxu1 %v9867_v8  ;;  %v8906_v8 = vld [vmem:[#allocation4 + $0x14] ss:$8 sps:$4 sm:$0xff]  }
  0x86   :  { %1263 = vmatprep.subr.bf16.mxu1 %v9874_v9  ;;  %v8904_v9 = vld [vmem:[#allocation4 + $0x10] ss:$8 sps:$4 sm:$0xff]  }
  0x87   :  { %584 = vmatpush1.bf16.msra.mxu0 %v8895_v48 }
  0x88   :  { %950 = vmatmul.mubr.bf16.gmra.mrb[24].mxu1 %v8859_v49  ;;  %585 = vmatprep.subr.bf16.mxu0 %v8900_v55 }
  0x89   :  { %1264 = vmatpush1.bf16.msra.mxu1 %v9881_v10  ;;  %959 = vmatprep.mubr.bf16.mxu1 %v9746_v0 }
  0x8a   :  { %1265 = vmatprep.subr.bf16.mxu1 %v9888_v11 }
  0x8b   :  { %586 = vmatpush1.bf16.msra.mxu0 %v8898_v56  ;;  %v8924_v56 = vld [vmem:[#allocation4 + $0x74] ss:$8 sps:$4 sm:$0xff]  }
  0x8c   :  { %768 = vmatprep.subr.bf16.mxu0 %v8903_v57  ;;  %v8922_v57 = vld [vmem:[#allocation4 + $0x70] ss:$8 sps:$4 sm:$0xff]  }
  0x8d   :  { %1266 = vmatpush1.bf16.msra.mxu1 %v9895_v12  ;;  %v8909_v12 = vld [vmem:[#allocation4 + $0x24] ss:$8 sps:$4 sm:$0xff]  }
  0x8e   :  { %1267 = vmatprep.subr.bf16.mxu1 %v9902_v13 }
  0x90   :  { %960 = vmatmul.mubr.bf16.gmra.mrb[28].mxu1 %v8860_v50 }
  0x91   :  { %1268 = vmatpush1.bf16.msra.mxu1 %v9909_v14  ;;  %1287 = vmatprep.mubr.bf16.mxu1 %v9746_v0 }
  0x92   :  { %1269 = vmatprep.subr.bf16.mxu1 %v9916_v15 }
  0x95   :  { %1270 = vmatpush1.bf16.msra.mxu1 %v9923_v16 }
  0x98   :  { %1288 = vmatmul.mubr.bf16.vlgmr.msra.gmra.mrb[32].mxu1 %v8861_v51 }
  0x99   :  { %1297 = vmatprep.mubr.bf16.mxu1 %v9746_v0 }
  0xa0   :  { %1298 = vmatmul.mubr.bf16.gmra.mrb[36].mxu1 %v8862_v52 }
  0xa1   :  { %1307 = vmatprep.mubr.bf16.mxu1 %v9746_v0 }
  0xa8   :  { %1308 = vmatmul.mubr.bf16.gmra.mrb[40].mxu1 %v8863_v53  ;;  %v8919_v53 = vld [vmem:[#allocation4 + $0x60] ss:$8 sps:$4 sm:$0xff]  }
  0xa9   :  { %1317 = vmatprep.mubr.bf16.mxu1 %v9746_v0 }
  0xb0   :  { %1318 = vmatmul.mubr.bf16.gmra.mrb[44].mxu1 %v8864_v54 }
  0xb1   :  { %1681 = vmatprep.mubr.bf16.mxu1 %v9746_v0 }
 0x12b   :  { %v383_v58 = vpop.f32.mrb[0].mxu1  ;;  %v9977_v59 = vpop.f32.mrb[0].mxu0 }
 0x12c   :  { %v385_v60 = vpop.f32.mrb[1].mxu1  ;;  %v9979_v61 = vpop.f32.mrb[1].mxu0 }
 0x12d   :  { %v387_v62 = vpop.f32.mrb[2].mxu1  ;;  %v9981_v63 = vpop.f32.mrb[2].mxu0 }
 0x12e   :  { %v422_v1 = vpack.c.bf16 %v387_v62, %v383_v58  ;;  %v389_v2 = vpop.f32.mrb[3].mxu1  ;;  %v285_v3 = vpack.c.bf16 %v9981_v63, %v9977_v59  ;;  %v9985_v4 = vpop.f32.mrb[3].mxu0  ;;  %v8943_v63 = vld [vmem:[#allocation4 + $0x220] ss:$8 sps:$4 sm:$0xff]  }
 0x12f   :  { %v423_v5 = vpack.c.bf16 %v389_v2, %v385_v60  ;;  %v286_v7 = vpack.c.bf16 %v9985_v4, %v9979_v61  ;;  %v8927_v60 = vld [vmem:[#allocation4 + $0x84] ss:$8 sps:$4 sm:$0xff]   ;;  %v8930_v4 = vld [vmem:[#allocation4 + $0x94] ss:$8 sps:$4 sm:$0xff]  }
 0x131   :  { %7503 = vmatprep.mubr.msk.bf16.mxu0 %vm550_vm0, %v423_v5 }
 0x132   :  { %596 = vmatmul.mubr.bf16.vlgmr.msra.gmra.mrb[16].mxu0 %v422_v1 }
 0x133   :  { %769 = vmatpush1.bf16.msra.mxu0 %v8901_v6  ;;  %v393_v10 = vpop.f32.mrb[4].mxu1  ;;  %v9990_v11 = vpop.f32.mrb[4].mxu0  ;;  %v8925_v6 = vld [vmem:[#allocation4 + $0x80] ss:$8 sps:$4 sm:$0xff]  }
 0x134   :  { %770 = vmatprep.subr.bf16.mxu0 %v8906_v8  ;;  %v395_v13 = vpop.f32.mrb[5].mxu1  ;;  %v9992_v14 = vpop.f32.mrb[5].mxu0 }
 0x135   :  { %v397_v15 = vpop.f32.mrb[6].mxu1  ;;  %v9994_v16 = vpop.f32.mrb[6].mxu0 }
 0x136   :  { %v424_v17 = vpack.c.bf16 %v397_v15, %v393_v10  ;;  %v399_v18 = vpop.f32.mrb[7].mxu1  ;;  %v287_v19 = vpack.c.bf16 %v9994_v16, %v9990_v11  ;;  %v9998_v20 = vpop.f32.mrb[7].mxu0  ;;  %v8949_v16 = vld [vmem:[#allocation4 + $0x240] ss:$8 sps:$4 sm:$0xff]  }
 0x137   :  { %771 = vmatpush1.bf16.msra.mxu0 %v8904_v9  ;;  %v425_v22 = vpack.c.bf16 %v399_v18, %v395_v13  ;;  %v288_v23 = vpack.c.bf16 %v9998_v20, %v9992_v14  ;;  %v8933_v9 = vld [vmem:[#allocation4 + $0xa4] ss:$8 sps:$4 sm:$0xff]   ;;  %v8948_v14 = vld [vmem:[#allocation4 + $0x234] ss:$8 sps:$4 sm:$0xff]   ;;  %v8946_v20 = vld [vmem:[#allocation4 + $0x230] ss:$8 sps:$4 sm:$0xff]  }
 0x138   :  { %772 = vmatprep.subr.bf16.mxu0 %v8909_v12 }
 0x139   :  { %7504 = vmatprep.mubr.msk.bf16.mxu0 %vm550_vm0, %v425_v22  ;;  %v8934_v22 = vld [vmem:[#allocation4 + $0xb0] ss:$8 sps:$4 sm:$0xff]  }
 0x13a   :  { %606 = vmatmul.mubr.bf16.gmra.mrb[20].mxu0 %v424_v17  ;;  %v8931_v17 = vld [vmem:[#allocation4 + $0xa0] ss:$8 sps:$4 sm:$0xff]  }
 0x13b   :  { %773 = vmatpush1.bf16.msra.mxu0 %v8907_v21  ;;  %v403_v26 = vpop.f32.mrb[8].mxu1  ;;  %v10003_v27 = vpop.f32.mrb[8].mxu0  ;;  %v8936_v21 = vld [vmem:[#allocation4 + $0xb4] ss:$8 sps:$4 sm:$0xff]  }
 0x13c   :  { %774 = vmatprep.subr.bf16.mxu0 %v8912_v24  ;;  %v405_v29 = vpop.f32.mrb[9].mxu1  ;;  %v10005_v30 = vpop.f32.mrb[9].mxu0 }
 0x13d   :  { %v407_v31 = vpop.f32.mrb[10].mxu1  ;;  %v10007_v32 = vpop.f32.mrb[10].mxu0 }
 0x13e   :  { %v426_v33 = vpack.c.bf16 %v407_v31, %v403_v26  ;;  %v409_v34 = vpop.f32.mrb[11].mxu1  ;;  %v289_v35 = vpack.c.bf16 %v10007_v32, %v10003_v27  ;;  %v10011_v36 = vpop.f32.mrb[11].mxu0  ;;  %v8955_v32 = vld [vmem:[#allocation4 + $0x260] ss:$8 sps:$4 sm:$0xff]  }
 0x13f   :  { %775 = vmatpush1.bf16.msra.mxu0 %v8910_v25  ;;  %v427_v38 = vpack.c.bf16 %v409_v34, %v405_v29  ;;  %v290_v39 = vpack.c.bf16 %v10011_v36, %v10005_v30  ;;  %v8939_v25 = vld [vmem:[#allocation4 + $0x204] ss:$8 sps:$4 sm:$0xff]   ;;  %v8954_v30 = vld [vmem:[#allocation4 + $0x254] ss:$8 sps:$4 sm:$0xff]   ;;  %v8952_v36 = vld [vmem:[#allocation4 + $0x250] ss:$8 sps:$4 sm:$0xff]  }
 0x140   :  { %776 = vmatprep.subr.bf16.mxu0 %v8915_v28 }
 0x141   :  { %7505 = vmatprep.mubr.msk.bf16.mxu0 %vm550_vm0, %v427_v38  ;;  %v8940_v38 = vld [vmem:[#allocation4 + $0x210] ss:$8 sps:$4 sm:$0xff]  }
 0x142   :  { %616 = vmatmul.mubr.bf16.gmra.mrb[24].mxu0 %v426_v33  ;;  %v8937_v33 = vld [vmem:[#allocation4 + $0x200] ss:$8 sps:$4 sm:$0xff]  }
 0x143   :  { %777 = vmatpush1.bf16.msra.mxu0 %v8913_v37  ;;  %v413_v42 = vpop.f32.mrb[12].mxu1  ;;  %v10016_v43 = vpop.f32.mrb[12].mxu0  ;;  %v8942_v37 = vld [vmem:[#allocation4 + $0x214] ss:$8 sps:$4 sm:$0xff]  }
 0x144   :  { %778 = vmatprep.subr.bf16.mxu0 %v8918_v40  ;;  %v415_v45 = vpop.f32.mrb[13].mxu1  ;;  %v10018_v46 = vpop.f32.mrb[13].mxu0 }
 0x145   :  { %v417_v47 = vpop.f32.mrb[14].mxu1  ;;  %v10020_v48 = vpop.f32.mrb[14].mxu0 }
 0x146   :  { %v428_v49 = vpack.c.bf16 %v417_v47, %v413_v42  ;;  %v419_v50 = vpop.f32.mrb[15].mxu1  ;;  %v291_v51 = vpack.c.bf16 %v10020_v48, %v10016_v43  ;;  %v10024_v52 = vpop.f32.mrb[15].mxu0  ;;  %v8951_v47 = vld [vmem:[#allocation4 + $0x244] ss:$8 sps:$4 sm:$0xff]   ;;  %v8961_v48 = vld [vmem:[#allocation4 + $0x280] ss:$8 sps:$4 sm:$0xff]  }
 0x147   :  { %779 = vmatpush1.bf16.msra.mxu0 %v8916_v41  ;;  %v429_v54 = vpack.c.bf16 %v419_v50, %v415_v45  ;;  %v292_v55 = vpack.c.bf16 %v10024_v52, %v10018_v46  ;;  %v8945_v41 = vld [vmem:[#allocation4 + $0x224] ss:$8 sps:$4 sm:$0xff]   ;;  %v8960_v46 = vld [vmem:[#allocation4 + $0x274] ss:$8 sps:$4 sm:$0xff]   ;;  %v8958_v52 = vld [vmem:[#allocation4 + $0x270] ss:$8 sps:$4 sm:$0xff]  }
 0x148   :  { %780 = vmatprep.subr.bf16.mxu0 %v8921_v44 }
 0x149   :  { %7506 = vmatprep.mubr.msk.bf16.mxu0 %vm550_vm0, %v429_v54  ;;  %v8957_v54 = vld [vmem:[#allocation4 + $0x264] ss:$8 sps:$4 sm:$0xff]  }
 0x14a   :  { %626 = vmatmul.mubr.bf16.gmra.mrb[28].mxu0 %v428_v49 }
 0x14b   :  { %781 = vmatpush1.bf16.msra.mxu0 %v8919_v53  ;;  %7531 = vmatprep.mubr.msk.bf16.mxu0 %vm550_vm0, %v286_v7  ;;  %v10033_v58 = vpop.f32.mrb[16].mxu1  ;;  %v8928_v7 = vld [vmem:[#allocation4 + $0x90] ss:$8 sps:$4 sm:$0xff]  }
 0x14c   :  { %782 = vmatprep.subr.bf16.mxu0 %v8924_v56  ;;  %v10035_v62 = vpop.f32.mrb[17].mxu1 }
 0x14d   :  { %v10037_v1 = vpop.f32.mrb[18].mxu1 }
 0x14e   :  { %v970_v2 = vpack.c.bf16 %v10037_v1, %v10033_v58  ;;  %v10041_v5 = vpop.f32.mrb[19].mxu1  ;;  %v8982_v58 = vld [vmem:[#allocation4 + $0x330] ss:$8 sps:$4 sm:$0xff]   ;;  %v8987_v1 = vld [vmem:[#allocation4 + $0x344] ss:$8 sps:$4 sm:$0xff]  }
 0x14f   :  { %783 = vmatpush1.bf16.msra.mxu0 %v8922_v57  ;;  %v971_v61 = vpack.c.bf16 %v10041_v5, %v10035_v62  ;;  %v8966_v62 = vld [vmem:[#allocation4 + $0x294] ss:$8 sps:$4 sm:$0xff]   ;;  %v8964_v5 = vld [vmem:[#allocation4 + $0x290] ss:$8 sps:$4 sm:$0xff]  }
 0x150   :  { %784 = vmatprep.subr.bf16.mxu0 %v8927_v60 }
 0x153   :  { %785 = vmatpush1.bf16.msra.mxu0 %v8925_v6  ;;  %v10045_v8 = vpop.f32.mrb[20].mxu1  ;;  %v8963_v6 = vld [vmem:[#allocation4 + $0x284] ss:$8 sps:$4 sm:$0xff]  }
 0x154   :  { %786 = vmatprep.subr.bf16.mxu0 %v8930_v4  ;;  %v10047_v10 = vpop.f32.mrb[21].mxu1 }
 0x155   :  { %v10049_v12 = vpop.f32.mrb[22].mxu1 }
 0x156   :  { %v972_v13 = vpack.c.bf16 %v10049_v12, %v10045_v8  ;;  %v10053_v15 = vpop.f32.mrb[23].mxu1  ;;  %v8988_v8 = vld [vmem:[#allocation4 + $0x350] ss:$8 sps:$4 sm:$0xff]   ;;  %v8993_v12 = vld [vmem:[#allocation4 + $0x364] ss:$8 sps:$4 sm:$0xff]  }
 0x157   :  { %787 = vmatpush1.bf16.msra.mxu0 %v8928_v7  ;;  %v973_v18 = vpack.c.bf16 %v10053_v15, %v10047_v10  ;;  %v8990_v10 = vld [vmem:[#allocation4 + $0x354] ss:$8 sps:$4 sm:$0xff]  }
 0x158   :  { %788 = vmatprep.subr.bf16.mxu0 %v8933_v9  ;;  %v8996_v15 = vld [vmem:[#allocation4 + $0x374] ss:$8 sps:$4 sm:$0xff]  }
 0x15b   :  { %789 = vmatpush1.bf16.msra.mxu0 %v8931_v17  ;;  %v10057_v24 = vpop.f32.mrb[24].mxu1  ;;  %v8969_v17 = vld [vmem:[#allocation4 + $0x2a4] ss:$8 sps:$4 sm:$0xff]  }
 0x15c   :  { %790 = vmatprep.subr.bf16.mxu0 %v8936_v21  ;;  %v10059_v26 = vpop.f32.mrb[25].mxu1 }
 0x15d   :  { %v10061_v28 = vpop.f32.mrb[26].mxu1 }
 0x15e   :  { %v974_v29 = vpack.c.bf16 %v10061_v28, %v10057_v24  ;;  %v10065_v31 = vpop.f32.mrb[27].mxu1  ;;  %v8999_v24 = vld [vmem:[#allocation4 + $0x384] ss:$8 sps:$4 sm:$0xff]   ;;  %v9002_v28 = vld [vmem:[#allocation4 + $0x394] ss:$8 sps:$4 sm:$0xff]  }
 0x15f   :  { %791 = vmatpush1.bf16.msra.mxu0 %v8934_v22  ;;  %v975_v34 = vpack.c.bf16 %v10065_v31, %v10059_v26  ;;  %v8997_v26 = vld [vmem:[#allocation4 + $0x380] ss:$8 sps:$4 sm:$0xff]   ;;  %v9005_v31 = vld [vmem:[#allocation4 + $0x3a4] ss:$8 sps:$4 sm:$0xff]  }
 0x160   :  { %1110 = vmatprep.subr.bf16.mxu0 %v8939_v25 }
 0x162   :  { %801 = vmatmul.mubr.bf16.vlgmr.msra.gmra.mrb[16].mxu0 %v285_v3 }
 0x163   :  { %1111 = vmatpush1.bf16.msra.mxu0 %v8937_v33  ;;  %7532 = vmatprep.mubr.msk.bf16.mxu0 %vm550_vm0, %v288_v23  ;;  %v10076_v40 = vpop.f32.mrb[28].mxu1 }
 0x164   :  { %1112 = vmatprep.subr.bf16.mxu0 %v8942_v37  ;;  %v10078_v42 = vpop.f32.mrb[29].mxu1  ;;  %v8967_v37 = vld [vmem:[#allocation4 + $0x2a0] ss:$8 sps:$4 sm:$0xff]  }
 0x165   :  { %v10080_v44 = vpop.f32.mrb[30].mxu1 }
 0x166   :  { %v976_v45 = vpack.c.bf16 %v10080_v44, %v10076_v40  ;;  %v10084_v59 = vpop.f32.mrb[31].mxu1  ;;  %v9008_v40 = vld [vmem:[#allocation4 + $0x3b4] ss:$8 sps:$4 sm:$0xff]  }
 0x167   :  { %1113 = vmatpush1.bf16.msra.mxu0 %v8940_v38  ;;  %v977_v3 = vpack.c.bf16 %v10084_v59, %v10078_v42  ;;  %v9006_v42 = vld [vmem:[#allocation4 + $0x3b0] ss:$8 sps:$4 sm:$0xff]  }
 0x168   :  { %1114 = vmatprep.subr.bf16.mxu0 %v8945_v41  ;;  %v8972_v41 = vld [vmem:[#allocation4 + $0x2b4] ss:$8 sps:$4 sm:$0xff]  }
 0x16a   :  { %811 = vmatmul.mubr.bf16.gmra.mrb[20].mxu0 %v287_v19 }
 0x16b   :  { %1115 = vmatpush1.bf16.msra.mxu0 %v8943_v63  ;;  %7533 = vmatprep.mubr.msk.bf16.mxu0 %vm550_vm0, %v290_v39  ;;  %v10095_v23 = vpop.f32.mrb[32].mxu1  ;;  %v8970_v63 = vld [vmem:[#allocation4 + $0x2b0] ss:$8 sps:$4 sm:$0xff]  }
 0x16c   :  { %1116 = vmatprep.subr.bf16.mxu0 %v8948_v14  ;;  %v10097_v49 = vpop.f32.mrb[33].mxu1  ;;  %v8975_v14 = vld [vmem:[#allocation4 + $0x304] ss:$8 sps:$4 sm:$0xff]  }
 0x16d   :  { %v10099_v50 = vpop.f32.mrb[34].mxu1 }
 0x16e   :  { %v1328_v53 = vpack.c.bf16 %v10099_v50, %v10095_v23  ;;  %v10103_v11 = vpop.f32.mrb[35].mxu1 }
 0x16f   :  { %1117 = vmatpush1.bf16.msra.mxu0 %v8946_v20  ;;  %v1329_v19 = vpack.c.bf16 %v10103_v11, %v10097_v49  ;;  %v8973_v20 = vld [vmem:[#allocation4 + $0x300] ss:$8 sps:$4 sm:$0xff]  }
 0x170   :  { %1118 = vmatprep.subr.bf16.mxu0 %v8951_v47  ;;  %v8978_v47 = vld [vmem:[#allocation4 + $0x314] ss:$8 sps:$4 sm:$0xff]  }
 0x172   :  { %821 = vmatmul.mubr.bf16.gmra.mrb[24].mxu0 %v289_v35 }
 0x173   :  { %1119 = vmatpush1.bf16.msra.mxu0 %v8949_v16  ;;  %7534 = vmatprep.mubr.msk.bf16.mxu0 %vm550_vm0, %v292_v55  ;;  %v10114_v39 = vpop.f32.mrb[36].mxu1  ;;  %v8976_v16 = vld [vmem:[#allocation4 + $0x310] ss:$8 sps:$4 sm:$0xff]  }
 0x174   :  { %1120 = vmatprep.subr.bf16.mxu0 %v8954_v30  ;;  %v10116_v56 = vpop.f32.mrb[37].mxu1  ;;  %v8981_v30 = vld [vmem:[#allocation4 + $0x324] ss:$8 sps:$4 sm:$0xff]  }
 0x175   :  { %v10118_v57 = vpop.f32.mrb[38].mxu1 }
 0x176   :  { %v1330_v60 = vpack.c.bf16 %v10118_v57, %v10114_v39  ;;  %v10122_v27 = vpop.f32.mrb[39].mxu1 }
 0x177   :  { %1121 = vmatpush1.bf16.msra.mxu0 %v8952_v36  ;;  %v1331_v35 = vpack.c.bf16 %v10122_v27, %v10116_v56  ;;  %v8979_v36 = vld [vmem:[#allocation4 + $0x320] ss:$8 sps:$4 sm:$0xff]  }
 0x178   :  { %1122 = vmatprep.subr.bf16.mxu0 %v8957_v54  ;;  %v8984_v54 = vld [vmem:[#allocation4 + $0x334] ss:$8 sps:$4 sm:$0xff]  }
 0x17a   :  { %831 = vmatmul.mubr.bf16.gmra.mrb[28].mxu0 %v291_v51 }
 0x17b   :  { %1123 = vmatpush1.bf16.msra.mxu0 %v8955_v32  ;;  %7563 = vmatprep.mubr.msk.bf16.mxu0 %vm550_vm0, %v971_v61  ;;  %v10133_v55 = vpop.f32.mrb[40].mxu1 }
 0x17c   :  { %1124 = vmatprep.subr.bf16.mxu0 %v8960_v46  ;;  %v10135_v4 = vpop.f32.mrb[41].mxu1 }
 0x17d   :  { %v10137_v7 = vpop.f32.mrb[42].mxu1 }
 0x17e   :  { %v1332_v9 = vpack.c.bf16 %v10137_v7, %v10133_v55  ;;  %v10141_v43 = vpop.f32.mrb[43].mxu1 }
 0x17f   :  { %1125 = vmatpush1.bf16.msra.mxu0 %v8958_v52  ;;  %v1333_v51 = vpack.c.bf16 %v10141_v43, %v10135_v4 }
 0x180   :  { %1126 = vmatprep.subr.bf16.mxu0 %v8963_v6 }
 0x183   :  { %1127 = vmatpush1.bf16.msra.mxu0 %v8961_v48  ;;  %v10145_v61 = vpop.f32.mrb[44].mxu1 }
 0x184   :  { %1128 = vmatprep.subr.bf16.mxu0 %v8966_v62  ;;  %v10147_v21 = vpop.f32.mrb[45].mxu1 }
 0x185   :  { %v10149_v22 = vpop.f32.mrb[46].mxu1 }
 0x186   :  { %v1334_v25 = vpack.c.bf16 %v10149_v22, %v10145_v61  ;;  %v10153_v33 = vpop.f32.mrb[47].mxu1 }
 0x187   :  { %1129 = vmatpush1.bf16.msra.mxu0 %v8964_v5  ;;  %v1335_v38 = vpack.c.bf16 %v10153_v33, %v10147_v21 }
 0x188   :  { %1130 = vmatprep.subr.bf16.mxu0 %v8969_v17 }
 0x18b   :  { %1131 = vmatpush1.bf16.msra.mxu0 %v8967_v37 }
 0x18c   :  { %1132 = vmatprep.subr.bf16.mxu0 %v8972_v41 }
 0x18f   :  { %1133 = vmatpush1.bf16.msra.mxu0 %v8970_v63 }
 0x190   :  { %1468 = vmatprep.subr.bf16.mxu0 %v8975_v14 }
 0x192   :  { %1143 = vmatmul.mubr.bf16.vlgmr.msra.gmra.mrb[16].mxu0 %v970_v2  ;;  %v8985_v2 = vld [vmem:[#allocation4 + $0x340] ss:$8 sps:$4 sm:$0xff]  }
 0x193   :  { %1469 = vmatpush1.bf16.msra.mxu0 %v8973_v20  ;;  %7564 = vmatprep.mubr.msk.bf16.mxu0 %vm550_vm0, %v973_v18  ;;  %v8994_v18 = vld [vmem:[#allocation4 + $0x370] ss:$8 sps:$4 sm:$0xff]  }
 0x194   :  { %1470 = vmatprep.subr.bf16.mxu0 %v8978_v47 }
 0x197   :  { %1471 = vmatpush1.bf16.msra.mxu0 %v8976_v16 }
 0x198   :  { %1472 = vmatprep.subr.bf16.mxu0 %v8981_v30 }
 0x19a   :  { %1153 = vmatmul.mubr.bf16.gmra.mrb[20].mxu0 %v972_v13  ;;  %v8991_v13 = vld [vmem:[#allocation4 + $0x360] ss:$8 sps:$4 sm:$0xff]  }
 0x19b   :  { %1473 = vmatpush1.bf16.msra.mxu0 %v8979_v36  ;;  %7565 = vmatprep.mubr.msk.bf16.mxu0 %vm550_vm0, %v975_v34  ;;  %v9003_v34 = vld [vmem:[#allocation4 + $0x3a0] ss:$8 sps:$4 sm:$0xff]  }
 0x19c   :  { %1474 = vmatprep.subr.bf16.mxu0 %v8984_v54 }
 0x19f   :  { %1475 = vmatpush1.bf16.msra.mxu0 %v8982_v58 }
 0x1a0   :  { %1476 = vmatprep.subr.bf16.mxu0 %v8987_v1 }
 0x1a2   :  { %1163 = vmatmul.mubr.bf16.gmra.mrb[24].mxu0 %v974_v29  ;;  %v9000_v29 = vld [vmem:[#allocation4 + $0x390] ss:$8 sps:$4 sm:$0xff]  }
 0x1a3   :  { %1477 = vmatpush1.bf16.msra.mxu0 %v8985_v2  ;;  %7566 = vmatprep.mubr.msk.bf16.mxu0 %vm550_vm0, %v977_v3 }
 0x1a4   :  { %1478 = vmatprep.subr.bf16.mxu0 %v8990_v10 }
 0x1a7   :  { %1479 = vmatpush1.bf16.msra.mxu0 %v8988_v8 }
 0x1a8   :  { %1480 = vmatprep.subr.bf16.mxu0 %v8993_v12 }
 0x1aa   :  { %1173 = vmatmul.mubr.bf16.gmra.mrb[28].mxu0 %v976_v45 }
 0x1ab   :  { %1481 = vmatpush1.bf16.msra.mxu0 %v8991_v13  ;;  %7595 = vmatprep.mubr.msk.bf16.mxu0 %vm550_vm0, %v1329_v19 }
 0x1ac   :  { %1482 = vmatprep.subr.bf16.mxu0 %v8996_v15 }
 0x1af   :  { %1483 = vmatpush1.bf16.msra.mxu0 %v8994_v18 }
 0x1b0   :  { %1484 = vmatprep.subr.bf16.mxu0 %v8999_v24 }
 0x1b3   :  { %1485 = vmatpush1.bf16.msra.mxu0 %v8997_v26  ;;  %v9009_v26 = vld [vmem:[#allocation4 + $0x500] ss:$8 sps:$4 sm:$0xff]  }
 0x1b4   :  { %1486 = vmatprep.subr.bf16.mxu0 %v9002_v28  ;;  %v9010_v28 = vld [vmem:[#allocation4 + $0x740] ss:$8 sps:$4 sm:$0xff]  }
 0x1b7   :  { %1487 = vmatpush1.bf16.msra.mxu0 %v9000_v29  ;;  %v9011_v29 = vld [vmem:[#allocation4 + $0x510] ss:$8 sps:$4 sm:$0xff]  }
 0x1b8   :  { %1488 = vmatprep.subr.bf16.mxu0 %v9005_v31  ;;  %v9035_v31 = vld [vmem:[#allocation4 + $0x750] ss:$8 sps:$4 sm:$0xff]  }
 0x1bb   :  { %1489 = vmatpush1.bf16.msra.mxu0 %v9003_v34  ;;  %v9016_v34 = vld [vmem:[#allocation4 + $0x524] ss:$8 sps:$4 sm:$0xff]  }
 0x1bc   :  { %1490 = vmatprep.subr.bf16.mxu0 %v9008_v40  ;;  %v9012_v40 = vld [vmem:[#allocation4 + $0x620] ss:$8 sps:$4 sm:$0xff]  }
 0x1bf   :  { %1491 = vmatpush1.bf16.msra.mxu0 %v9006_v42  ;;  %v9042_v42 = vld [vmem:[#allocation4 + $0x860] ss:$8 sps:$4 sm:$0xff]  }
 0x1c2   :  { %1501 = vmatmul.mubr.bf16.vlgmr.msra.gmra.mrb[16].mxu0 %v1328_v53 }
 0x1c3   :  { %7596 = vmatprep.mubr.msk.bf16.mxu0 %vm550_vm0, %v1331_v35 }
 0x1ca   :  { %1511 = vmatmul.mubr.bf16.gmra.mrb[20].mxu0 %v1330_v60 }
 0x1cb   :  { %7597 = vmatprep.mubr.msk.bf16.mxu0 %vm550_vm0, %v1333_v51 }
 0x1d2   :  { %1521 = vmatmul.mubr.bf16.gmra.mrb[24].mxu0 %v1332_v9 }
 0x1d3   :  { %7598 = vmatprep.mubr.msk.bf16.mxu0 %vm550_vm0, %v1335_v38 }
 0x1da   :  { %1531 = vmatmul.mubr.bf16.gmra.mrb[28].mxu0 %v1334_v25 }
 0x1db   :  { %2325 = vmatprep.mubr.bf16.mxu0 %v9746_v0 }
 0x295   :  { %v1502_v44 = vpop.f32.mrb[16].mxu0 }
 0x296   :  { %v1557_v45 = vmul.f32 0.2, %v1502_v44  ;;  %v1504_v59 = vpop.f32.mrb[17].mxu0 }
 0x297   :  { %v1558_v3 = vmul.f32 0.2, %v1504_v59  ;;  %v1506_v23 = vpop.f32.mrb[18].mxu0 }
 0x298   :  { %v1559_v49 = vmul.f32 0.2, %v1506_v23  ;;  %v1508_v50 = vpop.f32.mrb[19].mxu0  ;;  %v1573_v11 = vmax.f32 %v1502_v44, %v1557_v45  ;;  %v9014_v44 = vld [vmem:[#allocation4 + $0x520] ss:$8 sps:$4 sm:$0xff]  }
 0x299   :  { %v1560_v53 = vmul.f32 0.2, %v1508_v50  ;;  %v1574_v39 = vmax.f32 %v1504_v59, %v1558_v3  ;;  %v9019_v45 = vld [vmem:[#allocation4 + $0x534] ss:$8 sps:$4 sm:$0xff]   ;;  %v9017_v59 = vld [vmem:[#allocation4 + $0x530] ss:$8 sps:$4 sm:$0xff]  }
 0x29a   :  { %v1575_v19 = vmax.f32 %v1506_v23, %v1559_v49  ;;  %v9022_v3 = vld [vmem:[#allocation4 + $0x544] ss:$8 sps:$4 sm:$0xff]   ;;  %v9013_v23 = vld [vmem:[#allocation4 + $0x630] ss:$8 sps:$4 sm:$0xff]   ;;  %v9020_v49 = vld [vmem:[#allocation4 + $0x540] ss:$8 sps:$4 sm:$0xff]  }
 0x29b   :  { %v1576_v56 = vmax.f32 %v1508_v50, %v1560_v53  ;;  %v9025_v50 = vld [vmem:[#allocation4 + $0x554] ss:$8 sps:$4 sm:$0xff]   ;;  %v9023_v53 = vld [vmem:[#allocation4 + $0x550] ss:$8 sps:$4 sm:$0xff]  }
 0x29c   :  { %v10210_v57 = vpack.c.bf16 %v1575_v19, %v1573_v11  ;;  %v9028_v11 = vld [vmem:[#allocation4 + $0x564] ss:$8 sps:$4 sm:$0xff]   ;;  %v9026_v19 = vld [vmem:[#allocation4 + $0x560] ss:$8 sps:$4 sm:$0xff]  }
 0x29d   :  { %v1590_v60 = vpack.c.bf16 %v1576_v56, %v1574_v39  ;;  %v1512_v27 = vpop.f32.mrb[20].mxu0  ;;  %v9031_v39 = vld [vmem:[#allocation4 + $0x574] ss:$8 sps:$4 sm:$0xff]   ;;  %v9029_v56 = vld [vmem:[#allocation4 + $0x570] ss:$8 sps:$4 sm:$0xff]  }
 0x29e   :  { %v1561_v32 = vmul.f32 0.2, %v1512_v27  ;;  %v1514_v35 = vpop.f32.mrb[21].mxu0 }
 0x29f   :  { %v1562_v46 = vmul.f32 0.2, %v1514_v35  ;;  %v1516_v52 = vpop.f32.mrb[22].mxu0  ;;  %1649 = vmatprep.subr.bf16.mxu1 %v1590_v60  ;;  %2293 = vmatprep.subr.bf16.mxu0 %v1590_v60 }
 0x2a0   :  { %v1563_v55 = vmul.f32 0.2, %v1516_v52  ;;  %v1518_v6 = vpop.f32.mrb[23].mxu0  ;;  %1650 = vmatpush1.bf16.msra.mxu1 %v10210_v57  ;;  %2294 = vmatpush1.bf16.msra.mxu0 %v10210_v57  ;;  %v1577_v7 = vmax.f32 %v1512_v27, %v1561_v32  ;;  %v9038_v27 = vld [vmem:[#allocation4 + $0x594] ss:$8 sps:$4 sm:$0xff]  }
 0x2a1   :  { %v1564_v4 = vmul.f32 0.2, %v1518_v6  ;;  %v1578_v43 = vmax.f32 %v1514_v35, %v1562_v46  ;;  %v9036_v32 = vld [vmem:[#allocation4 + $0x590] ss:$8 sps:$4 sm:$0xff]   ;;  %v9041_v35 = vld [vmem:[#allocation4 + $0x5a4] ss:$8 sps:$4 sm:$0xff]  }
 0x2a2   :  { %v1579_v9 = vmax.f32 %v1516_v52, %v1563_v55  ;;  %v9039_v46 = vld [vmem:[#allocation4 + $0x5a0] ss:$8 sps:$4 sm:$0xff]   ;;  %v9045_v52 = vld [vmem:[#allocation4 + $0x5b4] ss:$8 sps:$4 sm:$0xff]   ;;  %v9043_v55 = vld [vmem:[#allocation4 + $0x5b0] ss:$8 sps:$4 sm:$0xff]  }
 0x2a3   :  { %v1580_v48 = vmax.f32 %v1518_v6, %v1564_v4  ;;  %v9048_v6 = vld [vmem:[#allocation4 + $0x5c4] ss:$8 sps:$4 sm:$0xff]   ;;  %v9046_v4 = vld [vmem:[#allocation4 + $0x5c0] ss:$8 sps:$4 sm:$0xff]  }
 0x2a4   :  { %v1591_v51 = vpack.c.bf16 %v1579_v9, %v1577_v7  ;;  %v9049_v7 = vld [vmem:[#allocation4 + $0x870] ss:$8 sps:$4 sm:$0xff]   ;;  %v9052_v9 = vld [vmem:[#allocation4 + $0x5d4] ss:$8 sps:$4 sm:$0xff]  }
 0x2a5   :  { %v1592_v62 = vpack.c.bf16 %v1580_v48, %v1578_v43  ;;  %v1522_v5 = vpop.f32.mrb[24].mxu0  ;;  %v9050_v43 = vld [vmem:[#allocation4 + $0x5d0] ss:$8 sps:$4 sm:$0xff]   ;;  %v9053_v48 = vld [vmem:[#allocation4 + $0x5e0] ss:$8 sps:$4 sm:$0xff]  }
 0x2a6   :  { %v1565_v61 = vmul.f32 0.2, %v1522_v5  ;;  %v1524_v17 = vpop.f32.mrb[25].mxu0 }
 0x2a7   :  { %v1566_v21 = vmul.f32 0.2, %v1524_v17  ;;  %v1526_v22 = vpop.f32.mrb[26].mxu0  ;;  %1651 = vmatprep.subr.bf16.mxu1 %v1592_v62  ;;  %2295 = vmatprep.subr.bf16.mxu0 %v1592_v62 }
 0x2a8   :  { %v1567_v25 = vmul.f32 0.2, %v1526_v22  ;;  %v1528_v33 = vpop.f32.mrb[27].mxu0  ;;  %1652 = vmatpush1.bf16.msra.mxu1 %v1591_v51  ;;  %2296 = vmatpush1.bf16.msra.mxu0 %v1591_v51  ;;  %v1581_v38 = vmax.f32 %v1522_v5, %v1565_v61  ;;  %v9056_v5 = vld [vmem:[#allocation4 + $0x5f0] ss:$8 sps:$4 sm:$0xff]  }
 0x2a9   :  { %v1568_v37 = vmul.f32 0.2, %v1528_v33  ;;  %v1582_v63 = vmax.f32 %v1524_v17, %v1566_v21  ;;  %v9059_v61 = vld [vmem:[#allocation4 + $0x600] ss:$8 sps:$4 sm:$0xff]   ;;  %v9061_v17 = vld [vmem:[#allocation4 + $0x604] ss:$8 sps:$4 sm:$0xff]  }
 0x2aa   :  { %v1583_v41 = vmax.f32 %v1526_v22, %v1567_v25  ;;  %v9064_v21 = vld [vmem:[#allocation4 + $0x614] ss:$8 sps:$4 sm:$0xff]   ;;  %v9062_v22 = vld [vmem:[#allocation4 + $0x610] ss:$8 sps:$4 sm:$0xff]   ;;  %v9067_v25 = vld [vmem:[#allocation4 + $0x404] ss:$8 sps:$4 sm:$0xff]  }
 0x2ab   :  { %v1584_v14 = vmax.f32 %v1528_v33, %v1568_v37 }
 0x2ac   :  { %v1593_v20 = vpack.c.bf16 %v1583_v41, %v1581_v38 }
 0x2ad   :  { %v1594_v47 = vpack.c.bf16 %v1584_v14, %v1582_v63  ;;  %v1532_v16 = vpop.f32.mrb[28].mxu0 }
 0x2ae   :  { %v1569_v30 = vmul.f32 0.2, %v1532_v16  ;;  %v1534_v36 = vpop.f32.mrb[29].mxu0 }
 0x2af   :  { %v1570_v54 = vmul.f32 0.2, %v1534_v36  ;;  %v1536_v58 = vpop.f32.mrb[30].mxu0  ;;  %1653 = vmatprep.subr.bf16.mxu1 %v1594_v47  ;;  %2297 = vmatprep.subr.bf16.mxu0 %v1594_v47 }
 0x2b0   :  { %v1571_v1 = vmul.f32 0.2, %v1536_v58  ;;  %v1538_v2 = vpop.f32.mrb[31].mxu0  ;;  %1654 = vmatpush1.bf16.msra.mxu1 %v1593_v20  ;;  %2298 = vmatpush1.bf16.msra.mxu0 %v1593_v20  ;;  %v1585_v8 = vmax.f32 %v1532_v16, %v1569_v30 }
 0x2b1   :  { %v1572_v10 = vmul.f32 0.2, %v1538_v2  ;;  %v1586_v13 = vmax.f32 %v1534_v36, %v1570_v54 }
 0x2b2   :  { %v1587_v12 = vmax.f32 %v1536_v58, %v1571_v1 }
 0x2b3   :  { %v1588_v15 = vmax.f32 %v1538_v2, %v1572_v10 }
 0x2b4   :  { %v1595_v18 = vpack.c.bf16 %v1587_v12, %v1585_v8 }
 0x2b5   :  { %v1596_v24 = vpack.c.bf16 %v1588_v15, %v1586_v13 }
 0x2b7   :  { %1655 = vmatprep.subr.bf16.mxu1 %v1596_v24  ;;  %2299 = vmatprep.subr.bf16.mxu0 %v1596_v24 }
 0x2b8   :  { %1656 = vmatpush1.bf16.msra.mxu1 %v1595_v18  ;;  %2300 = vmatpush1.bf16.msra.mxu0 %v1595_v18 }
 0x2b9   :  { %1758 = vmatprep.subr.bf16.mxu1 %v1590_v60  ;;  %2623 = vmatprep.subr.bf16.mxu0 %v1590_v60  ;;  %v9032_v60 = vld [vmem:[#allocation4 + $0x580] ss:$8 sps:$4 sm:$0xff]  }
 0x2bb   :  { %7601 = vmatmul.mubr.msk.bf16.vlgmr.msra.gmra.mrb[48].mxu1 %vm550_vm0, %v9009_v26  ;;  %7673 = vmatmul.mubr.msk.bf16.vlgmr.msra.gmra.mrb[32].mxu0 %vm550_vm0, %v9010_v28 }
 0x2bc   :  { %1759 = vmatpush1.bf16.msra.mxu1 %v10210_v57  ;;  %2624 = vmatpush1.bf16.msra.mxu0 %v10210_v57  ;;  %v9034_v57 = vld [vmem:[#allocation4 + $0x584] ss:$8 sps:$4 sm:$0xff]  }
 0x2bd   :  { %1760 = vmatprep.subr.bf16.mxu1 %v1592_v62  ;;  %2625 = vmatprep.subr.bf16.mxu0 %v1592_v62  ;;  %v9058_v62 = vld [vmem:[#allocation4 + $0x5f4] ss:$8 sps:$4 sm:$0xff]  }
 0x2be   :  { %1691 = vmatprep.mubr.bf16.mxu1 %v9746_v0  ;;  %2335 = vmatprep.mubr.bf16.mxu0 %v9746_v0 }
 0x2c0   :  { %1761 = vmatpush1.bf16.msra.mxu1 %v1591_v51  ;;  %2626 = vmatpush1.bf16.msra.mxu0 %v1591_v51  ;;  %v9055_v51 = vld [vmem:[#allocation4 + $0x5e4] ss:$8 sps:$4 sm:$0xff]  }
 0x2c1   :  { %1762 = vmatprep.subr.bf16.mxu1 %v1594_v47  ;;  %2627 = vmatprep.subr.bf16.mxu0 %v1594_v47 }
 0x2c3   :  { %7602 = vmatmul.mubr.msk.bf16.gmra.mrb[52].mxu1 %vm550_vm0, %v9011_v29  ;;  %7674 = vmatmul.mubr.msk.bf16.gmra.mrb[36].mxu0 %vm550_vm0, %v9035_v31  ;;  %v9065_v29 = vld [vmem:[#allocation4 + $0x400] ss:$8 sps:$4 sm:$0xff]   ;;  %v9070_v31 = vld [vmem:[#allocation4 + $0x414] ss:$8 sps:$4 sm:$0xff]  }
 0x2c4   :  { %1763 = vmatpush1.bf16.msra.mxu1 %v1593_v20  ;;  %2628 = vmatpush1.bf16.msra.mxu0 %v1593_v20 }
 0x2c5   :  { %1764 = vmatprep.subr.bf16.mxu1 %v1596_v24  ;;  %2629 = vmatprep.subr.bf16.mxu0 %v1596_v24 }
 0x2c6   :  { %1790 = vmatprep.mubr.bf16.mxu1 %v9746_v0  ;;  %2655 = vmatprep.mubr.bf16.mxu0 %v9746_v0 }
 0x2c8   :  { %1765 = vmatpush1.bf16.msra.mxu1 %v1595_v18  ;;  %2630 = vmatpush1.bf16.msra.mxu0 %v1595_v18 }
 0x2c9   :  { %1975 = vmatprep.subr.bf16.mxu1 %v9016_v34 }
 0x2cb   :  { %7605 = vmatmul.mubr.msk.bf16.vlgmr.msra.gmra.mrb[56].mxu1 %vm550_vm0, %v9012_v40  ;;  %7709 = vmatmul.mubr.msk.bf16.vlgmr.msra.gmra.mrb[40].mxu0 %vm550_vm0, %v9042_v42  ;;  %v9068_v40 = vld [vmem:[#allocation4 + $0x410] ss:$8 sps:$4 sm:$0xff]  }
 0x2cc   :  { %1800 = vmatprep.mubr.bf16.mxu1 %v9746_v0  ;;  %1976 = vmatpush1.bf16.msra.mxu1 %v9014_v44  ;;  %v9073_v44 = vld [vmem:[#allocation4 + $0x424] ss:$8 sps:$4 sm:$0xff]  }
 0x2cd   :  { %1977 = vmatprep.subr.bf16.mxu1 %v9019_v45  ;;  %2665 = vmatprep.mubr.bf16.mxu0 %v9746_v0 }
 0x2d0   :  { %1978 = vmatpush1.bf16.msra.mxu1 %v9017_v59 }
 0x2d1   :  { %1979 = vmatprep.subr.bf16.mxu1 %v9022_v3 }
 0x2d3   :  { %7606 = vmatmul.mubr.msk.bf16.gmra.mrb[60].mxu1 %vm550_vm0, %v9013_v23  ;;  %7710 = vmatmul.mubr.msk.bf16.gmra.mrb[44].mxu0 %vm550_vm0, %v9049_v7  ;;  %v9100_v7 = vld [vmem:[#allocation4 + $0x4b4] ss:$8 sps:$4 sm:$0xff]  }
 0x2d4   :  { %1980 = vmatpush1.bf16.msra.mxu1 %v9020_v49  ;;  %v9071_v49 = vld [vmem:[#allocation4 + $0x420] ss:$8 sps:$4 sm:$0xff]  }
 0x2d5   :  { %1981 = vmatprep.subr.bf16.mxu1 %v9025_v50  ;;  %v9076_v50 = vld [vmem:[#allocation4 + $0x434] ss:$8 sps:$4 sm:$0xff]  }
 0x2d8   :  { %1982 = vmatpush1.bf16.msra.mxu1 %v9023_v53  ;;  %v9074_v53 = vld [vmem:[#allocation4 + $0x430] ss:$8 sps:$4 sm:$0xff]  }
 0x2d9   :  { %1983 = vmatprep.subr.bf16.mxu1 %v9028_v11  ;;  %v9079_v11 = vld [vmem:[#allocation4 + $0x444] ss:$8 sps:$4 sm:$0xff]  }
 0x2dc   :  { %1984 = vmatpush1.bf16.msra.mxu1 %v9026_v19  ;;  %v9077_v19 = vld [vmem:[#allocation4 + $0x440] ss:$8 sps:$4 sm:$0xff]  }
 0x2dd   :  { %1985 = vmatprep.subr.bf16.mxu1 %v9031_v39  ;;  %v9082_v39 = vld [vmem:[#allocation4 + $0x454] ss:$8 sps:$4 sm:$0xff]  }
 0x2e0   :  { %1986 = vmatpush1.bf16.msra.mxu1 %v9029_v56  ;;  %v9080_v56 = vld [vmem:[#allocation4 + $0x450] ss:$8 sps:$4 sm:$0xff]  }
 0x2e1   :  { %1987 = vmatprep.subr.bf16.mxu1 %v9034_v57  ;;  %v9085_v57 = vld [vmem:[#allocation4 + $0x464] ss:$8 sps:$4 sm:$0xff]  }
 0x2e4   :  { %1988 = vmatpush1.bf16.msra.mxu1 %v9032_v60  ;;  %v9083_v60 = vld [vmem:[#allocation4 + $0x460] ss:$8 sps:$4 sm:$0xff]  }
 0x2e5   :  { %1989 = vmatprep.subr.bf16.mxu1 %v9038_v27  ;;  %v9088_v27 = vld [vmem:[#allocation4 + $0x474] ss:$8 sps:$4 sm:$0xff]  }
 0x2e8   :  { %1990 = vmatpush1.bf16.msra.mxu1 %v9036_v32  ;;  %v9086_v32 = vld [vmem:[#allocation4 + $0x470] ss:$8 sps:$4 sm:$0xff]  }
 0x2e9   :  { %1991 = vmatprep.subr.bf16.mxu1 %v9041_v35  ;;  %v9091_v35 = vld [vmem:[#allocation4 + $0x484] ss:$8 sps:$4 sm:$0xff]  }
 0x2ec   :  { %1992 = vmatpush1.bf16.msra.mxu1 %v9039_v46  ;;  %v9089_v46 = vld [vmem:[#allocation4 + $0x480] ss:$8 sps:$4 sm:$0xff]  }
 0x2ed   :  { %1993 = vmatprep.subr.bf16.mxu1 %v9045_v52  ;;  %v9094_v52 = vld [vmem:[#allocation4 + $0x494] ss:$8 sps:$4 sm:$0xff]  }
 0x2f0   :  { %1994 = vmatpush1.bf16.msra.mxu1 %v9043_v55  ;;  %v9092_v55 = vld [vmem:[#allocation4 + $0x490] ss:$8 sps:$4 sm:$0xff]  }
 0x2f1   :  { %1995 = vmatprep.subr.bf16.mxu1 %v9048_v6  ;;  %v9097_v6 = vld [vmem:[#allocation4 + $0x4a4] ss:$8 sps:$4 sm:$0xff]  }
 0x2f4   :  { %1996 = vmatpush1.bf16.msra.mxu1 %v9046_v4  ;;  %v9095_v4 = vld [vmem:[#allocation4 + $0x4a0] ss:$8 sps:$4 sm:$0xff]  }
 0x2f5   :  { %1997 = vmatprep.subr.bf16.mxu1 %v9052_v9  ;;  %v9098_v9 = vld [vmem:[#allocation4 + $0x4b0] ss:$8 sps:$4 sm:$0xff]  }
 0x2f8   :  { %1998 = vmatpush1.bf16.msra.mxu1 %v9050_v43  ;;  %v9103_v43 = vld [vmem:[#allocation4 + $0x4c4] ss:$8 sps:$4 sm:$0xff]  }
 0x2f9   :  { %1999 = vmatprep.subr.bf16.mxu1 %v9055_v51  ;;  %v9101_v51 = vld [vmem:[#allocation4 + $0x4c0] ss:$8 sps:$4 sm:$0xff]  }
 0x2fc   :  { %2000 = vmatpush1.bf16.msra.mxu1 %v9053_v48 }
 0x2fd   :  { %2001 = vmatprep.subr.bf16.mxu1 %v9058_v62 }
 0x300   :  { %2002 = vmatpush1.bf16.msra.mxu1 %v9056_v5  ;;  %v9106_v5 = vld [vmem:[#allocation4 + $0x4d4] ss:$8 sps:$4 sm:$0xff]  }
 0x301   :  { %2003 = vmatprep.subr.bf16.mxu1 %v9061_v17 }
 0x304   :  { %2004 = vmatpush1.bf16.msra.mxu1 %v9059_v61 }
 0x305   :  { %2005 = vmatprep.subr.bf16.mxu1 %v9064_v21 }
 0x308   :  { %2006 = vmatpush1.bf16.msra.mxu1 %v9062_v22 }
 0x309   :  { %2188 = vmatprep.subr.bf16.mxu1 %v9067_v25  ;;  %v9104_v25 = vld [vmem:[#allocation4 + $0x4d0] ss:$8 sps:$4 sm:$0xff]  }
 0x38e   :  { %v10230_v33 = vpop.f32.mrb[48].mxu1  ;;  %v10248_v58 = vpop.f32.mrb[32].mxu0 }
 0x38f   :  { %v1685_v37 = vpop.f32.mrb[49].mxu1  ;;  %v10250_v1 = vpop.f32.mrb[33].mxu0 }
 0x390   :  { %v10232_v38 = vpop.f32.mrb[50].mxu1  ;;  %v10252_v2 = vpop.f32.mrb[34].mxu0 }
 0x391   :  { %v1702_v41 = vpack.c.bf16 %v10232_v38, %v10230_v33  ;;  %v1689_v63 = vpop.f32.mrb[51].mxu1  ;;  %v2346_v10 = vpack.c.bf16 %v10252_v2, %v10248_v58  ;;  %v10256_v12 = vpop.f32.mrb[35].mxu0  ;;  %v9124_v33 = vld [vmem:[#allocation4 + $0x674] ss:$8 sps:$4 sm:$0xff]   ;;  %v9122_v38 = vld [vmem:[#allocation4 + $0x670] ss:$8 sps:$4 sm:$0xff]  }
 0x392   :  { %v1703_v14 = vpack.c.bf16 %v1689_v63, %v1685_v37  ;;  %v2347_v15 = vpack.c.bf16 %v10256_v12, %v10250_v1  ;;  %v9109_v37 = vld [vmem:[#allocation4 + $0x4e4] ss:$8 sps:$4 sm:$0xff]   ;;  %v9107_v63 = vld [vmem:[#allocation4 + $0x4e0] ss:$8 sps:$4 sm:$0xff]  }
 0x393   :  { %v2903_v12 = vld [vmem:[%s11182_s4 + $0x10] sm:$0xff]  ;;  %v9173_v2 = vld [vmem:[#allocation4 + $0x7a0] ss:$8 sps:$4 sm:$0xff]  }
 0x394   :  { %v9175_v58 = vld [vmem:[#allocation4 + $0x7a4] ss:$8 sps:$4 sm:$0xff]  }
 0x396   :  { %v10236_v20 = vpop.f32.mrb[52].mxu1  ;;  %v10260_v48 = vpop.f32.mrb[36].mxu0 }
 0x397   :  { %v10238_v47 = vpop.f32.mrb[53].mxu1  ;;  %v10262_v62 = vpop.f32.mrb[37].mxu0 }
 0x398   :  { %v10240_v16 = vpop.f32.mrb[54].mxu1  ;;  %v10264_v61 = vpop.f32.mrb[38].mxu0 }
 0x399   :  { %v1704_v30 = vpack.c.bf16 %v10240_v16, %v10236_v20  ;;  %v10244_v36 = vpop.f32.mrb[55].mxu1  ;;  %v2348_v17 = vpack.c.bf16 %v10264_v61, %v10260_v48  ;;  %v10268_v21 = vpop.f32.mrb[39].mxu0  ;;  %v2902_v20 = vld [vmem:[%s11182_s4 + $0x8] sm:$0xff]  ;;  %v2919_v16 = vld [vmem:[%s11182_s4 + $0x90] sm:$0xff] }
 0x39a   :  { %v1705_v54 = vpack.c.bf16 %v10244_v36, %v10238_v47  ;;  %v2349_v22 = vpack.c.bf16 %v10268_v21, %v10262_v62  ;;  %v2918_v47 = vld [vmem:[%s11182_s4 + $0x88] sm:$0xff]  ;;  %v2901_v36 = vld [vmem:[%s11182_s4] sm:$0xff]  ;;  %v9176_v62 = vld [vmem:[#allocation4 + $0x7b0] ss:$8 sps:$4 sm:$0xff]  }
 0x39b   :  { %v9181_v21 = vld [vmem:[#allocation4 + $0x7c4] ss:$8 sps:$4 sm:$0xff]   ;;  %v9184_v48 = vld [vmem:[#allocation4 + $0x7d4] ss:$8 sps:$4 sm:$0xff]   ;;  %v9182_v61 = vld [vmem:[#allocation4 + $0x7d0] ss:$8 sps:$4 sm:$0xff]  }
 0x39e   :  { %v1792_v8 = vpop.f32.mrb[56].mxu1 }
 0x39f   :  { %v1794_v13 = vpop.f32.mrb[57].mxu1 }
 0x3a0   :  { %v1796_v18 = vpop.f32.mrb[58].mxu1 }
 0x3a1   :  { %v1811_v24 = vpack.c.bf16 %v1796_v18, %v1792_v8  ;;  %v1798_v26 = vpop.f32.mrb[59].mxu1  ;;  %v9112_v8 = vld [vmem:[#allocation4 + $0x4f4] ss:$8 sps:$4 sm:$0xff]  }
 0x3a2   :  { %v1812_v28 = vpack.c.bf16 %v1798_v26, %v1794_v13 }
 0x3a4   :  { %2007 = vmatprep.mubr.bf16.mxu1 %v1812_v28  ;;  %v9110_v28 = vld [vmem:[#allocation4 + $0x4f0] ss:$8 sps:$4 sm:$0xff]  }
 0x3a5   :  { %2008 = vmatmul.mubr.bf16.vlgmr.msra.gmra.mrb[64].mxu1 %v1811_v24 }
 0x3a6   :  { %2189 = vmatpush1.bf16.msra.mxu1 %v9065_v29  ;;  %v1802_v34 = vpop.f32.mrb[60].mxu1 }
 0x3a7   :  { %v1804_v42 = vpop.f32.mrb[61].mxu1  ;;  %2190 = vmatprep.subr.bf16.mxu1 %v9070_v31  ;;  %v9115_v31 = vld [vmem:[#allocation4 + $0x644] ss:$8 sps:$4 sm:$0xff]  }
 0x3a8   :  { %v1806_v45 = vpop.f32.mrb[62].mxu1 }
 0x3a9   :  { %v1813_v59 = vpack.c.bf16 %v1806_v45, %v1802_v34  ;;  %v1808_v3 = vpop.f32.mrb[63].mxu1  ;;  %v9113_v34 = vld [vmem:[#allocation4 + $0x640] ss:$8 sps:$4 sm:$0xff]  }
 0x3aa   :  { %v1814_v23 = vpack.c.bf16 %v1808_v3, %v1804_v42  ;;  %2191 = vmatpush1.bf16.msra.mxu1 %v9068_v40  ;;  %v9118_v42 = vld [vmem:[#allocation4 + $0x654] ss:$8 sps:$4 sm:$0xff]  }
 0x3ab   :  { %2192 = vmatprep.subr.bf16.mxu1 %v9073_v44 }
 0x3ac   :  { %2017 = vmatprep.mubr.bf16.mxu1 %v1814_v23  ;;  %v9116_v23 = vld [vmem:[#allocation4 + $0x650] ss:$8 sps:$4 sm:$0xff]  }
 0x3ad   :  { %2018 = vmatmul.mubr.bf16.gmra.mrb[68].mxu1 %v1813_v59 }
 0x3ae   :  { %2193 = vmatpush1.bf16.msra.mxu1 %v9071_v49  ;;  %2220 = vmatprep.mubr.bf16.mxu1 %v1703_v14  ;;  %v10272_v14 = vpop.f32.mrb[40].mxu0 }
 0x3af   :  { %2194 = vmatprep.subr.bf16.mxu1 %v9076_v50  ;;  %v10274_v13 = vpop.f32.mrb[41].mxu0  ;;  %v9121_v50 = vld [vmem:[#allocation4 + $0x664] ss:$8 sps:$4 sm:$0xff]  }
 0x3b0   :  { %v10276_v18 = vpop.f32.mrb[42].mxu0 }
 0x3b1   :  { %v2676_v24 = vpack.c.bf16 %v10276_v18, %v10272_v14  ;;  %v10280_v26 = vpop.f32.mrb[43].mxu0  ;;  %v2905_v18 = vld [vmem:[%s11182_s4 + $0x20] sm:$0xff] }
 0x3b2   :  { %2195 = vmatpush1.bf16.msra.mxu1 %v9074_v53  ;;  %v2677_v29 = vpack.c.bf16 %v10280_v26, %v10274_v13  ;;  %v10284_v40 = vpop.f32.mrb[44].mxu0  ;;  %v9119_v53 = vld [vmem:[#allocation4 + $0x660] ss:$8 sps:$4 sm:$0xff]   ;;  %v9190_v26 = vld [vmem:[#allocation4 + $0x7f4] ss:$8 sps:$4 sm:$0xff]  }
 0x3b3   :  { %2196 = vmatprep.subr.bf16.mxu1 %v9079_v11  ;;  %v10286_v44 = vpop.f32.mrb[45].mxu0  ;;  %v9127_v11 = vld [vmem:[#allocation4 + $0x684] ss:$8 sps:$4 sm:$0xff]   ;;  %v9185_v13 = vld [vmem:[#allocation4 + $0x7e0] ss:$8 sps:$4 sm:$0xff]  }
 0x3b4   :  { %v10288_v45 = vpop.f32.mrb[46].mxu0 }
 0x3b5   :  { %v2678_v59 = vpack.c.bf16 %v10288_v45, %v10284_v40  ;;  %v10295_v3 = vpop.f32.mrb[47].mxu0  ;;  %v2924_v45 = vld [vmem:[%s11182_s4 + $0xb8] sm:$0xff] }
 0x3b6   :  { %2197 = vmatpush1.bf16.msra.mxu1 %v9077_v19  ;;  %v2679_v49 = vpack.c.bf16 %v10295_v3, %v10286_v44  ;;  %v10328_v19 = vpack.c.bf16 %v2902_v20, %v2901_v36  ;;  %v9193_v36 = vld [vmem:[#allocation4 + $0x804] ss:$8 sps:$4 sm:$0xff]   ;;  %v9191_v20 = vld [vmem:[#allocation4 + $0x800] ss:$8 sps:$4 sm:$0xff]  }
 0x3b7   :  { %2198 = vmatprep.subr.bf16.mxu1 %v9082_v39  ;;  %v2923_v44 = vld [vmem:[%s11182_s4 + $0xb0] sm:$0xff] }
 0x3b8   :  { %v2907_v3 = vld [vmem:[%s11182_s4 + $0x30] sm:$0xff] }
 0x3ba   :  { %2199 = vmatpush1.bf16.msra.mxu1 %v9080_v56  ;;  %v9125_v56 = vld [vmem:[#allocation4 + $0x680] ss:$8 sps:$4 sm:$0xff]  }
 0x3bb   :  { %2200 = vmatprep.subr.bf16.mxu1 %v9085_v57  ;;  %v9130_v57 = vld [vmem:[#allocation4 + $0x694] ss:$8 sps:$4 sm:$0xff]  }
 0x3be   :  { %2201 = vmatpush1.bf16.msra.mxu1 %v9083_v60  ;;  %v9128_v60 = vld [vmem:[#allocation4 + $0x690] ss:$8 sps:$4 sm:$0xff]  }
 0x3bf   :  { %2202 = vmatprep.subr.bf16.mxu1 %v9088_v27  ;;  %v9133_v27 = vld [vmem:[#allocation4 + $0x6a4] ss:$8 sps:$4 sm:$0xff]  }
 0x3c2   :  { %2203 = vmatpush1.bf16.msra.mxu1 %v9086_v32  ;;  %v9131_v32 = vld [vmem:[#allocation4 + $0x6a0] ss:$8 sps:$4 sm:$0xff]  }
 0x3c3   :  { %2204 = vmatprep.subr.bf16.mxu1 %v9091_v35  ;;  %v9136_v35 = vld [vmem:[#allocation4 + $0x6b4] ss:$8 sps:$4 sm:$0xff]  }
 0x3c6   :  { %2205 = vmatpush1.bf16.msra.mxu1 %v9089_v46  ;;  %v9134_v46 = vld [vmem:[#allocation4 + $0x6b0] ss:$8 sps:$4 sm:$0xff]  }
 0x3c7   :  { %2206 = vmatprep.subr.bf16.mxu1 %v9094_v52  ;;  %v9139_v52 = vld [vmem:[#allocation4 + $0x6c4] ss:$8 sps:$4 sm:$0xff]  }
 0x3ca   :  { %2207 = vmatpush1.bf16.msra.mxu1 %v9092_v55  ;;  %v9137_v55 = vld [vmem:[#allocation4 + $0x6c0] ss:$8 sps:$4 sm:$0xff]  }
 0x3cb   :  { %2208 = vmatprep.subr.bf16.mxu1 %v9097_v6  ;;  %v9142_v6 = vld [vmem:[#allocation4 + $0x6d4] ss:$8 sps:$4 sm:$0xff]  }
 0x3ce   :  { %2209 = vmatpush1.bf16.msra.mxu1 %v9095_v4  ;;  %v9140_v4 = vld [vmem:[#allocation4 + $0x6d0] ss:$8 sps:$4 sm:$0xff]  }
 0x3cf   :  { %2210 = vmatprep.subr.bf16.mxu1 %v9100_v7  ;;  %v9145_v7 = vld [vmem:[#allocation4 + $0x6e4] ss:$8 sps:$4 sm:$0xff]  }
 0x3d2   :  { %2211 = vmatpush1.bf16.msra.mxu1 %v9098_v9  ;;  %v9143_v9 = vld [vmem:[#allocation4 + $0x6e0] ss:$8 sps:$4 sm:$0xff]  }
 0x3d3   :  { %2212 = vmatprep.subr.bf16.mxu1 %v9103_v43  ;;  %v9148_v43 = vld [vmem:[#allocation4 + $0x6f4] ss:$8 sps:$4 sm:$0xff]  }
 0x3d6   :  { %2213 = vmatpush1.bf16.msra.mxu1 %v9101_v51  ;;  %v9146_v51 = vld [vmem:[#allocation4 + $0x6f0] ss:$8 sps:$4 sm:$0xff]  }
 0x3d7   :  { %2214 = vmatprep.subr.bf16.mxu1 %v9106_v5  ;;  %v9151_v5 = vld [vmem:[#allocation4 + $0x704] ss:$8 sps:$4 sm:$0xff]  }
 0x3da   :  { %2215 = vmatpush1.bf16.msra.mxu1 %v9104_v25  ;;  %v9149_v25 = vld [vmem:[#allocation4 + $0x700] ss:$8 sps:$4 sm:$0xff]  }
 0x3db   :  { %2216 = vmatprep.subr.bf16.mxu1 %v9109_v37  ;;  %v9154_v37 = vld [vmem:[#allocation4 + $0x714] ss:$8 sps:$4 sm:$0xff]  }
 0x3de   :  { %2217 = vmatpush1.bf16.msra.mxu1 %v9107_v63  ;;  %v9152_v63 = vld [vmem:[#allocation4 + $0x710] ss:$8 sps:$4 sm:$0xff]  }
 0x3df   :  { %2218 = vmatprep.subr.bf16.mxu1 %v9112_v8  ;;  %v9157_v8 = vld [vmem:[#allocation4 + $0x724] ss:$8 sps:$4 sm:$0xff]  }
 0x3e2   :  { %2219 = vmatpush1.bf16.msra.mxu1 %v9110_v28  ;;  %v9155_v28 = vld [vmem:[#allocation4 + $0x720] ss:$8 sps:$4 sm:$0xff]  }
 0x3e3   :  { %2510 = vmatprep.subr.bf16.mxu1 %v9115_v31  ;;  %v9160_v31 = vld [vmem:[#allocation4 + $0x734] ss:$8 sps:$4 sm:$0xff]  }
 0x3e5   :  { %2221 = vmatmul.mubr.bf16.vlgmr.msra.gmra.mrb[64].mxu1 %v1702_v41  ;;  %v2917_v41 = vld [vmem:[%s11182_s4 + $0x80] sm:$0xff] }
 0x3e6   :  { %2230 = vmatprep.mubr.bf16.mxu1 %v1705_v54  ;;  %2511 = vmatpush1.bf16.msra.mxu1 %v9113_v34  ;;  %v10317_v54 = vpack.c.bf16 %v2918_v47, %v2917_v41  ;;  %v9158_v34 = vld [vmem:[#allocation4 + $0x730] ss:$8 sps:$4 sm:$0xff]   ;;  %v9172_v41 = vld [vmem:[#allocation4 + $0x794] ss:$8 sps:$4 sm:$0xff]  }
 0x3e7   :  { %2512 = vmatprep.subr.bf16.mxu1 %v9118_v42  ;;  %v9163_v42 = vld [vmem:[#allocation4 + $0x764] ss:$8 sps:$4 sm:$0xff]   ;;  %v9170_v47 = vld [vmem:[#allocation4 + $0x790] ss:$8 sps:$4 sm:$0xff]  }
 0x3e8   :  { %8369 = vmatprep.subr.bf16.mxu0 %v10317_v54 }
 0x3e9   :  { %8371 = vmatpush3.bf16.msra.mxu0 %v10328_v19 }
 0x3ea   :  { %2513 = vmatpush1.bf16.msra.mxu1 %v9116_v23  ;;  %v9161_v23 = vld [vmem:[#allocation4 + $0x760] ss:$8 sps:$4 sm:$0xff]  }
 0x3eb   :  { %2514 = vmatprep.subr.bf16.mxu1 %v9121_v50  ;;  %v9166_v50 = vld [vmem:[#allocation4 + $0x774] ss:$8 sps:$4 sm:$0xff]  }
 0x3ed   :  { %2231 = vmatmul.mubr.bf16.gmra.mrb[68].mxu1 %v1704_v30  ;;  %v2920_v30 = vld [vmem:[%s11182_s4 + $0x98] sm:$0xff] }
 0x3ee   :  { %2515 = vmatpush1.bf16.msra.mxu1 %v9119_v53  ;;  %2542 = vmatprep.mubr.bf16.mxu1 %v2347_v15  ;;  %v10330_v1 = vpack.c.bf16 %v2920_v30, %v2919_v16  ;;  %v2904_v15 = vld [vmem:[%s11182_s4 + $0x18] sm:$0xff] }
 0x3ef   :  { %2516 = vmatprep.subr.bf16.mxu1 %v9124_v33  ;;  %v10340_v39 = vpack.c.bf16 %v2904_v15, %v2903_v12  ;;  %v9164_v53 = vld [vmem:[#allocation4 + $0x770] ss:$8 sps:$4 sm:$0xff]   ;;  %v9169_v33 = vld [vmem:[#allocation4 + $0x784] ss:$8 sps:$4 sm:$0xff]   ;;  %v9196_v16 = vld [vmem:[#allocation4 + $0x814] ss:$8 sps:$4 sm:$0xff]  }
 0x3f0   :  { %8373 = vmatprep.subr.bf16.mxu0 %v10330_v1  ;;  %v9194_v30 = vld [vmem:[#allocation4 + $0x810] ss:$8 sps:$4 sm:$0xff]   ;;  %v9197_v12 = vld [vmem:[#allocation4 + $0x820] ss:$8 sps:$4 sm:$0xff]   ;;  %v9202_v15 = vld [vmem:[#allocation4 + $0x834] ss:$8 sps:$4 sm:$0xff]  }
 0x3f1   :  { %8375 = vmatpush3.bf16.msra.mxu0 %v10340_v39 }
 0x3f2   :  { %2517 = vmatpush1.bf16.msra.mxu1 %v9122_v38  ;;  %v9167_v38 = vld [vmem:[#allocation4 + $0x780] ss:$8 sps:$4 sm:$0xff]  }
 0x3f3   :  { %2518 = vmatprep.subr.bf16.mxu1 %v9127_v11  ;;  %v9199_v11 = vld [vmem:[#allocation4 + $0x824] ss:$8 sps:$4 sm:$0xff]  }
 0x3f6   :  { %2519 = vmatpush1.bf16.msra.mxu1 %v9125_v56  ;;  %v9200_v56 = vld [vmem:[#allocation4 + $0x830] ss:$8 sps:$4 sm:$0xff]  }
 0x3f7   :  { %2520 = vmatprep.subr.bf16.mxu1 %v9130_v57  ;;  %v9205_v57 = vld [vmem:[#allocation4 + $0x844] ss:$8 sps:$4 sm:$0xff]  }
 0x3fa   :  { %2521 = vmatpush1.bf16.msra.mxu1 %v9128_v60  ;;  %v9203_v60 = vld [vmem:[#allocation4 + $0x840] ss:$8 sps:$4 sm:$0xff]  }
 0x3fb   :  { %2522 = vmatprep.subr.bf16.mxu1 %v9133_v27  ;;  %v9208_v27 = vld [vmem:[#allocation4 + $0x854] ss:$8 sps:$4 sm:$0xff]  }
 0x3fe   :  { %2523 = vmatpush1.bf16.msra.mxu1 %v9131_v32  ;;  %v9206_v32 = vld [vmem:[#allocation4 + $0x850] ss:$8 sps:$4 sm:$0xff]  }
 0x3ff   :  { %2524 = vmatprep.subr.bf16.mxu1 %v9136_v35  ;;  %v2921_v35 = vld [vmem:[%s11182_s4 + $0xa0] sm:$0xff] }
 0x402   :  { %2525 = vmatpush1.bf16.msra.mxu1 %v9134_v46  ;;  %v2922_v46 = vld [vmem:[%s11182_s4 + $0xa8] sm:$0xff] }
 0x403   :  { %2526 = vmatprep.subr.bf16.mxu1 %v9139_v52  ;;  %v10372_v14 = vpack.c.bf16 %v2922_v46, %v2921_v35 }
 0x405   :  { %8377 = vmatprep.subr.bf16.mxu0 %v10372_v14 }
 0x406   :  { %2527 = vmatpush1.bf16.msra.mxu1 %v9137_v55  ;;  %v2925_v55 = vld [vmem:[%s11182_s4 + $0xc0] sm:$0xff] }
 0x407   :  { %2528 = vmatprep.subr.bf16.mxu1 %v9142_v6  ;;  %v2926_v6 = vld [vmem:[%s11182_s4 + $0xc8] sm:$0xff] }
 0x40a   :  { %2529 = vmatpush1.bf16.msra.mxu1 %v9140_v4  ;;  %v10408_v4 = vpack.c.bf16 %v2926_v6, %v2925_v55 }
 0x40b   :  { %2530 = vmatprep.subr.bf16.mxu1 %v9145_v7  ;;  %v2909_v7 = vld [vmem:[%s11182_s4 + $0x40] sm:$0xff] }
 0x40e   :  { %2531 = vmatpush1.bf16.msra.mxu1 %v9143_v9  ;;  %v2910_v9 = vld [vmem:[%s11182_s4 + $0x48] sm:$0xff] }
 0x40f   :  { %2532 = vmatprep.subr.bf16.mxu1 %v9148_v43  ;;  %v10416_v43 = vpack.c.bf16 %v2910_v9, %v2909_v7 }
 0x412   :  { %2533 = vmatpush1.bf16.msra.mxu1 %v9146_v51  ;;  %v2927_v51 = vld [vmem:[%s11182_s4 + $0xd0] sm:$0xff] }
 0x413   :  { %2534 = vmatprep.subr.bf16.mxu1 %v9151_v5  ;;  %v2928_v5 = vld [vmem:[%s11182_s4 + $0xd8] sm:$0xff] }
 0x416   :  { %2535 = vmatpush1.bf16.msra.mxu1 %v9149_v25  ;;  %v10426_v25 = vpack.c.bf16 %v2928_v5, %v2927_v51 }
 0x417   :  { %2536 = vmatprep.subr.bf16.mxu1 %v9154_v37  ;;  %v2911_v37 = vld [vmem:[%s11182_s4 + $0x50] sm:$0xff] }
 0x41a   :  { %2537 = vmatpush1.bf16.msra.mxu1 %v9152_v63  ;;  %v2912_v63 = vld [vmem:[%s11182_s4 + $0x58] sm:$0xff] }
 0x41b   :  { %2538 = vmatprep.subr.bf16.mxu1 %v9157_v8  ;;  %v10434_v8 = vpack.c.bf16 %v2912_v63, %v2911_v37 }
 0x41e   :  { %2539 = vmatpush1.bf16.msra.mxu1 %v9155_v28  ;;  %v2929_v28 = vld [vmem:[%s11182_s4 + $0xe0] sm:$0xff] }
 0x41f   :  { %2540 = vmatprep.subr.bf16.mxu1 %v9160_v31  ;;  %v2930_v31 = vld [vmem:[%s11182_s4 + $0xe8] sm:$0xff] }
 0x422   :  { %2541 = vmatpush1.bf16.msra.mxu1 %v9158_v34  ;;  %v10444_v34 = vpack.c.bf16 %v2930_v31, %v2929_v28 }
 0x423   :  { %2840 = vmatprep.subr.bf16.mxu1 %v9163_v42  ;;  %v2913_v42 = vld [vmem:[%s11182_s4 + $0x60] sm:$0xff] }
 0x425   :  { %2543 = vmatmul.mubr.bf16.vlgmr.msra.gmra.mrb[64].mxu1 %v2346_v10  ;;  %v9178_v10 = vld [vmem:[#allocation4 + $0x7b4] ss:$8 sps:$4 sm:$0xff]  }
 0x426   :  { %2841 = vmatpush1.bf16.msra.mxu1 %v9161_v23  ;;  %2552 = vmatprep.mubr.bf16.mxu1 %v2349_v22  ;;  %v9179_v22 = vld [vmem:[#allocation4 + $0x7c0] ss:$8 sps:$4 sm:$0xff]  }
 0x427   :  { %2842 = vmatprep.subr.bf16.mxu1 %v9166_v50  ;;  %v2914_v23 = vld [vmem:[%s11182_s4 + $0x68] sm:$0xff] }
 0x428   :  { %v10452_v50 = vpack.c.bf16 %v2914_v23, %v2913_v42 }
 0x42a   :  { %2843 = vmatpush1.bf16.msra.mxu1 %v9164_v53  ;;  %v2931_v53 = vld [vmem:[%s11182_s4 + $0xf0] sm:$0xff] }
 0x42b   :  { %2844 = vmatprep.subr.bf16.mxu1 %v9169_v33  ;;  %v2932_v33 = vld [vmem:[%s11182_s4 + $0xf8] sm:$0xff] }
 0x42d   :  { %2553 = vmatmul.mubr.bf16.gmra.mrb[68].mxu1 %v2348_v17  ;;  %v9187_v17 = vld [vmem:[#allocation4 + $0x7e4] ss:$8 sps:$4 sm:$0xff]  }
 0x42e   :  { %2845 = vmatpush1.bf16.msra.mxu1 %v9167_v38  ;;  %2872 = vmatprep.mubr.bf16.mxu1 %v2677_v29  ;;  %v9188_v29 = vld [vmem:[#allocation4 + $0x7f0] ss:$8 sps:$4 sm:$0xff]   ;;  %v10462_v38 = vpack.c.bf16 %v2932_v33, %v2931_v53 }
 0x42f   :  { %2846 = vmatprep.subr.bf16.mxu1 %v9172_v41  ;;  %v2915_v41 = vld [vmem:[%s11182_s4 + $0x70] sm:$0xff] }
 0x432   :  { %2847 = vmatpush1.bf16.msra.mxu1 %v9170_v47  ;;  %v2916_v47 = vld [vmem:[%s11182_s4 + $0x78] sm:$0xff] }
 0x433   :  { %2848 = vmatprep.subr.bf16.mxu1 %v9175_v58  ;;  %v10470_v58 = vpack.c.bf16 %v2916_v47, %v2915_v41 }
 0x436   :  { %2849 = vmatpush1.bf16.msra.mxu1 %v9173_v2 }
 0x437   :  { %2850 = vmatprep.subr.bf16.mxu1 %v9178_v10 }
 0x43a   :  { %2851 = vmatpush1.bf16.msra.mxu1 %v9176_v62 }
 0x43b   :  { %2852 = vmatprep.subr.bf16.mxu1 %v9181_v21 }
 0x43e   :  { %2853 = vmatpush1.bf16.msra.mxu1 %v9179_v22 }
 0x43f   :  { %2854 = vmatprep.subr.bf16.mxu1 %v9184_v48 }
 0x442   :  { %2855 = vmatpush1.bf16.msra.mxu1 %v9182_v61 }
 0x443   :  { %2856 = vmatprep.subr.bf16.mxu1 %v9187_v17 }
 0x446   :  { %2857 = vmatpush1.bf16.msra.mxu1 %v9185_v13 }
 0x447   :  { %2858 = vmatprep.subr.bf16.mxu1 %v9190_v26 }
 0x44a   :  { %2859 = vmatpush1.bf16.msra.mxu1 %v9188_v29 }
 0x44b   :  { %2860 = vmatprep.subr.bf16.mxu1 %v9193_v36 }
 0x44e   :  { %2861 = vmatpush1.bf16.msra.mxu1 %v9191_v20 }
 0x44f   :  { %2862 = vmatprep.subr.bf16.mxu1 %v9196_v16 }
 0x452   :  { %2863 = vmatpush1.bf16.msra.mxu1 %v9194_v30 }
 0x453   :  { %2864 = vmatprep.subr.bf16.mxu1 %v9199_v11 }
 0x456   :  { %2865 = vmatpush1.bf16.msra.mxu1 %v9197_v12 }
 0x457   :  { %2866 = vmatprep.subr.bf16.mxu1 %v9202_v15 }
 0x45a   :  { %2867 = vmatpush1.bf16.msra.mxu1 %v9200_v56 }
 0x45b   :  { %2868 = vmatprep.subr.bf16.mxu1 %v9205_v57 }
 0x45e   :  { %2869 = vmatpush1.bf16.msra.mxu1 %v9203_v60 }
 0x45f   :  { %2870 = vmatprep.subr.bf16.mxu1 %v9208_v27 }
 0x462   :  { %2871 = vmatpush1.bf16.msra.mxu1 %v9206_v32 }
 0x465   :  { %2873 = vmatmul.mubr.bf16.vlgmr.msra.gmra.mrb[64].mxu1 %v2676_v24  ;;  %v2906_v24 = vld [vmem:[%s11182_s4 + $0x28] sm:$0xff] }
 0x466   :  { %2882 = vmatprep.mubr.bf16.mxu1 %v2679_v49  ;;  %v10380_v40 = vpack.c.bf16 %v2906_v24, %v2905_v18  ;;  %v2908_v49 = vld [vmem:[%s11182_s4 + $0x38] sm:$0xff] }
 0x467   :  { %v10398_v52 = vpack.c.bf16 %v2908_v49, %v2907_v3 }
 0x468   :  { %8379 = vmatpush3.bf16.msra.mxu0 %v10380_v40 }
 0x46d   :  { %2883 = vmatmul.mubr.bf16.gmra.mrb[68].mxu1 %v2678_v59  ;;  %v10390_v59 = vpack.c.bf16 %v2924_v45, %v2923_v44 }
 0x46e   :  { %3990 = vmatprep.mubr.bf16.mxu1 %v9746_v0 }
 0x46f   :  { %8381 = vmatprep.subr.bf16.mxu0 %v10390_v59 }
 0x470   :  { %8383 = vmatpush3.bf16.msra.mxu0 %v10398_v52 }
 0x471   :  { %8385 = vmatprep.subr.bf16.mxu0 %v10408_v4 }
 0x474   :  { %8387 = vmatpush3.bf16.msra.mxu0 %v10416_v43 }
 0x475   :  { %8389 = vmatprep.subr.bf16.mxu0 %v10426_v25 }
 0x478   :  { %8391 = vmatpush3.bf16.msra.mxu0 %v10434_v8 }
 0x479   :  { %8393 = vmatprep.subr.bf16.mxu0 %v10444_v34 }
 0x47c   :  { %8395 = vmatpush3.bf16.msra.mxu0 %v10452_v50 }
 0x47d   :  { %8397 = vmatprep.subr.bf16.mxu0 %v10462_v38 }
 0x480   :  { %8399 = vmatpush3.bf16.msra.mxu0 %v10470_v58 }
 0x481   :  { %8401 = vmatprep.subr.bf16.mxu0 %v10317_v54 }
 0x538   :  { %v10475_v2 = vpop.f32.mrb[64].mxu1 }
 0x539   :  { %v10477_v10 = vpop.f32.mrb[65].mxu1  ;;  %v2956_v21 = vmul.f32 %v10475_v2, %v10475_v2 }
 0x53a   :  { %v10479_v62 = vpop.f32.mrb[66].mxu1  ;;  %v2957_v54 = vmul.f32 %v10477_v10, %v10477_v10 }
 0x53b   :  { %v2938_v22 = vadd.f32 %v10479_v62, %v10475_v2  ;;  %v2958_v48 = vmul.f32 %v10479_v62, %v10479_v62  ;;  %v10487_v61 = vpop.f32.mrb[67].mxu1 }
 0x53c   :  { %v2947_v17 = vadd.f32 %v10487_v61, %v10477_v10  ;;  %v2959_v13 = vmul.f32 %v10487_v61, %v10487_v61 }
 0x53d   :  { %v2964_v26 = vadd.f32 %v2958_v48, %v2956_v21 }
 0x53e   :  { %v2973_v29 = vadd.f32 %v2959_v13, %v2957_v54 }
 0x540   :  { %v10495_v36 = vpop.f32.mrb[68].mxu1 }
 0x541   :  { %v2939_v20 = vadd.f32 %v2938_v22, %v10495_v36  ;;  %v2960_v16 = vmul.f32 %v10495_v36, %v10495_v36  ;;  %v10500_v30 = vpop.f32.mrb[69].mxu1 }
 0x542   :  { %v2948_v11 = vadd.f32 %v2947_v17, %v10500_v30  ;;  %v2961_v12 = vmul.f32 %v10500_v30, %v10500_v30  ;;  %v10505_v15 = vpop.f32.mrb[70].mxu1 }
 0x543   :  { %v2965_v56 = vadd.f32 %v2964_v26, %v2960_v16  ;;  %v2940_v57 = vadd.f32 %v2939_v20, %v10505_v15  ;;  %v2962_v60 = vmul.f32 %v10505_v15, %v10505_v15  ;;  %v10510_v27 = vpop.f32.mrb[71].mxu1  ;;  %v2937_v26 = vld [vmem:[%s11182_s4 + $0x100] sm:$0x3] }
 0x544   :  { %v2974_v32 = vadd.f32 %v2973_v29, %v2961_v12  ;;  %v2949_v35 = vadd.f32 %v2948_v11, %v10510_v27  ;;  %v2963_v46 = vmul.f32 %v10510_v27, %v10510_v27 }
 0x545   :  { %v2941_v18 = vrot.slane %v2940_v57, 4  ;;  %v2966_v24 = vadd.f32 %v2965_v56, %v2962_v60 }
 0x546   :  { %v2950_v44 = vrot.slane %v2949_v35, 4  ;;  %v2975_v45 = vadd.f32 %v2974_v32, %v2963_v46 }
 0x547   :  { %v2942_v3 = vadd.f32 %v2941_v18, %v2940_v57  ;;  %v2967_v41 = vrot.slane %v2966_v24, 4  ;;  %v3283_v57 = vlaneseq }
 0x548   :  { %v2951_v49 = vadd.f32 %v2950_v44, %v2949_v35  ;;  %v2976_v55 = vrot.slane %v2975_v45, 4 }
 0x549   :  { %v2943_v6 = vrot.slane %v2942_v3, 2  ;;  %v2968_v47 = vadd.f32 %v2967_v41, %v2966_v24  ;;  %v10538_v60 = vshrl.u32 %v3283_v57, 7  ;;  %v9227_v57 = vld [vmem:[#allocation4 + $0x9e0] ss:$8 sps:$4 sm:$0xff]  }
 0x54a   :  { %v2952_v7 = vrot.slane %v2951_v49, 2  ;;  %v2977_v9 = vadd.f32 %v2976_v55, %v2975_v45 }
 0x54b   :  { %v2944_v51 = vadd.f32 %v2943_v6, %v2942_v3  ;;  %v10541_v32 = vsub.s32 0, %v10538_v60 }
 0x54c   :  { %v2953_v5 = vadd.f32 %v2952_v7, %v2951_v49  ;;  %v2978_v37 = vrot.slane %v2977_v9, 2 }
 0x54d   :  { %v2945_v63 = vrot.slane %v2944_v51, 1 }
 0x54e   :  { %v2954_v28 = vrot.slane %v2953_v5, 1  ;;  %v2979_v31 = vadd.f32 %v2978_v37, %v2977_v9 }
 0x54f   :  { %v2946_v53 = vadd.f32 %v2945_v63, %v2944_v51 }
 0x550   :  { %v2955_v42 = vadd.f32 %v2954_v28, %v2953_v5  ;;  %v2980_v23 = vrot.slane %v2979_v31, 1 }
 0x552   :  { %3046 = vmatprep.mubr.f32.mxu0 %v2955_v42  ;;  %v2981_v33 = vadd.f32 %v2980_v23, %v2979_v31 }
 0x553   :  { %3047 = vmatmul.mubr.f32.vlgmr.msra.gmra.mrb[48].mxu0 %v2946_v53 }
 0x554   :  { %8403 = vmatpush3.bf16.msra.mxu0 %v10328_v19  ;;  %3116 = vmatprep.mubr.f32.mxu0 %v2981_v33  ;;  %v2969_v19 = vrot.slane %v2968_v47, 2 }
 0x555   :  { %8405 = vmatprep.subr.bf16.mxu0 %v10330_v1 }
 0x556   :  { %v2970_v1 = vadd.f32 %v2969_v19, %v2968_v47 }
 0x558   :  { %8407 = vmatpush3.bf16.msra.mxu0 %v10340_v39  ;;  %v2971_v39 = vrot.slane %v2970_v1, 1 }
 0x559   :  { %8409 = vmatprep.subr.bf16.mxu0 %v10372_v14 }
 0x55a   :  { %v2972_v14 = vadd.f32 %v2971_v39, %v2970_v1 }
 0x55c   :  { %8411 = vmatpush3.bf16.msra.mxu0 %v10380_v40  ;;  %v2934_v40 = vld [vmem:[#allocation6 + $0x8] sm:$0xff] }
 0x55d   :  { %8413 = vmatprep.subr.bf16.mxu0 %v10390_v59  ;;  %v2936_v59 = vld [vmem:[#allocation6 + $0x18] sm:$0xff] }
 0x560   :  { %8415 = vmatpush3.bf16.msra.mxu0 %v10398_v52  ;;  %v2933_v52 = vld [vmem:[#allocation6] sm:$0xff] }
 0x561   :  { %8417 = vmatprep.subr.bf16.mxu0 %v10408_v4  ;;  %v8432_v4 = vpack.c.bf16 %v2936_v59, %v2934_v40 }
 0x564   :  { %8419 = vmatpush3.bf16.msra.mxu0 %v10416_v43  ;;  %v2935_v43 = vld [vmem:[#allocation6 + $0x10] sm:$0xff] }
 0x565   :  { %8421 = vmatprep.subr.bf16.mxu0 %v10426_v25  ;;  %v9747_v25 = vmov 0.0  }
 0x568   :  { %8423 = vmatpush3.bf16.msra.mxu0 %v10434_v8  ;;  %v8434_v8 = vpack.c.bf16 %v2935_v43, %v2933_v52 }
 0x569   :  { %8425 = vmatprep.subr.bf16.mxu0 %v10444_v34 }
 0x56c   :  { %8427 = vmatpush3.bf16.msra.mxu0 %v10452_v50 }
 0x56d   :  { %8429 = vmatprep.subr.bf16.mxu0 %v10462_v38 }
 0x570   :  { %8431 = vmatpush3.bf16.msra.mxu0 %v10470_v58 }
 0x571   :  { %8433 = vmatprep.subr.bf16.mxu0 %v8432_v4 }
 0x573   :  { %3117 = vmatmul.mubr.f32.vlgmr.msra.gmra.mrb[50].mxu0 %v2972_v14 }
 0x574   :  { %3201 = vmatprep.mubr.f32.mxu0 %v9747_v25  ;;  %8435 = vmatpush1.bf16.msra.mxu0 %v8434_v8 }
 0x575   :  { %8437 = vmatprep.subr.bf16.mxu0 %v8432_v4 }
 0x626   :  { %v8097_v34 = vpop.f32.mrb[48].mxu0 }
 0x627   :  { %v8098_v50 = vpop.f32.mrb[49].mxu0 }
 0x628   :  { %v8099_v38 = vadd.f32 %v8098_v50, %v8097_v34 }
 0x62a   :  { %v3122_v58 = vmul.f32 %v8099_v38, %v8099_v38 }
 0x646   :  { %v8132_v21 = vpop.f32.mrb[50].mxu0 }
 0x647   :  { %v8133_v22 = vpop.f32.mrb[51].mxu0 }
 0x648   :  { %v8134_v48 = vadd.f32 %v8133_v22, %v8132_v21  ;;  %v9210_v21 = vld [vmem:[#allocation4 + $0xba0] ss:$8 sps:$4 sm:$0xff]   ;;  %v9214_v22 = vld [vmem:[#allocation4 + $0x994] ss:$8 sps:$4 sm:$0xff]  }
 0x64a   :  { %v3123_v54 = vsub.f32 %v8134_v48, %v3122_v58  ;;  %v9211_v58 = vld [vmem:[#allocation4 + $0xa90] ss:$8 sps:$4 sm:$0xff]  }
 0x64b   :  { %v9239_v48 = vld [vmem:[#allocation4 + $0xcb0] ss:$8 sps:$4 sm:$0xff]  }
 0x64c   :  { %v3124_v17 = vmax.f32 %v3123_v54, 0.0  ;;  %v9212_v54 = vld [vmem:[#allocation4 + $0x990] ss:$8 sps:$4 sm:$0xff]  }
 0x64e   :  { %v3125_v13 = vadd.f32 1e-05, %v3124_v17  ;;  %v9217_v17 = vld [vmem:[#allocation4 + $0x9a4] ss:$8 sps:$4 sm:$0xff]  }
 0x650   :  { %9657 = vrsqrt.f32 %v3125_v13  ;;  %v9215_v13 = vld [vmem:[#allocation4 + $0x9a0] ss:$8 sps:$4 sm:$0xff]  }
 0x65a   :  { %v9658_v29 = vpop.eup %9657 }
 0x65b   :  { %v3127_v20 = vmul.f32 %v9658_v29, %v2937_v26  ;;  %v9218_v29 = vld [vmem:[#allocation4 + $0x9b0] ss:$8 sps:$4 sm:$0xff]  }
 0x65d   :  { %v3128_v16 = vmul.f32 %v8099_v38, %v3127_v20  ;;  %7743 = vmatmul.mubr.msk.f32.vlgmr.msra.gmra.mrb[52].mxu0 %vm3133_vm1, %v3127_v20  ;;  %v9209_v38 = vld [vmem:[#allocation4 + $0x980] ss:$8 sps:$4 sm:$0xff]   ;;  %v9223_v20 = vld [vmem:[#allocation4 + $0x9c4] ss:$8 sps:$4 sm:$0xff]  }
 0x65e   :  { %8439 = vmatpush1.bf16.msra.mxu0 %v8434_v8  ;;  %3276 = vmatprep.mubr.f32.mxu0 %v9747_v25 }
 0x65f   :  { %v3130_v11 = vrot.slane %v3128_v16, 7  ;;  %v9221_v16 = vld [vmem:[#allocation4 + $0x9c0] ss:$8 sps:$4 sm:$0xff]  }
 0x661   :  { %v3132_v12 = vsub.f32 %v2937_v26, %v3130_v11  ;;  %v9220_v26 = vld [vmem:[#allocation4 + $0x9b4] ss:$8 sps:$4 sm:$0xff]  }
 0x662   :  { %v9226_v11 = vld [vmem:[#allocation4 + $0x9d4] ss:$8 sps:$4 sm:$0xff]  }
 0x663   :  { %v3209_v56 = vrot.slane %v3132_v12, 1  ;;  %v9224_v12 = vld [vmem:[#allocation4 + $0x9d0] ss:$8 sps:$4 sm:$0xff]  }
 0x665   :  { %7744 = vmatmul.mubr.msk.f32.vlgmr.msra.gmra.mrb[54].mxu0 %vm3133_vm1, %v3209_v56  ;;  %v9229_v56 = vld [vmem:[#allocation4 + $0x9e4] ss:$8 sps:$4 sm:$0xff]  }
 0x666   :  { %3410 = vmatprep.mubr.bf16.mxu0 %v9746_v0 }
 0x730   :  { %v3203_v35 = vpop.f32.mrb[52].mxu0 }
 0x731   :  { %v3286_v46 = vrot.slane %v3203_v35, %v10541_v32  ;;  %v3205_v18 = vpop.f32.mrb[53].mxu0  ;;  %v9232_v35 = vld [vmem:[#allocation4 + $0x9f4] ss:$8 sps:$4 sm:$0xff]  }
 0x732   :  { %v3290_v24 = vrot.slane %v3205_v18, %v10541_v32  ;;  %v9235_v18 = vld [vmem:[#allocation4 + $0xa04] ss:$8 sps:$4 sm:$0xff]  }
 0x733   :  { %v3291_v44 = vmul.f32 %v3286_v46, %v10475_v2  ;;  %v3293_v45 = vmul.f32 %v3286_v46, %v10479_v62  ;;  %v3295_v3 = vmul.f32 %v3286_v46, %v10495_v36  ;;  %v3297_v49 = vmul.f32 %v3286_v46, %v10505_v15  ;;  %v9230_v46 = vld [vmem:[#allocation4 + $0x9f0] ss:$8 sps:$4 sm:$0xff]  }
 0x734   :  { %v3292_v55 = vmul.f32 %v3290_v24, %v10477_v10  ;;  %v3294_v6 = vmul.f32 %v3290_v24, %v10487_v61  ;;  %v3296_v7 = vmul.f32 %v3290_v24, %v10500_v30  ;;  %v3298_v9 = vmul.f32 %v3290_v24, %v10510_v27  ;;  %v9233_v24 = vld [vmem:[#allocation4 + $0xa00] ss:$8 sps:$4 sm:$0xff]  }
 0x738   :  { %v3278_v51 = vpop.f32.mrb[54].mxu0 }
 0x739   :  { %v3302_v5 = vrot.slane %v3278_v51, %v10541_v32  ;;  %v3280_v37 = vpop.f32.mrb[55].mxu0  ;;  %v9251_v51 = vld [vmem:[#allocation4 + $0xa54] ss:$8 sps:$4 sm:$0xff]  }
 0x73a   :  { %v3306_v2 = vrot.slane %v3280_v37, %v10541_v32  ;;  %v9254_v37 = vld [vmem:[#allocation4 + $0xa64] ss:$8 sps:$4 sm:$0xff]  }
 0x73b   :  { %v3307_v63 = vadd.f32 %v3302_v5, %v3291_v44  ;;  %v3309_v62 = vadd.f32 %v3302_v5, %v3293_v45  ;;  %v3311_v28 = vadd.f32 %v3302_v5, %v3295_v3  ;;  %v3313_v36 = vadd.f32 %v3302_v5, %v3297_v49  ;;  %v9238_v44 = vld [vmem:[#allocation4 + $0xa14] ss:$8 sps:$4 sm:$0xff]   ;;  %v9236_v45 = vld [vmem:[#allocation4 + $0xa10] ss:$8 sps:$4 sm:$0xff]   ;;  %v9242_v3 = vld [vmem:[#allocation4 + $0xa24] ss:$8 sps:$4 sm:$0xff]  }
 0x73c   :  { %v3308_v31 = vadd.f32 %v3306_v2, %v3292_v55  ;;  %v3310_v15 = vadd.f32 %v3306_v2, %v3294_v6  ;;  %v3312_v42 = vadd.f32 %v3306_v2, %v3296_v7  ;;  %v3314_v10 = vadd.f32 %v3306_v2, %v3298_v9  ;;  %v9240_v49 = vld [vmem:[#allocation4 + $0xa20] ss:$8 sps:$4 sm:$0xff]   ;;  %v9245_v55 = vld [vmem:[#allocation4 + $0xa34] ss:$8 sps:$4 sm:$0xff]   ;;  %v9243_v6 = vld [vmem:[#allocation4 + $0xa30] ss:$8 sps:$4 sm:$0xff]  }
 0x73d   :  { %v3315_v23 = vmul.f32 0.2, %v3307_v63  ;;  %v3317_v61 = vmul.f32 0.2, %v3309_v62  ;;  %v3319_v53 = vmul.f32 0.2, %v3311_v28 }
 0x73e   :  { %v3321_v30 = vmul.f32 0.2, %v3313_v36  ;;  %v3316_v33 = vmul.f32 0.2, %v3308_v31  ;;  %v3318_v27 = vmul.f32 0.2, %v3310_v15 }
 0x73f   :  { %v3320_v41 = vmul.f32 0.2, %v3312_v42  ;;  %v3322_v47 = vmul.f32 0.2, %v3314_v10  ;;  %v3323_v19 = vmax.f32 %v3307_v63, %v3315_v23  ;;  %v3325_v1 = vmax.f32 %v3309_v62, %v3317_v61  ;;  %v9248_v7 = vld [vmem:[#allocation4 + $0xa44] ss:$8 sps:$4 sm:$0xff]  }
 0x740   :  { %v3324_v39 = vmax.f32 %v3308_v31, %v3316_v33  ;;  %v3326_v14 = vmax.f32 %v3310_v15, %v3318_v27  ;;  %v3327_v40 = vmax.f32 %v3311_v28, %v3319_v53  ;;  %v3329_v59 = vmax.f32 %v3313_v36, %v3321_v30  ;;  %v9246_v9 = vld [vmem:[#allocation4 + $0xa40] ss:$8 sps:$4 sm:$0xff]   ;;  %v9249_v5 = vld [vmem:[#allocation4 + $0xa50] ss:$8 sps:$4 sm:$0xff]   ;;  %v9257_v62 = vld [vmem:[#allocation4 + $0xa74] ss:$8 sps:$4 sm:$0xff]  }
 0x741   :  { %v3331_v52 = vpack.c.bf16 %v3325_v1, %v3323_v19  ;;  %v3328_v4 = vmax.f32 %v3312_v42, %v3320_v41  ;;  %v3330_v43 = vmax.f32 %v3314_v10, %v3322_v47  ;;  %v9252_v2 = vld [vmem:[#allocation4 + $0xa60] ss:$8 sps:$4 sm:$0xff]   ;;  %v9255_v63 = vld [vmem:[#allocation4 + $0xa70] ss:$8 sps:$4 sm:$0xff]   ;;  %v9260_v28 = vld [vmem:[#allocation4 + $0xa84] ss:$8 sps:$4 sm:$0xff]  }
 0x742   :  { %v3332_v8 = vpack.c.bf16 %v3326_v14, %v3324_v39  ;;  %v3333_v34 = vpack.c.bf16 %v3329_v59, %v3327_v40  ;;  %v9258_v36 = vld [vmem:[#allocation4 + $0xa80] ss:$8 sps:$4 sm:$0xff]   ;;  %v9263_v31 = vld [vmem:[#allocation4 + $0x884] ss:$8 sps:$4 sm:$0xff]  }
 0x743   :  { %v3334_v50 = vpack.c.bf16 %v3330_v43, %v3328_v4  ;;  %v9261_v4 = vld [vmem:[#allocation4 + $0x880] ss:$8 sps:$4 sm:$0xff]   ;;  %v9266_v43 = vld [vmem:[#allocation4 + $0x894] ss:$8 sps:$4 sm:$0xff]  }
 0x744   :  { %3378 = vmatprep.subr.bf16.mxu0 %v3332_v8  ;;  %3958 = vmatprep.subr.bf16.mxu1 %v3332_v8 }
 0x745   :  { %3379 = vmatpush1.bf16.msra.mxu0 %v3331_v52  ;;  %3959 = vmatpush1.bf16.msra.mxu1 %v3331_v52 }
 0x746   :  { %3380 = vmatprep.subr.bf16.mxu0 %v3334_v50  ;;  %3960 = vmatprep.subr.bf16.mxu1 %v3334_v50 }
 0x749   :  { %3381 = vmatpush1.bf16.msra.mxu0 %v3333_v34  ;;  %3961 = vmatpush1.bf16.msra.mxu1 %v3333_v34 }
 0x74a   :  { %3465 = vmatprep.subr.bf16.mxu0 %v3332_v8  ;;  %4252 = vmatprep.subr.bf16.mxu1 %v3332_v8  ;;  %v9264_v8 = vld [vmem:[#allocation4 + $0x890] ss:$8 sps:$4 sm:$0xff]  }
 0x74c   :  { %7746 = vmatmul.mubr.msk.bf16.vlgmr.msra.gmra.mrb[56].mxu0 %vm3374_vm2, %v9209_v38  ;;  %7814 = vmatmul.mubr.msk.bf16.vlgmr.msra.gmra.mrb[72].mxu1 %vm3374_vm2, %v9210_v21  ;;  %v9272_v38 = vld [vmem:[#allocation4 + $0x8b4] ss:$8 sps:$4 sm:$0xff]   ;;  %v9270_v21 = vld [vmem:[#allocation4 + $0x8b0] ss:$8 sps:$4 sm:$0xff]  }
 0x74d   :  { %3466 = vmatpush1.bf16.msra.mxu0 %v3331_v52  ;;  %4253 = vmatpush1.bf16.msra.mxu1 %v3331_v52 }
 0x74e   :  { %3467 = vmatprep.subr.bf16.mxu0 %v3334_v50  ;;  %4254 = vmatprep.subr.bf16.mxu1 %v3334_v50  ;;  %v9267_v50 = vld [vmem:[#allocation4 + $0x8a0] ss:$8 sps:$4 sm:$0xff]  }
 0x74f   :  { %3497 = vmatprep.mubr.bf16.mxu0 %v9746_v0  ;;  %4284 = vmatprep.mubr.bf16.mxu1 %v9746_v0 }
 0x751   :  { %3468 = vmatpush1.bf16.msra.mxu0 %v3333_v34  ;;  %4255 = vmatpush1.bf16.msra.mxu1 %v3333_v34  ;;  %v9269_v34 = vld [vmem:[#allocation4 + $0x8a4] ss:$8 sps:$4 sm:$0xff]  }
 0x752   :  { %3670 = vmatprep.subr.bf16.mxu0 %v9214_v22  ;;  %v9275_v22 = vld [vmem:[#allocation4 + $0x8c4] ss:$8 sps:$4 sm:$0xff]  }
 0x754   :  { %7748 = vmatmul.mubr.msk.bf16.vlgmr.msra.gmra.mrb[60].mxu0 %vm3374_vm2, %v9211_v58  ;;  %7848 = vmatmul.mubr.msk.bf16.vlgmr.msra.gmra.mrb[76].mxu1 %vm3374_vm2, %v9239_v48  ;;  %v9273_v58 = vld [vmem:[#allocation4 + $0x8c0] ss:$8 sps:$4 sm:$0xff]   ;;  %v9278_v48 = vld [vmem:[#allocation4 + $0x8d4] ss:$8 sps:$4 sm:$0xff]  }
 0x755   :  { %3671 = vmatpush1.bf16.msra.mxu0 %v9212_v54  ;;  %v9276_v54 = vld [vmem:[#allocation4 + $0x8d0] ss:$8 sps:$4 sm:$0xff]  }
 0x756   :  { %3672 = vmatprep.subr.bf16.mxu0 %v9217_v17  ;;  %v9281_v17 = vld [vmem:[#allocation4 + $0x8e4] ss:$8 sps:$4 sm:$0xff]  }
 0x759   :  { %3673 = vmatpush1.bf16.msra.mxu0 %v9215_v13  ;;  %v9279_v13 = vld [vmem:[#allocation4 + $0x8e0] ss:$8 sps:$4 sm:$0xff]  }
 0x75a   :  { %3674 = vmatprep.subr.bf16.mxu0 %v9220_v26  ;;  %v9284_v26 = vld [vmem:[#allocation4 + $0x8f4] ss:$8 sps:$4 sm:$0xff]  }
 0x75d   :  { %3675 = vmatpush1.bf16.msra.mxu0 %v9218_v29  ;;  %v9282_v29 = vld [vmem:[#allocation4 + $0x8f0] ss:$8 sps:$4 sm:$0xff]  }
 0x75e   :  { %3676 = vmatprep.subr.bf16.mxu0 %v9223_v20  ;;  %v9287_v20 = vld [vmem:[#allocation4 + $0x904] ss:$8 sps:$4 sm:$0xff]  }
 0x761   :  { %3677 = vmatpush1.bf16.msra.mxu0 %v9221_v16  ;;  %v9285_v16 = vld [vmem:[#allocation4 + $0x900] ss:$8 sps:$4 sm:$0xff]  }
 0x762   :  { %3678 = vmatprep.subr.bf16.mxu0 %v9226_v11  ;;  %v9290_v11 = vld [vmem:[#allocation4 + $0x914] ss:$8 sps:$4 sm:$0xff]  }
 0x765   :  { %3679 = vmatpush1.bf16.msra.mxu0 %v9224_v12  ;;  %v9288_v12 = vld [vmem:[#allocation4 + $0x910] ss:$8 sps:$4 sm:$0xff]  }
 0x766   :  { %3680 = vmatprep.subr.bf16.mxu0 %v9229_v56  ;;  %v9293_v56 = vld [vmem:[#allocation4 + $0x924] ss:$8 sps:$4 sm:$0xff]  }
 0x769   :  { %3681 = vmatpush1.bf16.msra.mxu0 %v9227_v57  ;;  %v9291_v57 = vld [vmem:[#allocation4 + $0x920] ss:$8 sps:$4 sm:$0xff]  }
 0x76a   :  { %3682 = vmatprep.subr.bf16.mxu0 %v9232_v35  ;;  %v9296_v35 = vld [vmem:[#allocation4 + $0x934] ss:$8 sps:$4 sm:$0xff]  }
 0x76d   :  { %3683 = vmatpush1.bf16.msra.mxu0 %v9230_v46  ;;  %v9294_v46 = vld [vmem:[#allocation4 + $0x930] ss:$8 sps:$4 sm:$0xff]  }
 0x76e   :  { %3684 = vmatprep.subr.bf16.mxu0 %v9235_v18  ;;  %v9299_v18 = vld [vmem:[#allocation4 + $0x944] ss:$8 sps:$4 sm:$0xff]  }
 0x771   :  { %3685 = vmatpush1.bf16.msra.mxu0 %v9233_v24  ;;  %v9297_v24 = vld [vmem:[#allocation4 + $0x940] ss:$8 sps:$4 sm:$0xff]  }
 0x772   :  { %3686 = vmatprep.subr.bf16.mxu0 %v9238_v44  ;;  %v9302_v44 = vld [vmem:[#allocation4 + $0x954] ss:$8 sps:$4 sm:$0xff]  }
 0x775   :  { %3687 = vmatpush1.bf16.msra.mxu0 %v9236_v45  ;;  %v9300_v45 = vld [vmem:[#allocation4 + $0x950] ss:$8 sps:$4 sm:$0xff]  }
 0x776   :  { %3688 = vmatprep.subr.bf16.mxu0 %v9242_v3  ;;  %v9305_v3 = vld [vmem:[#allocation4 + $0x964] ss:$8 sps:$4 sm:$0xff]  }
 0x779   :  { %3689 = vmatpush1.bf16.msra.mxu0 %v9240_v49  ;;  %v9303_v49 = vld [vmem:[#allocation4 + $0x960] ss:$8 sps:$4 sm:$0xff]  }
 0x77a   :  { %3690 = vmatprep.subr.bf16.mxu0 %v9245_v55 }
 0x77d   :  { %3691 = vmatpush1.bf16.msra.mxu0 %v9243_v6  ;;  %v9308_v6 = vld [vmem:[#allocation4 + $0x974] ss:$8 sps:$4 sm:$0xff]  }
 0x77e   :  { %3692 = vmatprep.subr.bf16.mxu0 %v9248_v7 }
 0x781   :  { %3693 = vmatpush1.bf16.msra.mxu0 %v9246_v9 }
 0x782   :  { %3694 = vmatprep.subr.bf16.mxu0 %v9251_v51 }
 0x785   :  { %3695 = vmatpush1.bf16.msra.mxu0 %v9249_v5 }
 0x786   :  { %3696 = vmatprep.subr.bf16.mxu0 %v9254_v37  ;;  %v9306_v37 = vld [vmem:[#allocation4 + $0x970] ss:$8 sps:$4 sm:$0xff]  }
 0x789   :  { %3697 = vmatpush1.bf16.msra.mxu0 %v9252_v2 }
 0x78a   :  { %3698 = vmatprep.subr.bf16.mxu0 %v9257_v62  ;;  %v9309_v62 = vld [vmem:[#allocation4 + $0xaa0] ss:$8 sps:$4 sm:$0xff]  }
 0x78d   :  { %3699 = vmatpush1.bf16.msra.mxu0 %v9255_v63  ;;  %v9311_v63 = vld [vmem:[#allocation4 + $0xaa4] ss:$8 sps:$4 sm:$0xff]  }
 0x78e   :  { %3700 = vmatprep.subr.bf16.mxu0 %v9260_v28  ;;  %v9314_v28 = vld [vmem:[#allocation4 + $0xab4] ss:$8 sps:$4 sm:$0xff]  }
 0x791   :  { %3701 = vmatpush1.bf16.msra.mxu0 %v9258_v36  ;;  %v9312_v36 = vld [vmem:[#allocation4 + $0xab0] ss:$8 sps:$4 sm:$0xff]  }
 0x792   :  { %3873 = vmatprep.subr.bf16.mxu0 %v9263_v31  ;;  %v9317_v31 = vld [vmem:[#allocation4 + $0xac4] ss:$8 sps:$4 sm:$0xff]  }
 0x81f   :  { %v10561_v15 = vpop.f32.mrb[56].mxu0  ;;  %v10567_v30 = vpop.f32.mrb[72].mxu1 }
 0x820   :  { %v3414_v42 = vpop.f32.mrb[57].mxu0  ;;  %v10569_v33 = vpop.f32.mrb[73].mxu1 }
 0x821   :  { %v10563_v10 = vpop.f32.mrb[58].mxu0  ;;  %v10571_v27 = vpop.f32.mrb[74].mxu1 }
 0x822   :  { %v3421_v23 = vpack.c.bf16 %v10563_v10, %v10561_v15  ;;  %v3418_v61 = vpop.f32.mrb[59].mxu0  ;;  %v4001_v41 = vpack.c.bf16 %v10571_v27, %v10567_v30  ;;  %v10575_v19 = vpop.f32.mrb[75].mxu1  ;;  %v4505_v10 = vld [vmem:[%s11182_s4 + $0x110] sm:$0xff]  ;;  %v9372_v27 = vld [vmem:[#allocation4 + $0xc00] ss:$8 sps:$4 sm:$0xff]  }
 0x823   :  { %v3422_v53 = vpack.c.bf16 %v3418_v61, %v3414_v42  ;;  %v4002_v39 = vpack.c.bf16 %v10575_v19, %v10569_v33  ;;  %v4520_v42 = vld [vmem:[%s11182_s4 + $0x188] sm:$0xff]  ;;  %v4521_v61 = vld [vmem:[%s11182_s4 + $0x190] sm:$0xff]  ;;  %v4506_v33 = vld [vmem:[%s11182_s4 + $0x118] sm:$0xff] }
 0x824   :  { %v10606_v15 = vpack.c.bf16 %v4521_v61, %v4520_v42  ;;  %v4507_v19 = vld [vmem:[%s11182_s4 + $0x120] sm:$0xff]  ;;  %v9357_v61 = vld [vmem:[#allocation4 + $0xbb0] ss:$8 sps:$4 sm:$0xff]  }
 0x825   :  { %v9359_v42 = vld [vmem:[#allocation4 + $0xbb4] ss:$8 sps:$4 sm:$0xff]   ;;  %v9374_v30 = vld [vmem:[#allocation4 + $0xc04] ss:$8 sps:$4 sm:$0xff]  }
 0x826   :  { %8441 = vmatprep.subr.bf16.mxu1 %v10606_v15 }
 0x827   :  { %v3499_v47 = vpop.f32.mrb[60].mxu0  ;;  %v10579_v55 = vpop.f32.mrb[76].mxu1 }
 0x828   :  { %v3501_v1 = vpop.f32.mrb[61].mxu0  ;;  %v10581_v7 = vpop.f32.mrb[77].mxu1 }
 0x829   :  { %v3503_v14 = vpop.f32.mrb[62].mxu0  ;;  %v10583_v9 = vpop.f32.mrb[78].mxu1 }
 0x82a   :  { %v3508_v40 = vpack.c.bf16 %v3503_v14, %v3499_v47  ;;  %v3505_v59 = vpop.f32.mrb[63].mxu0  ;;  %v4295_v51 = vpack.c.bf16 %v10583_v9, %v10579_v55  ;;  %v10587_v5 = vpop.f32.mrb[79].mxu1  ;;  %v4523_v47 = vld [vmem:[%s11182_s4 + $0x1a0] sm:$0xff]  ;;  %v4513_v55 = vld [vmem:[%s11182_s4 + $0x150] sm:$0xff] }
 0x82b   :  { %v3509_v52 = vpack.c.bf16 %v3505_v59, %v3501_v1  ;;  %v4296_v2 = vpack.c.bf16 %v10587_v5, %v10581_v7  ;;  %v10635_v59 = vpack.c.bf16 %v4507_v19, %v4506_v33  ;;  %v9368_v33 = vld [vmem:[#allocation4 + $0xbe4] ss:$8 sps:$4 sm:$0xff]   ;;  %v9366_v19 = vld [vmem:[#allocation4 + $0xbe0] ss:$8 sps:$4 sm:$0xff]   ;;  %v9375_v7 = vld [vmem:[#allocation4 + $0xc10] ss:$8 sps:$4 sm:$0xff]  }
 0x82c   :  { %v9380_v5 = vld [vmem:[#allocation4 + $0xc24] ss:$8 sps:$4 sm:$0xff]  }
 0x82d   :  { %3702 = vmatprep.mubr.bf16.mxu0 %v3509_v52  ;;  %v9315_v52 = vld [vmem:[#allocation4 + $0xac0] ss:$8 sps:$4 sm:$0xff]  }
 0x82e   :  { %3703 = vmatmul.mubr.bf16.vlgmr.msra.gmra.mrb[64].mxu0 %v3508_v40  ;;  %v4525_v40 = vld [vmem:[%s11182_s4 + $0x1b0] sm:$0xff] }
 0x82f   :  { %3874 = vmatpush1.bf16.msra.mxu0 %v9261_v4  ;;  %3905 = vmatprep.mubr.bf16.mxu0 %v3422_v53  ;;  %v4504_v53 = vld [vmem:[%s11182_s4 + $0x108] sm:$0xff] }
 0x830   :  { %3875 = vmatprep.subr.bf16.mxu0 %v9266_v43  ;;  %v10617_v1 = vpack.c.bf16 %v4505_v10, %v4504_v53  ;;  %v4508_v43 = vld [vmem:[%s11182_s4 + $0x128] sm:$0xff] }
 0x831   :  { %v9362_v53 = vld [vmem:[#allocation4 + $0xbc4] ss:$8 sps:$4 sm:$0xff]   ;;  %v9360_v10 = vld [vmem:[#allocation4 + $0xbc0] ss:$8 sps:$4 sm:$0xff]  }
 0x832   :  { %8443 = vmatpush3.bf16.msra.mxu1 %v10617_v1 }
 0x833   :  { %3876 = vmatpush1.bf16.msra.mxu0 %v9264_v8  ;;  %v4509_v8 = vld [vmem:[%s11182_s4 + $0x130] sm:$0xff] }
 0x834   :  { %3877 = vmatprep.subr.bf16.mxu0 %v9269_v34  ;;  %v9320_v34 = vld [vmem:[#allocation4 + $0xad4] ss:$8 sps:$4 sm:$0xff]  }
 0x837   :  { %3878 = vmatpush1.bf16.msra.mxu0 %v9267_v50  ;;  %v4526_v50 = vld [vmem:[%s11182_s4 + $0x1b8] sm:$0xff] }
 0x838   :  { %3879 = vmatprep.subr.bf16.mxu0 %v9272_v38  ;;  %v4527_v38 = vld [vmem:[%s11182_s4 + $0x1c0] sm:$0xff] }
 0x83b   :  { %3880 = vmatpush1.bf16.msra.mxu0 %v9270_v21  ;;  %v10653_v21 = vpack.c.bf16 %v4509_v8, %v4508_v43  ;;  %v9381_v43 = vld [vmem:[#allocation4 + $0xc30] ss:$8 sps:$4 sm:$0xff]   ;;  %v9386_v8 = vld [vmem:[#allocation4 + $0xc44] ss:$8 sps:$4 sm:$0xff]  }
 0x83c   :  { %3881 = vmatprep.subr.bf16.mxu0 %v9275_v22  ;;  %v9318_v22 = vld [vmem:[#allocation4 + $0xad0] ss:$8 sps:$4 sm:$0xff]  }
 0x83f   :  { %3882 = vmatpush1.bf16.msra.mxu0 %v9273_v58  ;;  %v10656_v58 = vpack.c.bf16 %v4527_v38, %v4526_v50  ;;  %v9389_v50 = vld [vmem:[#allocation4 + $0xc54] ss:$8 sps:$4 sm:$0xff]   ;;  %v9387_v38 = vld [vmem:[#allocation4 + $0xc50] ss:$8 sps:$4 sm:$0xff]  }
 0x840   :  { %3883 = vmatprep.subr.bf16.mxu0 %v9278_v48  ;;  %v4510_v48 = vld [vmem:[%s11182_s4 + $0x138] sm:$0xff] }
 0x843   :  { %3884 = vmatpush1.bf16.msra.mxu0 %v9276_v54  ;;  %v4511_v54 = vld [vmem:[%s11182_s4 + $0x140] sm:$0xff] }
 0x844   :  { %3885 = vmatprep.subr.bf16.mxu0 %v9281_v17  ;;  %v9323_v17 = vld [vmem:[#allocation4 + $0xae4] ss:$8 sps:$4 sm:$0xff]  }
 0x847   :  { %3886 = vmatpush1.bf16.msra.mxu0 %v9279_v13  ;;  %v10665_v13 = vpack.c.bf16 %v4511_v54, %v4510_v48  ;;  %v9390_v48 = vld [vmem:[#allocation4 + $0xc60] ss:$8 sps:$4 sm:$0xff]   ;;  %v9395_v54 = vld [vmem:[#allocation4 + $0xc74] ss:$8 sps:$4 sm:$0xff]  }
 0x848   :  { %3887 = vmatprep.subr.bf16.mxu0 %v9284_v26  ;;  %v9321_v26 = vld [vmem:[#allocation4 + $0xae0] ss:$8 sps:$4 sm:$0xff]  }
 0x84b   :  { %3888 = vmatpush1.bf16.msra.mxu0 %v9282_v29  ;;  %v9326_v29 = vld [vmem:[#allocation4 + $0xaf4] ss:$8 sps:$4 sm:$0xff]  }
 0x84c   :  { %3889 = vmatprep.subr.bf16.mxu0 %v9287_v20  ;;  %v9324_v20 = vld [vmem:[#allocation4 + $0xaf0] ss:$8 sps:$4 sm:$0xff]  }
 0x84f   :  { %3890 = vmatpush1.bf16.msra.mxu0 %v9285_v16  ;;  %v9329_v16 = vld [vmem:[#allocation4 + $0xb04] ss:$8 sps:$4 sm:$0xff]  }
 0x850   :  { %3891 = vmatprep.subr.bf16.mxu0 %v9290_v11  ;;  %v9327_v11 = vld [vmem:[#allocation4 + $0xb00] ss:$8 sps:$4 sm:$0xff]  }
 0x853   :  { %3892 = vmatpush1.bf16.msra.mxu0 %v9288_v12  ;;  %v9332_v12 = vld [vmem:[#allocation4 + $0xb14] ss:$8 sps:$4 sm:$0xff]  }
 0x854   :  { %3893 = vmatprep.subr.bf16.mxu0 %v9293_v56  ;;  %v9330_v56 = vld [vmem:[#allocation4 + $0xb10] ss:$8 sps:$4 sm:$0xff]  }
 0x857   :  { %3894 = vmatpush1.bf16.msra.mxu0 %v9291_v57  ;;  %v9335_v57 = vld [vmem:[#allocation4 + $0xb24] ss:$8 sps:$4 sm:$0xff]  }
 0x858   :  { %3895 = vmatprep.subr.bf16.mxu0 %v9296_v35  ;;  %v9333_v35 = vld [vmem:[#allocation4 + $0xb20] ss:$8 sps:$4 sm:$0xff]  }
 0x85b   :  { %3896 = vmatpush1.bf16.msra.mxu0 %v9294_v46  ;;  %v9338_v46 = vld [vmem:[#allocation4 + $0xb34] ss:$8 sps:$4 sm:$0xff]  }
 0x85c   :  { %3897 = vmatprep.subr.bf16.mxu0 %v9299_v18  ;;  %v9336_v18 = vld [vmem:[#allocation4 + $0xb30] ss:$8 sps:$4 sm:$0xff]  }
 0x85f   :  { %3898 = vmatpush1.bf16.msra.mxu0 %v9297_v24  ;;  %v9341_v24 = vld [vmem:[#allocation4 + $0xb44] ss:$8 sps:$4 sm:$0xff]  }
 0x860   :  { %3899 = vmatprep.subr.bf16.mxu0 %v9302_v44  ;;  %v9339_v44 = vld [vmem:[#allocation4 + $0xb40] ss:$8 sps:$4 sm:$0xff]  }
 0x863   :  { %3900 = vmatpush1.bf16.msra.mxu0 %v9300_v45  ;;  %v9344_v45 = vld [vmem:[#allocation4 + $0xb54] ss:$8 sps:$4 sm:$0xff]  }
 0x864   :  { %3901 = vmatprep.subr.bf16.mxu0 %v9305_v3  ;;  %v9342_v3 = vld [vmem:[#allocation4 + $0xb50] ss:$8 sps:$4 sm:$0xff]  }
 0x867   :  { %3902 = vmatpush1.bf16.msra.mxu0 %v9303_v49  ;;  %v9347_v49 = vld [vmem:[#allocation4 + $0xb64] ss:$8 sps:$4 sm:$0xff]  }
 0x868   :  { %3903 = vmatprep.subr.bf16.mxu0 %v9308_v6  ;;  %v9345_v6 = vld [vmem:[#allocation4 + $0xb60] ss:$8 sps:$4 sm:$0xff]  }
 0x86b   :  { %3904 = vmatpush1.bf16.msra.mxu0 %v9306_v37  ;;  %v9350_v37 = vld [vmem:[#allocation4 + $0xb74] ss:$8 sps:$4 sm:$0xff]  }
 0x86c   :  { %4163 = vmatprep.subr.bf16.mxu0 %v9311_v63  ;;  %v9348_v63 = vld [vmem:[#allocation4 + $0xb70] ss:$8 sps:$4 sm:$0xff]  }
 0x86e   :  { %3906 = vmatmul.mubr.bf16.vlgmr.msra.gmra.mrb[64].mxu0 %v3421_v23  ;;  %v4522_v23 = vld [vmem:[%s11182_s4 + $0x198] sm:$0xff] }
 0x86f   :  { %4164 = vmatpush1.bf16.msra.mxu0 %v9309_v62  ;;  %4195 = vmatprep.mubr.bf16.mxu0 %v4002_v39  ;;  %v10619_v14 = vpack.c.bf16 %v4523_v47, %v4522_v23  ;;  %v4524_v39 = vld [vmem:[%s11182_s4 + $0x1a8] sm:$0xff]  ;;  %v9365_v23 = vld [vmem:[#allocation4 + $0xbd4] ss:$8 sps:$4 sm:$0xff]   ;;  %v9363_v47 = vld [vmem:[#allocation4 + $0xbd0] ss:$8 sps:$4 sm:$0xff]  }
 0x870   :  { %4165 = vmatprep.subr.bf16.mxu0 %v9314_v28  ;;  %v10638_v4 = vpack.c.bf16 %v4525_v40, %v4524_v39  ;;  %v9353_v62 = vld [vmem:[#allocation4 + $0xb84] ss:$8 sps:$4 sm:$0xff]   ;;  %v9351_v28 = vld [vmem:[#allocation4 + $0xb80] ss:$8 sps:$4 sm:$0xff]   ;;  %v9371_v39 = vld [vmem:[#allocation4 + $0xbf4] ss:$8 sps:$4 sm:$0xff]  }
 0x871   :  { %8445 = vmatprep.subr.bf16.mxu1 %v10619_v14  ;;  %v9369_v40 = vld [vmem:[#allocation4 + $0xbf0] ss:$8 sps:$4 sm:$0xff]  }
 0x872   :  { %8447 = vmatpush3.bf16.msra.mxu1 %v10635_v59 }
 0x873   :  { %4166 = vmatpush1.bf16.msra.mxu0 %v9312_v36  ;;  %8449 = vmatprep.subr.bf16.mxu1 %v10638_v4  ;;  %v9356_v36 = vld [vmem:[#allocation4 + $0xb94] ss:$8 sps:$4 sm:$0xff]  }
 0x874   :  { %4167 = vmatprep.subr.bf16.mxu0 %v9317_v31  ;;  %v9354_v31 = vld [vmem:[#allocation4 + $0xb90] ss:$8 sps:$4 sm:$0xff]  }
 0x876   :  { %8451 = vmatpush3.bf16.msra.mxu1 %v10653_v21 }
 0x877   :  { %4168 = vmatpush1.bf16.msra.mxu0 %v9315_v52  ;;  %8453 = vmatprep.subr.bf16.mxu1 %v10656_v58  ;;  %v9383_v52 = vld [vmem:[#allocation4 + $0xc34] ss:$8 sps:$4 sm:$0xff]  }
 0x878   :  { %4169 = vmatprep.subr.bf16.mxu0 %v9320_v34  ;;  %v9384_v34 = vld [vmem:[#allocation4 + $0xc40] ss:$8 sps:$4 sm:$0xff]  }
 0x87a   :  { %8455 = vmatpush3.bf16.msra.mxu1 %v10665_v13 }
 0x87b   :  { %4170 = vmatpush1.bf16.msra.mxu0 %v9318_v22  ;;  %v9392_v22 = vld [vmem:[#allocation4 + $0xc64] ss:$8 sps:$4 sm:$0xff]  }
 0x87c   :  { %4171 = vmatprep.subr.bf16.mxu0 %v9323_v17  ;;  %v9393_v17 = vld [vmem:[#allocation4 + $0xc70] ss:$8 sps:$4 sm:$0xff]  }
 0x87f   :  { %4172 = vmatpush1.bf16.msra.mxu0 %v9321_v26  ;;  %v9398_v26 = vld [vmem:[#allocation4 + $0xc84] ss:$8 sps:$4 sm:$0xff]  }
 0x880   :  { %4173 = vmatprep.subr.bf16.mxu0 %v9326_v29  ;;  %v9396_v29 = vld [vmem:[#allocation4 + $0xc80] ss:$8 sps:$4 sm:$0xff]  }
 0x883   :  { %4174 = vmatpush1.bf16.msra.mxu0 %v9324_v20  ;;  %v9401_v20 = vld [vmem:[#allocation4 + $0xc94] ss:$8 sps:$4 sm:$0xff]  }
 0x884   :  { %4175 = vmatprep.subr.bf16.mxu0 %v9329_v16  ;;  %v9399_v16 = vld [vmem:[#allocation4 + $0xc90] ss:$8 sps:$4 sm:$0xff]  }
 0x887   :  { %4176 = vmatpush1.bf16.msra.mxu0 %v9327_v11  ;;  %v9404_v11 = vld [vmem:[#allocation4 + $0xca4] ss:$8 sps:$4 sm:$0xff]  }
 0x888   :  { %4177 = vmatprep.subr.bf16.mxu0 %v9332_v12  ;;  %v9402_v12 = vld [vmem:[#allocation4 + $0xca0] ss:$8 sps:$4 sm:$0xff]  }
 0x88b   :  { %4178 = vmatpush1.bf16.msra.mxu0 %v9330_v56  ;;  %v4528_v56 = vld [vmem:[%s11182_s4 + $0x1c8] sm:$0xff] }
 0x88c   :  { %4179 = vmatprep.subr.bf16.mxu0 %v9335_v57  ;;  %v4529_v57 = vld [vmem:[%s11182_s4 + $0x1d0] sm:$0xff] }
 0x88f   :  { %4180 = vmatpush1.bf16.msra.mxu0 %v9333_v35  ;;  %v10685_v35 = vpack.c.bf16 %v4529_v57, %v4528_v56 }
 0x890   :  { %4181 = vmatprep.subr.bf16.mxu0 %v9338_v46  ;;  %v4512_v46 = vld [vmem:[%s11182_s4 + $0x148] sm:$0xff] }
 0x891   :  { %v10693_v9 = vpack.c.bf16 %v4513_v55, %v4512_v46  ;;  %8457 = vmatprep.subr.bf16.mxu1 %v10685_v35  ;;  %v4538_v55 = vld [vmem:[#allocation6 + $0x30] sm:$0xff] }
 0x893   :  { %4182 = vmatpush1.bf16.msra.mxu0 %v9336_v18  ;;  %8459 = vmatpush3.bf16.msra.mxu1 %v10693_v9  ;;  %v4531_v18 = vld [vmem:[%s11182_s4 + $0x1e0] sm:$0xff] }
 0x894   :  { %4183 = vmatprep.subr.bf16.mxu0 %v9341_v24 }
 0x897   :  { %4184 = vmatpush1.bf16.msra.mxu0 %v9339_v44  ;;  %v4514_v44 = vld [vmem:[%s11182_s4 + $0x158] sm:$0xff] }
 0x898   :  { %4185 = vmatprep.subr.bf16.mxu0 %v9344_v45  ;;  %v4515_v45 = vld [vmem:[%s11182_s4 + $0x160] sm:$0xff] }
 0x89b   :  { %4186 = vmatpush1.bf16.msra.mxu0 %v9342_v3  ;;  %v10711_v3 = vpack.c.bf16 %v4515_v45, %v4514_v44  ;;  %v4540_v44 = vld [vmem:[#allocation6 + $0x40] sm:$0xff]  ;;  %v4542_v45 = vld [vmem:[#allocation6 + $0x50] sm:$0xff] }
 0x89c   :  { %4187 = vmatprep.subr.bf16.mxu0 %v9347_v49  ;;  %v4532_v49 = vld [vmem:[%s11182_s4 + $0x1e8] sm:$0xff] }
 0x89f   :  { %4188 = vmatpush1.bf16.msra.mxu0 %v9345_v6  ;;  %v4533_v6 = vld [vmem:[%s11182_s4 + $0x1f0] sm:$0xff] }
 0x8a0   :  { %4189 = vmatprep.subr.bf16.mxu0 %v9350_v37  ;;  %v8464_v37 = vpack.c.bf16 %v4533_v6, %v4532_v49 }
 0x8a3   :  { %4190 = vmatpush1.bf16.msra.mxu0 %v9348_v63  ;;  %v4516_v63 = vld [vmem:[%s11182_s4 + $0x168] sm:$0xff] }
 0x8a4   :  { %4191 = vmatprep.subr.bf16.mxu0 %v9353_v62  ;;  %v4517_v62 = vld [vmem:[%s11182_s4 + $0x170] sm:$0xff] }
 0x8a7   :  { %4192 = vmatpush1.bf16.msra.mxu0 %v9351_v28  ;;  %v8466_v28 = vpack.c.bf16 %v4517_v62, %v4516_v63 }
 0x8a8   :  { %4193 = vmatprep.subr.bf16.mxu0 %v9356_v36  ;;  %v4534_v36 = vld [vmem:[%s11182_s4 + $0x1f8] sm:$0xff] }
 0x8ab   :  { %4194 = vmatpush1.bf16.msra.mxu0 %v9354_v31  ;;  %v4535_v31 = vld [vmem:[%s11182_s4 + $0x200] sm:$0xff] }
 0x8ac   :  { %4457 = vmatprep.subr.bf16.mxu0 %v9359_v42  ;;  %v4518_v42 = vld [vmem:[%s11182_s4 + $0x178] sm:$0xff] }
 0x8ae   :  { %4196 = vmatmul.mubr.bf16.vlgmr.msra.gmra.mrb[64].mxu0 %v4001_v41  ;;  %v9377_v41 = vld [vmem:[#allocation4 + $0xc14] ss:$8 sps:$4 sm:$0xff]  }
 0x8af   :  { %4458 = vmatpush1.bf16.msra.mxu0 %v9357_v61  ;;  %4489 = vmatprep.mubr.bf16.mxu0 %v4296_v2  ;;  %v9378_v2 = vld [vmem:[#allocation4 + $0xc20] ss:$8 sps:$4 sm:$0xff]   ;;  %v8468_v61 = vpack.c.bf16 %v4535_v31, %v4534_v36 }
 0x8b0   :  { %4459 = vmatprep.subr.bf16.mxu0 %v9362_v53  ;;  %v4519_v53 = vld [vmem:[%s11182_s4 + $0x180] sm:$0xff] }
 0x8b3   :  { %4460 = vmatpush1.bf16.msra.mxu0 %v9360_v10  ;;  %v8470_v10 = vpack.c.bf16 %v4519_v53, %v4518_v42  ;;  %v4544_v53 = vld [vmem:[%s11182_s4 + $0x208] sm:$0x3] }
 0x8b4   :  { %4461 = vmatprep.subr.bf16.mxu0 %v9365_v23 }
 0x8b7   :  { %4462 = vmatpush1.bf16.msra.mxu0 %v9363_v47 }
 0x8b8   :  { %4463 = vmatprep.subr.bf16.mxu0 %v9368_v33 }
 0x8bb   :  { %4464 = vmatpush1.bf16.msra.mxu0 %v9366_v19 }
 0x8bc   :  { %4465 = vmatprep.subr.bf16.mxu0 %v9371_v39 }
 0x8bf   :  { %4466 = vmatpush1.bf16.msra.mxu0 %v9369_v40 }
 0x8c0   :  { %4467 = vmatprep.subr.bf16.mxu0 %v9374_v30 }
 0x8c3   :  { %4468 = vmatpush1.bf16.msra.mxu0 %v9372_v27 }
 0x8c4   :  { %4469 = vmatprep.subr.bf16.mxu0 %v9377_v41 }
 0x8c7   :  { %4470 = vmatpush1.bf16.msra.mxu0 %v9375_v7 }
 0x8c8   :  { %4471 = vmatprep.subr.bf16.mxu0 %v9380_v5 }
 0x8cb   :  { %4472 = vmatpush1.bf16.msra.mxu0 %v9378_v2 }
 0x8cc   :  { %4473 = vmatprep.subr.bf16.mxu0 %v9383_v52 }
 0x8cf   :  { %4474 = vmatpush1.bf16.msra.mxu0 %v9381_v43 }
 0x8d0   :  { %4475 = vmatprep.subr.bf16.mxu0 %v9386_v8 }
 0x8d3   :  { %4476 = vmatpush1.bf16.msra.mxu0 %v9384_v34 }
 0x8d4   :  { %4477 = vmatprep.subr.bf16.mxu0 %v9389_v50 }
 0x8d7   :  { %4478 = vmatpush1.bf16.msra.mxu0 %v9387_v38 }
 0x8d8   :  { %4479 = vmatprep.subr.bf16.mxu0 %v9392_v22 }
 0x8db   :  { %4480 = vmatpush1.bf16.msra.mxu0 %v9390_v48 }
 0x8dc   :  { %4481 = vmatprep.subr.bf16.mxu0 %v9395_v54 }
 0x8df   :  { %4482 = vmatpush1.bf16.msra.mxu0 %v9393_v17 }
 0x8e0   :  { %4483 = vmatprep.subr.bf16.mxu0 %v9398_v26 }
 0x8e3   :  { %4484 = vmatpush1.bf16.msra.mxu0 %v9396_v29 }
 0x8e4   :  { %4485 = vmatprep.subr.bf16.mxu0 %v9401_v20 }
 0x8e7   :  { %4486 = vmatpush1.bf16.msra.mxu0 %v9399_v16 }
 0x8e8   :  { %4487 = vmatprep.subr.bf16.mxu0 %v9404_v11 }
 0x8eb   :  { %4488 = vmatpush1.bf16.msra.mxu0 %v9402_v12 }
 0x8ee   :  { %4490 = vmatmul.mubr.bf16.vlgmr.msra.gmra.mrb[64].mxu0 %v4295_v51  ;;  %v4530_v51 = vld [vmem:[%s11182_s4 + $0x1d8] sm:$0xff] }
 0x8ef   :  { %4795 = vmatprep.mubr.f32.mxu0 %v9747_v25  ;;  %v10703_v24 = vpack.c.bf16 %v4531_v18, %v4530_v51  ;;  %v4543_v51 = vld [vmem:[#allocation6 + $0x58] sm:$0xff] }
 0x8f1   :  { %8461 = vmatprep.subr.bf16.mxu1 %v10703_v24 }
 0x8f2   :  { %8463 = vmatpush3.bf16.msra.mxu1 %v10711_v3 }
 0x8f3   :  { %8465 = vmatprep.subr.bf16.mxu1 %v8464_v37 }
 0x8f6   :  { %8467 = vmatpush3.bf16.msra.mxu1 %v8466_v28 }
 0x8f7   :  { %8469 = vmatprep.subr.bf16.mxu1 %v8468_v61 }
 0x8fa   :  { %8471 = vmatpush3.bf16.msra.mxu1 %v8470_v10 }
 0x8fb   :  { %8473 = vmatprep.subr.bf16.mxu1 %v10606_v15 }
 0x9c1   :  { %v10740_v23 = vpop.f32.mrb[64].mxu0 }
 0x9c2   :  { %v10742_v47 = vpop.f32.mrb[65].mxu0  ;;  %v4559_v19 = vmul.f32 %v10740_v23, %v10740_v23 }
 0x9c3   :  { %v10744_v33 = vpop.f32.mrb[66].mxu0  ;;  %v4560_v15 = vmul.f32 %v10742_v47, %v10742_v47 }
 0x9c4   :  { %v4545_v39 = vadd.f32 %v10744_v33, %v10740_v23  ;;  %v4561_v40 = vmul.f32 %v10744_v33, %v10744_v33  ;;  %v10752_v30 = vpop.f32.mrb[67].mxu0 }
 0x9c5   :  { %v4552_v27 = vadd.f32 %v10752_v30, %v10742_v47  ;;  %v4562_v41 = vmul.f32 %v10752_v30, %v10752_v30 }
 0x9c6   :  { %v4546_v7 = vrot.slane %v4545_v39, 4  ;;  %v4563_v5 = vadd.f32 %v4561_v40, %v4559_v19 }
 0x9c7   :  { %v4553_v2 = vrot.slane %v4552_v27, 4  ;;  %v4570_v52 = vadd.f32 %v4562_v41, %v4560_v15 }
 0x9c8   :  { %v4547_v43 = vadd.f32 %v4546_v7, %v4545_v39  ;;  %v4564_v57 = vrot.slane %v4563_v5, 4 }
 0x9c9   :  { %v4554_v8 = vadd.f32 %v4553_v2, %v4552_v27  ;;  %v4571_v34 = vrot.slane %v4570_v52, 4 }
 0x9ca   :  { %v4548_v50 = vrot.slane %v4547_v43, 2  ;;  %v4565_v46 = vadd.f32 %v4564_v57, %v4563_v5 }
 0x9cb   :  { %v4555_v38 = vrot.slane %v4554_v8, 2  ;;  %v4572_v22 = vadd.f32 %v4571_v34, %v4570_v52 }
 0x9cc   :  { %v4549_v48 = vadd.f32 %v4548_v50, %v4547_v43 }
 0x9cd   :  { %v4556_v54 = vadd.f32 %v4555_v38, %v4554_v8  ;;  %v4573_v17 = vrot.slane %v4572_v22, 2 }
 0x9ce   :  { %v4550_v26 = vrot.slane %v4549_v48, 1 }
 0x9cf   :  { %v4557_v29 = vrot.slane %v4556_v54, 1  ;;  %v4574_v20 = vadd.f32 %v4573_v17, %v4572_v22 }
 0x9d0   :  { %v4551_v12 = vadd.f32 %v4550_v26, %v4549_v48 }
 0x9d1   :  { %v4558_v16 = vadd.f32 %v4557_v29, %v4556_v54  ;;  %v4575_v11 = vrot.slane %v4574_v20, 1 }
 0x9d3   :  { %4641 = vmatprep.mubr.f32.mxu1 %v4558_v16  ;;  %v4576_v56 = vadd.f32 %v4575_v11, %v4574_v20 }
 0x9d4   :  { %4642 = vmatmul.mubr.f32.vlgmr.msra.gmra.mrb[80].mxu1 %v4551_v12 }
 0x9d5   :  { %8475 = vmatpush3.bf16.msra.mxu1 %v10617_v1  ;;  %4711 = vmatprep.mubr.f32.mxu1 %v4576_v56  ;;  %v4566_v1 = vrot.slane %v4565_v46, 2 }
 0x9d6   :  { %8477 = vmatprep.subr.bf16.mxu1 %v10619_v14 }
 0x9d7   :  { %v4567_v14 = vadd.f32 %v4566_v1, %v4565_v46  ;;  %v4911_v46 = vld [vmem:[#allocation4 + $0xdc0] sm:$0xf] }
 0x9d8   :  { %v5471_v1 = vld [vmem:[#allocation4 + $0xfe0] sm:$0xf] }
 0x9d9   :  { %8479 = vmatpush3.bf16.msra.mxu1 %v10635_v59  ;;  %v4568_v59 = vrot.slane %v4567_v14, 1 }
 0x9da   :  { %8481 = vmatprep.subr.bf16.mxu1 %v10638_v4 }
 0x9db   :  { %v4569_v4 = vadd.f32 %v4568_v59, %v4567_v14  ;;  %v9407_v14 = vld [vmem:[#allocation4 + $0xdd4] ss:$8 sps:$4 sm:$0xff]   ;;  %v4990_v59 = vld [vmem:[#allocation4 + $0xed0] sm:$0xf] }
 0x9dd   :  { %8483 = vmatpush3.bf16.msra.mxu1 %v10653_v21  ;;  %v4537_v21 = vld [vmem:[#allocation6 + $0x28] sm:$0xff] }
 0x9de   :  { %8485 = vmatprep.subr.bf16.mxu1 %v10656_v58  ;;  %v4539_v58 = vld [vmem:[#allocation6 + $0x38] sm:$0xff] }
 0x9e1   :  { %8487 = vmatpush3.bf16.msra.mxu1 %v10665_v13  ;;  %v4536_v13 = vld [vmem:[#allocation6 + $0x20] sm:$0xff] }
 0x9e2   :  { %8489 = vmatprep.subr.bf16.mxu1 %v10685_v35  ;;  %v8504_v35 = vpack.c.bf16 %v4539_v58, %v4537_v21  ;;  %v8506_v18 = vpack.c.bf16 %v4538_v55, %v4536_v13  ;;  %v5753_v21 = vld [vmem:[#allocation4 + $0x10f0] sm:$0xf]  ;;  %v9410_v58 = vld [vmem:[#allocation4 + $0xde4] ss:$8 sps:$4 sm:$0xff]   ;;  %v9408_v13 = vld [vmem:[#allocation4 + $0xde0] ss:$8 sps:$4 sm:$0xff]  }
 0x9e3   :  { %v9411_v55 = vld [vmem:[#allocation4 + $0xdf0] ss:$8 sps:$4 sm:$0xff]  }
 0x9e4   :  { %8505 = vmatprep.subr.bf16.mxu0 %v8504_v35 }
 0x9e5   :  { %8491 = vmatpush3.bf16.msra.mxu1 %v10693_v9  ;;  %v4541_v9 = vld [vmem:[#allocation6 + $0x48] sm:$0xff]  ;;  %8507 = vmatpush1.bf16.msra.mxu0 %v8506_v18 }
 0x9e6   :  { %8493 = vmatprep.subr.bf16.mxu1 %v10703_v24  ;;  %v8508_v24 = vpack.c.bf16 %v4543_v51, %v4541_v9  ;;  %v9416_v9 = vld [vmem:[#allocation4 + $0xe04] ss:$8 sps:$4 sm:$0xff]   ;;  %v9414_v51 = vld [vmem:[#allocation4 + $0xe00] ss:$8 sps:$4 sm:$0xff]  }
 0x9e8   :  { %8509 = vmatprep.subr.bf16.mxu0 %v8508_v24 }
 0x9e9   :  { %8495 = vmatpush3.bf16.msra.mxu1 %v10711_v3  ;;  %v8510_v3 = vpack.c.bf16 %v4542_v45, %v4540_v44  ;;  %v9422_v44 = vld [vmem:[#allocation4 + $0xe24] ss:$8 sps:$4 sm:$0xff]   ;;  %v9420_v45 = vld [vmem:[#allocation4 + $0xe20] ss:$8 sps:$4 sm:$0xff]  }
 0x9ea   :  { %8497 = vmatprep.subr.bf16.mxu1 %v8464_v37 }
 0x9eb   :  { %8511 = vmatpush1.bf16.msra.mxu0 %v8510_v3 }
 0x9ed   :  { %8499 = vmatpush3.bf16.msra.mxu1 %v8466_v28 }
 0x9ee   :  { %8501 = vmatprep.subr.bf16.mxu1 %v8468_v61 }
 0x9f1   :  { %8503 = vmatpush3.bf16.msra.mxu1 %v8470_v10 }
 0x9f2   :  { %8513 = vmatprep.subr.bf16.mxu1 %v8504_v35  ;;  %v9413_v35 = vld [vmem:[#allocation4 + $0xdf4] ss:$8 sps:$4 sm:$0xff]  }
 0x9f4   :  { %4712 = vmatmul.mubr.f32.vlgmr.msra.gmra.mrb[82].mxu1 %v4569_v4  ;;  %v9405_v4 = vld [vmem:[#allocation4 + $0xdd0] ss:$8 sps:$4 sm:$0xff]  }
 0x9f5   :  { %4870 = vmatprep.mubr.f32.mxu1 %v9747_v25  ;;  %8515 = vmatpush1.bf16.msra.mxu1 %v8506_v18  ;;  %v9419_v18 = vld [vmem:[#allocation4 + $0xe14] ss:$8 sps:$4 sm:$0xff]  }
 0x9f6   :  { %8517 = vmatprep.subr.bf16.mxu1 %v8508_v24  ;;  %v9417_v24 = vld [vmem:[#allocation4 + $0xe10] ss:$8 sps:$4 sm:$0xff]  }
 0x9f9   :  { %8519 = vmatpush1.bf16.msra.mxu1 %v8510_v3  ;;  %v9425_v3 = vld [vmem:[#allocation4 + $0xe34] ss:$8 sps:$4 sm:$0xff]  }
 0xaa7   :  { %v8167_v49 = vpop.f32.mrb[80].mxu1 }
 0xaa8   :  { %v8168_v6 = vpop.f32.mrb[81].mxu1 }
 0xaa9   :  { %v8169_v37 = vadd.f32 %v8168_v6, %v8167_v49  ;;  %v9423_v49 = vld [vmem:[#allocation4 + $0xe30] ss:$8 sps:$4 sm:$0xff]   ;;  %v9428_v6 = vld [vmem:[#allocation4 + $0xe44] ss:$8 sps:$4 sm:$0xff]  }
 0xaab   :  { %v4717_v28 = vmul.f32 %v8169_v37, %v8169_v37 }
 0xac7   :  { %v8202_v63 = vpop.f32.mrb[82].mxu1 }
 0xac8   :  { %v8203_v62 = vpop.f32.mrb[83].mxu1 }
 0xac9   :  { %v8204_v36 = vadd.f32 %v8203_v62, %v8202_v63  ;;  %v9431_v63 = vld [vmem:[#allocation4 + $0xe54] ss:$8 sps:$4 sm:$0xff]   ;;  %v9429_v62 = vld [vmem:[#allocation4 + $0xe50] ss:$8 sps:$4 sm:$0xff]  }
 0xacb   :  { %v4718_v31 = vsub.f32 %v8204_v36, %v4717_v28  ;;  %v9434_v28 = vld [vmem:[#allocation4 + $0xe64] ss:$8 sps:$4 sm:$0xff]   ;;  %v9432_v36 = vld [vmem:[#allocation4 + $0xe60] ss:$8 sps:$4 sm:$0xff]  }
 0xacd   :  { %v4719_v42 = vmax.f32 %v4718_v31, 0.0  ;;  %v9437_v31 = vld [vmem:[#allocation4 + $0xe74] ss:$8 sps:$4 sm:$0xff]  }
 0xacf   :  { %v4720_v61 = vadd.f32 1e-05, %v4719_v42  ;;  %v9435_v42 = vld [vmem:[#allocation4 + $0xe70] ss:$8 sps:$4 sm:$0xff]  }
 0xad1   :  { %9659 = vrsqrt.f32 %v4720_v61  ;;  %v9440_v61 = vld [vmem:[#allocation4 + $0xe84] ss:$8 sps:$4 sm:$0xff]  }
 0xadb   :  { %v9660_v10 = vpop.eup %9659 }
 0xadc   :  { %v4722_v19 = vmul.f32 %v9660_v10, %v4544_v53  ;;  %v9443_v10 = vld [vmem:[#allocation4 + $0xe94] ss:$8 sps:$4 sm:$0xff]  }
 0xade   :  { %v4723_v39 = vmul.f32 %v8169_v37, %v4722_v19  ;;  %7881 = vmatmul.mubr.msk.f32.vlgmr.msra.gmra.mrb[68].mxu0 %vm3374_vm2, %v4722_v19  ;;  %v9426_v37 = vld [vmem:[#allocation4 + $0xe40] ss:$8 sps:$4 sm:$0xff]   ;;  %v9441_v19 = vld [vmem:[#allocation4 + $0xe90] ss:$8 sps:$4 sm:$0xff]  }
 0xadf   :  { %5539 = vmatprep.mubr.bf16.mxu0 %v9746_v0 }
 0xae0   :  { %v4725_v40 = vrot.slane %v4723_v39, 7  ;;  %v9446_v39 = vld [vmem:[#allocation4 + $0xea4] ss:$8 sps:$4 sm:$0xff]  }
 0xae2   :  { %v4727_v15 = vsub.f32 %v4544_v53, %v4725_v40  ;;  %v9438_v53 = vld [vmem:[#allocation4 + $0xe80] ss:$8 sps:$4 sm:$0xff]  }
 0xae3   :  { %v9444_v40 = vld [vmem:[#allocation4 + $0xea0] ss:$8 sps:$4 sm:$0xff]  }
 0xae4   :  { %v4803_v27 = vrot.slane %v4727_v15, 1  ;;  %v9449_v15 = vld [vmem:[#allocation4 + $0xeb4] ss:$8 sps:$4 sm:$0xff]  }
 0xae6   :  { %7882 = vmatmul.mubr.msk.f32.vlgmr.msra.gmra.mrb[84].mxu1 %vm3374_vm2, %v4803_v27  ;;  %v9447_v27 = vld [vmem:[#allocation4 + $0xeb0] ss:$8 sps:$4 sm:$0xff]  }
 0xae7   :  { %4979 = vmatprep.mubr.bf16.mxu1 %v9746_v0 }
 0xbb1   :  { %v4797_v41 = vpop.f32.mrb[68].mxu0 }
 0xbb2   :  { %v4880_v7 = vrot.slane %v4797_v41, %v10541_v32  ;;  %v4799_v5 = vpop.f32.mrb[69].mxu0  ;;  %v9452_v41 = vld [vmem:[#allocation4 + $0xec4] ss:$8 sps:$4 sm:$0xff]  }
 0xbb3   :  { %v4884_v2 = vrot.slane %v4799_v5, %v10541_v32  ;;  %v9455_v5 = vld [vmem:[#allocation4 + $0xcc4] ss:$8 sps:$4 sm:$0xff]  }
 0xbb4   :  { %v4885_v52 = vmul.f32 %v4880_v7, %v10740_v23  ;;  %v4887_v43 = vmul.f32 %v4880_v7, %v10744_v33  ;;  %v9450_v7 = vld [vmem:[#allocation4 + $0xec0] ss:$8 sps:$4 sm:$0xff]  }
 0xbb5   :  { %v4886_v8 = vmul.f32 %v4884_v2, %v10742_v47  ;;  %v4888_v34 = vmul.f32 %v4884_v2, %v10752_v30 }
 0xbb9   :  { %v4872_v50 = vpop.f32.mrb[84].mxu1 }
 0xbba   :  { %v4892_v38 = vrot.slane %v4872_v50, %v10541_v32  ;;  %v4874_v22 = vpop.f32.mrb[85].mxu1 }
 0xbbb   :  { %v4896_v48 = vrot.slane %v4874_v22, %v10541_v32 }
 0xbbc   :  { %v4897_v54 = vadd.f32 %v4892_v38, %v4885_v52  ;;  %v4899_v17 = vadd.f32 %v4892_v38, %v4887_v43 }
 0xbbd   :  { %v4898_v26 = vadd.f32 %v4896_v48, %v4886_v8  ;;  %v4900_v29 = vadd.f32 %v4896_v48, %v4888_v34 }
 0xbbe   :  { %v4901_v20 = vmul.f32 0.2, %v4897_v54  ;;  %v4903_v16 = vmul.f32 0.2, %v4899_v17 }
 0xbbf   :  { %v4902_v11 = vmul.f32 0.2, %v4898_v26  ;;  %v4904_v23 = vmul.f32 0.2, %v4900_v29 }
 0xbc0   :  { %v4905_v12 = vmax.f32 %v4897_v54, %v4901_v20  ;;  %v4907_v33 = vmax.f32 %v4899_v17, %v4903_v16 }
 0xbc1   :  { %v4906_v56 = vmax.f32 %v4898_v26, %v4902_v11  ;;  %v4908_v47 = vmax.f32 %v4900_v29, %v4904_v23  ;;  %v9453_v29 = vld [vmem:[#allocation4 + $0xcc0] ss:$8 sps:$4 sm:$0xff]   ;;  %v9458_v11 = vld [vmem:[#allocation4 + $0xcd4] ss:$8 sps:$4 sm:$0xff]  }
 0xbc2   :  { %v4909_v57 = vpack.c.bf16 %v4907_v33, %v4905_v12  ;;  %v9456_v12 = vld [vmem:[#allocation4 + $0xcd0] ss:$8 sps:$4 sm:$0xff]   ;;  %v9461_v33 = vld [vmem:[#allocation4 + $0xce4] ss:$8 sps:$4 sm:$0xff]  }
 0xbc3   :  { %v4910_v30 = vpack.c.bf16 %v4908_v47, %v4906_v56  ;;  %v9459_v56 = vld [vmem:[#allocation4 + $0xce0] ss:$8 sps:$4 sm:$0xff]   ;;  %v9464_v47 = vld [vmem:[#allocation4 + $0xcf4] ss:$8 sps:$4 sm:$0xff]  }
 0xbc5   :  { %4947 = vmatprep.subr.bf16.mxu1 %v4910_v30  ;;  %5507 = vmatprep.subr.bf16.mxu0 %v4910_v30 }
 0xbc6   :  { %4948 = vmatpush1.bf16.msra.mxu1 %v4909_v57  ;;  %5508 = vmatpush1.bf16.msra.mxu0 %v4909_v57 }
 0xbc7   :  { %5026 = vmatprep.subr.bf16.mxu1 %v4910_v30  ;;  %5789 = vmatprep.subr.bf16.mxu0 %v4910_v30  ;;  %v9467_v30 = vld [vmem:[#allocation4 + $0xd04] ss:$8 sps:$4 sm:$0xff]  }
 0xbc9   :  { %7883 = vmatmul.mubr.msk.bf16.vlgmr.msra.gmra.mrb[88].mxu1 %vm3133_vm1, %v4911_v46  ;;  %7949 = vmatmul.mubr.msk.bf16.vlgmr.msra.gmra.mrb[72].mxu0 %vm3133_vm1, %v5471_v1  ;;  %v9465_v46 = vld [vmem:[#allocation4 + $0xd00] ss:$8 sps:$4 sm:$0xff]   ;;  %v9470_v1 = vld [vmem:[#allocation4 + $0xd14] ss:$8 sps:$4 sm:$0xff]  }
 0xbca   :  { %5027 = vmatpush1.bf16.msra.mxu1 %v4909_v57  ;;  %5790 = vmatpush1.bf16.msra.mxu0 %v4909_v57  ;;  %v9462_v57 = vld [vmem:[#allocation4 + $0xcf0] ss:$8 sps:$4 sm:$0xff]  }
 0xbcb   :  { %5058 = vmatprep.mubr.bf16.mxu1 %v9746_v0  ;;  %5229 = vmatprep.subr.bf16.mxu1 %v9407_v14  ;;  %v9468_v14 = vld [vmem:[#allocation4 + $0xd10] ss:$8 sps:$4 sm:$0xff]  }
 0xbcc   :  { %5821 = vmatprep.mubr.bf16.mxu0 %v9746_v0 }
 0xbd1   :  { %7884 = vmatmul.mubr.msk.bf16.vlgmr.msra.gmra.mrb[92].mxu1 %vm3133_vm1, %v4990_v59  ;;  %7982 = vmatmul.mubr.msk.bf16.vlgmr.msra.gmra.mrb[76].mxu0 %vm3133_vm1, %v5753_v21  ;;  %v9473_v59 = vld [vmem:[#allocation4 + $0xd24] ss:$8 sps:$4 sm:$0xff]   ;;  %v9476_v21 = vld [vmem:[#allocation4 + $0xd34] ss:$8 sps:$4 sm:$0xff]  }
 0xbd2   :  { %5230 = vmatpush1.bf16.msra.mxu1 %v9405_v4  ;;  %v9471_v4 = vld [vmem:[#allocation4 + $0xd20] ss:$8 sps:$4 sm:$0xff]  }
 0xbd3   :  { %5231 = vmatprep.subr.bf16.mxu1 %v9410_v58  ;;  %v9474_v58 = vld [vmem:[#allocation4 + $0xd30] ss:$8 sps:$4 sm:$0xff]  }
 0xbd6   :  { %5232 = vmatpush1.bf16.msra.mxu1 %v9408_v13  ;;  %v9479_v13 = vld [vmem:[#allocation4 + $0xd44] ss:$8 sps:$4 sm:$0xff]  }
 0xbd7   :  { %5233 = vmatprep.subr.bf16.mxu1 %v9413_v35  ;;  %v9477_v35 = vld [vmem:[#allocation4 + $0xd40] ss:$8 sps:$4 sm:$0xff]  }
 0xbda   :  { %5234 = vmatpush1.bf16.msra.mxu1 %v9411_v55  ;;  %v9482_v55 = vld [vmem:[#allocation4 + $0xd54] ss:$8 sps:$4 sm:$0xff]  }
 0xbdb   :  { %5235 = vmatprep.subr.bf16.mxu1 %v9416_v9  ;;  %v9480_v9 = vld [vmem:[#allocation4 + $0xd50] ss:$8 sps:$4 sm:$0xff]  }
 0xbde   :  { %5236 = vmatpush1.bf16.msra.mxu1 %v9414_v51  ;;  %v9485_v51 = vld [vmem:[#allocation4 + $0xd64] ss:$8 sps:$4 sm:$0xff]  }
 0xbdf   :  { %5237 = vmatprep.subr.bf16.mxu1 %v9419_v18  ;;  %v9483_v18 = vld [vmem:[#allocation4 + $0xd60] ss:$8 sps:$4 sm:$0xff]  }
 0xbe2   :  { %5238 = vmatpush1.bf16.msra.mxu1 %v9417_v24  ;;  %v9488_v24 = vld [vmem:[#allocation4 + $0xd74] ss:$8 sps:$4 sm:$0xff]  }
 0xbe3   :  { %5239 = vmatprep.subr.bf16.mxu1 %v9422_v44  ;;  %v9486_v44 = vld [vmem:[#allocation4 + $0xd70] ss:$8 sps:$4 sm:$0xff]  }
 0xbe6   :  { %5240 = vmatpush1.bf16.msra.mxu1 %v9420_v45  ;;  %v9491_v45 = vld [vmem:[#allocation4 + $0xd84] ss:$8 sps:$4 sm:$0xff]  }
 0xbe7   :  { %5241 = vmatprep.subr.bf16.mxu1 %v9425_v3  ;;  %v9489_v3 = vld [vmem:[#allocation4 + $0xd80] ss:$8 sps:$4 sm:$0xff]  }
 0xbea   :  { %5242 = vmatpush1.bf16.msra.mxu1 %v9423_v49  ;;  %v9494_v49 = vld [vmem:[#allocation4 + $0xd94] ss:$8 sps:$4 sm:$0xff]  }
 0xbeb   :  { %5243 = vmatprep.subr.bf16.mxu1 %v9428_v6  ;;  %v9492_v6 = vld [vmem:[#allocation4 + $0xd90] ss:$8 sps:$4 sm:$0xff]  }
 0xbee   :  { %5244 = vmatpush1.bf16.msra.mxu1 %v9426_v37  ;;  %v9497_v37 = vld [vmem:[#allocation4 + $0xda4] ss:$8 sps:$4 sm:$0xff]  }
 0xbef   :  { %5245 = vmatprep.subr.bf16.mxu1 %v9431_v63  ;;  %v9495_v63 = vld [vmem:[#allocation4 + $0xda0] ss:$8 sps:$4 sm:$0xff]  }
 0xbf2   :  { %5246 = vmatpush1.bf16.msra.mxu1 %v9429_v62 }
 0xbf3   :  { %5247 = vmatprep.subr.bf16.mxu1 %v9434_v28  ;;  %v9500_v28 = vld [vmem:[#allocation4 + $0xdb4] ss:$8 sps:$4 sm:$0xff]  }
 0xbf6   :  { %5248 = vmatpush1.bf16.msra.mxu1 %v9432_v36 }
 0xbf7   :  { %5249 = vmatprep.subr.bf16.mxu1 %v9437_v31 }
 0xbfa   :  { %5250 = vmatpush1.bf16.msra.mxu1 %v9435_v42 }
 0xbfb   :  { %5251 = vmatprep.subr.bf16.mxu1 %v9440_v61  ;;  %v9498_v61 = vld [vmem:[#allocation4 + $0xdb0] ss:$8 sps:$4 sm:$0xff]  }
 0xbfe   :  { %5252 = vmatpush1.bf16.msra.mxu1 %v9438_v53  ;;  %v9503_v53 = vld [vmem:[#allocation4 + $0xee4] ss:$8 sps:$4 sm:$0xff]  }
 0xbff   :  { %5253 = vmatprep.subr.bf16.mxu1 %v9443_v10  ;;  %v9501_v10 = vld [vmem:[#allocation4 + $0xee0] ss:$8 sps:$4 sm:$0xff]  }
 0xc02   :  { %5254 = vmatpush1.bf16.msra.mxu1 %v9441_v19 }
 0xc03   :  { %5255 = vmatprep.subr.bf16.mxu1 %v9446_v39 }
 0xc06   :  { %5256 = vmatpush1.bf16.msra.mxu1 %v9444_v40  ;;  %v9506_v40 = vld [vmem:[#allocation4 + $0xef4] ss:$8 sps:$4 sm:$0xff]  }
 0xc07   :  { %5257 = vmatprep.subr.bf16.mxu1 %v9449_v15  ;;  %v9504_v15 = vld [vmem:[#allocation4 + $0xef0] ss:$8 sps:$4 sm:$0xff]  }
 0xc0a   :  { %5258 = vmatpush1.bf16.msra.mxu1 %v9447_v27  ;;  %v9509_v27 = vld [vmem:[#allocation4 + $0xf04] ss:$8 sps:$4 sm:$0xff]  }
 0xc0b   :  { %5259 = vmatprep.subr.bf16.mxu1 %v9452_v41  ;;  %v6051_v41 = vld [vmem:[%s11182_s4 + $0x290] sm:$0xff] }
 0xc0e   :  { %5260 = vmatpush1.bf16.msra.mxu1 %v9450_v7  ;;  %v6052_v7 = vld [vmem:[%s11182_s4 + $0x298] sm:$0xff] }
 0xc0f   :  { %5430 = vmatprep.subr.bf16.mxu1 %v9455_v5  ;;  %v6035_v5 = vld [vmem:[%s11182_s4 + $0x210] sm:$0xff] }
 0xc9c   :  { %v10793_v2 = vpop.f32.mrb[88].mxu1  ;;  %v10795_v34 = vpop.f32.mrb[72].mxu0 }
 0xc9d   :  { %v4983_v52 = vpop.f32.mrb[89].mxu1  ;;  %v10797_v50 = vpop.f32.mrb[73].mxu0  ;;  %v4988_v39 = vpack.c.bf16 %v10793_v2, %v10793_v2  ;;  %v10816_v2 = vpack.c.bf16 %v6052_v7, %v6051_v41  ;;  %v9551_v41 = vld [vmem:[#allocation4 + $0xff4] ss:$8 sps:$4 sm:$0xff]   ;;  %v5548_v7 = vpack.c.bf16 %v10795_v34, %v10795_v34 }
 0xc9e   :  { %v4985_v43 = vpop.f32.mrb[90].mxu1  ;;  %v5545_v38 = vpop.f32.mrb[74].mxu0  ;;  %v4989_v23 = vpack.c.bf16 %v4983_v52, %v4983_v52  ;;  %v5549_v19 = vpack.c.bf16 %v10797_v50, %v10797_v50  ;;  %v6036_v52 = vld [vmem:[%s11182_s4 + $0x218] sm:$0xff] }
 0xc9f   :  { %v4986_v8 = vpop.f32.mrb[91].mxu1  ;;  %v5546_v48 = vpop.f32.mrb[75].mxu0  ;;  %v6053_v43 = vld [vmem:[%s11182_s4 + $0x2a0] sm:$0xff]  ;;  %v10827_v50 = vpack.c.bf16 %v6036_v52, %v6035_v5  ;;  %8521 = vmatprep.subr.bf16.mxu0 %v10816_v2  ;;  %v9549_v5 = vld [vmem:[#allocation4 + $0xff0] ss:$8 sps:$4 sm:$0xff]  }
 0xca0   :  { %v6054_v8 = vld [vmem:[%s11182_s4 + $0x2a8] sm:$0xff]  ;;  %v9563_v34 = vld [vmem:[#allocation4 + $0x1034] ss:$8 sps:$4 sm:$0xff]  }
 0xca1   :  { %v10829_v38 = vpack.c.bf16 %v6054_v8, %v6053_v43  ;;  %v6038_v48 = vld [vmem:[%s11182_s4 + $0x228] sm:$0xff]  ;;  %8523 = vmatpush3.bf16.msra.mxu0 %v10827_v50 }
 0xca2   :  { %v9554_v43 = vld [vmem:[#allocation4 + $0x1004] ss:$8 sps:$4 sm:$0xff]   ;;  %v9552_v8 = vld [vmem:[#allocation4 + $0x1000] ss:$8 sps:$4 sm:$0xff]  }
 0xca3   :  { %8525 = vmatprep.subr.bf16.mxu0 %v10829_v38 }
 0xca4   :  { %v5060_v22 = vpop.f32.mrb[92].mxu1  ;;  %v10799_v62 = vpop.f32.mrb[76].mxu0 }
 0xca5   :  { %v5062_v54 = vpop.f32.mrb[93].mxu1  ;;  %v5067_v20 = vpack.c.bf16 %v5060_v22, %v5060_v22  ;;  %v10801_v36 = vpop.f32.mrb[77].mxu0  ;;  %v6037_v22 = vld [vmem:[%s11182_s4 + $0x220] sm:$0xff] }
 0xca6   :  { %v5068_v17 = vpack.c.bf16 %v5062_v54, %v5062_v54  ;;  %v5064_v26 = vpop.f32.mrb[94].mxu1  ;;  %v5827_v31 = vpop.f32.mrb[78].mxu0  ;;  %v6055_v54 = vld [vmem:[%s11182_s4 + $0x2b0] sm:$0xff]  ;;  %v5831_v52 = vpack.c.bf16 %v10801_v36, %v10801_v36 }
 0xca7   :  { %v5065_v16 = vpop.f32.mrb[95].mxu1  ;;  %v5828_v42 = vpop.f32.mrb[79].mxu0  ;;  %v10845_v26 = vpack.c.bf16 %v6038_v48, %v6037_v22  ;;  %v9536_v31 = vld [vmem:[#allocation4 + $0xf94] ss:$8 sps:$4 sm:$0xff]   ;;  %v9555_v48 = vld [vmem:[#allocation4 + $0x1010] ss:$8 sps:$4 sm:$0xff]  }
 0xca8   :  { %5261 = vmatprep.mubr.bf16.mxu1 %v5068_v17  ;;  %v6056_v17 = vld [vmem:[%s11182_s4 + $0x2b8] sm:$0xff]  ;;  %v6039_v16 = vld [vmem:[%s11182_s4 + $0x230] sm:$0xff] }
 0xca9   :  { %5262 = vmatmul.mubr.bf16.vlgmr.msra.gmra.mrb[96].mxu1 %v5067_v20  ;;  %v10848_v20 = vpack.c.bf16 %v6056_v17, %v6055_v54  ;;  %8527 = vmatpush3.bf16.msra.mxu0 %v10845_v26  ;;  %v9534_v42 = vld [vmem:[#allocation4 + $0xf90] ss:$8 sps:$4 sm:$0xff]   ;;  %v9557_v22 = vld [vmem:[#allocation4 + $0x1014] ss:$8 sps:$4 sm:$0xff]   ;;  %v9560_v54 = vld [vmem:[#allocation4 + $0x1024] ss:$8 sps:$4 sm:$0xff]  }
 0xcaa   :  { %5431 = vmatpush1.bf16.msra.mxu1 %v9453_v29  ;;  %5462 = vmatprep.mubr.bf16.mxu1 %v4989_v23  ;;  %v9507_v29 = vld [vmem:[#allocation4 + $0xf00] ss:$8 sps:$4 sm:$0xff]   ;;  %v9512_v23 = vld [vmem:[#allocation4 + $0xf14] ss:$8 sps:$4 sm:$0xff]   ;;  %v9566_v36 = vld [vmem:[#allocation4 + $0x1044] ss:$8 sps:$4 sm:$0xff]  }
 0xcab   :  { %5432 = vmatprep.subr.bf16.mxu1 %v9458_v11  ;;  %v6040_v11 = vld [vmem:[%s11182_s4 + $0x238] sm:$0xff]  ;;  %8529 = vmatprep.subr.bf16.mxu0 %v10848_v20  ;;  %v9558_v17 = vld [vmem:[#allocation4 + $0x1020] ss:$8 sps:$4 sm:$0xff]  }
 0xcae   :  { %5433 = vmatpush1.bf16.msra.mxu1 %v9456_v12  ;;  %v6057_v12 = vld [vmem:[%s11182_s4 + $0x2c0] sm:$0xff] }
 0xcaf   :  { %5434 = vmatprep.subr.bf16.mxu1 %v9461_v33  ;;  %v6058_v33 = vld [vmem:[%s11182_s4 + $0x2c8] sm:$0xff] }
 0xcb2   :  { %5435 = vmatpush1.bf16.msra.mxu1 %v9459_v56  ;;  %v10863_v56 = vpack.c.bf16 %v6040_v11, %v6039_v16  ;;  %v9564_v16 = vld [vmem:[#allocation4 + $0x1040] ss:$8 sps:$4 sm:$0xff]   ;;  %v9569_v11 = vld [vmem:[#allocation4 + $0x1054] ss:$8 sps:$4 sm:$0xff]  }
 0xcb3   :  { %5436 = vmatprep.subr.bf16.mxu1 %v9464_v47  ;;  %v9510_v47 = vld [vmem:[#allocation4 + $0xf10] ss:$8 sps:$4 sm:$0xff]  }
 0xcb4   :  { %8531 = vmatpush3.bf16.msra.mxu0 %v10863_v56 }
 0xcb6   :  { %5437 = vmatpush1.bf16.msra.mxu1 %v9462_v57  ;;  %v10866_v57 = vpack.c.bf16 %v6058_v33, %v6057_v12  ;;  %v9572_v12 = vld [vmem:[#allocation4 + $0x1064] ss:$8 sps:$4 sm:$0xff]   ;;  %v9570_v33 = vld [vmem:[#allocation4 + $0x1060] ss:$8 sps:$4 sm:$0xff]  }
 0xcb7   :  { %5438 = vmatprep.subr.bf16.mxu1 %v9467_v30  ;;  %v6041_v30 = vld [vmem:[%s11182_s4 + $0x240] sm:$0xff] }
 0xcb8   :  { %8533 = vmatprep.subr.bf16.mxu0 %v10866_v57 }
 0xcba   :  { %5439 = vmatpush1.bf16.msra.mxu1 %v9465_v46  ;;  %v6042_v46 = vld [vmem:[%s11182_s4 + $0x248] sm:$0xff] }
 0xcbb   :  { %5440 = vmatprep.subr.bf16.mxu1 %v9470_v1  ;;  %v9515_v1 = vld [vmem:[#allocation4 + $0xf24] ss:$8 sps:$4 sm:$0xff]  }
 0xcbe   :  { %5441 = vmatpush1.bf16.msra.mxu1 %v9468_v14  ;;  %v6059_v14 = vld [vmem:[%s11182_s4 + $0x2d0] sm:$0xff] }
 0xcbf   :  { %5442 = vmatprep.subr.bf16.mxu1 %v9473_v59  ;;  %v6060_v59 = vld [vmem:[%s11182_s4 + $0x2d8] sm:$0xff] }
 0xcc2   :  { %5443 = vmatpush1.bf16.msra.mxu1 %v9471_v4  ;;  %v10881_v4 = vpack.c.bf16 %v6042_v46, %v6041_v30  ;;  %v9573_v30 = vld [vmem:[#allocation4 + $0x1070] ss:$8 sps:$4 sm:$0xff]   ;;  %v9578_v46 = vld [vmem:[#allocation4 + $0x1084] ss:$8 sps:$4 sm:$0xff]  }
 0xcc3   :  { %5444 = vmatprep.subr.bf16.mxu1 %v9476_v21  ;;  %v9513_v21 = vld [vmem:[#allocation4 + $0xf20] ss:$8 sps:$4 sm:$0xff]  }
 0xcc4   :  { %8535 = vmatpush3.bf16.msra.mxu0 %v10881_v4 }
 0xcc6   :  { %5445 = vmatpush1.bf16.msra.mxu1 %v9474_v58  ;;  %v10884_v58 = vpack.c.bf16 %v6060_v59, %v6059_v14  ;;  %v9581_v14 = vld [vmem:[#allocation4 + $0x1094] ss:$8 sps:$4 sm:$0xff]   ;;  %v9579_v59 = vld [vmem:[#allocation4 + $0x1090] ss:$8 sps:$4 sm:$0xff]  }
 0xcc7   :  { %5446 = vmatprep.subr.bf16.mxu1 %v9479_v13  ;;  %v6043_v13 = vld [vmem:[%s11182_s4 + $0x250] sm:$0xff] }
 0xcc8   :  { %8537 = vmatprep.subr.bf16.mxu0 %v10884_v58 }
 0xcca   :  { %5447 = vmatpush1.bf16.msra.mxu1 %v9477_v35  ;;  %v6044_v35 = vld [vmem:[%s11182_s4 + $0x258] sm:$0xff] }
 0xccb   :  { %5448 = vmatprep.subr.bf16.mxu1 %v9482_v55  ;;  %v9518_v55 = vld [vmem:[#allocation4 + $0xf34] ss:$8 sps:$4 sm:$0xff]  }
 0xcce   :  { %5449 = vmatpush1.bf16.msra.mxu1 %v9480_v9  ;;  %v10893_v9 = vpack.c.bf16 %v6044_v35, %v6043_v13  ;;  %v9582_v13 = vld [vmem:[#allocation4 + $0x10a0] ss:$8 sps:$4 sm:$0xff]   ;;  %v9587_v35 = vld [vmem:[#allocation4 + $0x10b4] ss:$8 sps:$4 sm:$0xff]  }
 0xccf   :  { %5450 = vmatprep.subr.bf16.mxu1 %v9485_v51  ;;  %v9516_v51 = vld [vmem:[#allocation4 + $0xf30] ss:$8 sps:$4 sm:$0xff]  }
 0xcd0   :  { %8539 = vmatpush3.bf16.msra.mxu0 %v10893_v9 }
 0xcd2   :  { %5451 = vmatpush1.bf16.msra.mxu1 %v9483_v18  ;;  %v9521_v18 = vld [vmem:[#allocation4 + $0xf44] ss:$8 sps:$4 sm:$0xff]  }
 0xcd3   :  { %5452 = vmatprep.subr.bf16.mxu1 %v9488_v24  ;;  %v9519_v24 = vld [vmem:[#allocation4 + $0xf40] ss:$8 sps:$4 sm:$0xff]  }
 0xcd6   :  { %5453 = vmatpush1.bf16.msra.mxu1 %v9486_v44  ;;  %v9524_v44 = vld [vmem:[#allocation4 + $0xf54] ss:$8 sps:$4 sm:$0xff]  }
 0xcd7   :  { %5454 = vmatprep.subr.bf16.mxu1 %v9491_v45  ;;  %v9522_v45 = vld [vmem:[#allocation4 + $0xf50] ss:$8 sps:$4 sm:$0xff]  }
 0xcda   :  { %5455 = vmatpush1.bf16.msra.mxu1 %v9489_v3  ;;  %v9527_v3 = vld [vmem:[#allocation4 + $0xf64] ss:$8 sps:$4 sm:$0xff]  }
 0xcdb   :  { %5456 = vmatprep.subr.bf16.mxu1 %v9494_v49  ;;  %v9525_v49 = vld [vmem:[#allocation4 + $0xf60] ss:$8 sps:$4 sm:$0xff]  }
 0xcde   :  { %5457 = vmatpush1.bf16.msra.mxu1 %v9492_v6  ;;  %v9530_v6 = vld [vmem:[#allocation4 + $0xf74] ss:$8 sps:$4 sm:$0xff]  }
 0xcdf   :  { %5458 = vmatprep.subr.bf16.mxu1 %v9497_v37  ;;  %v9528_v37 = vld [vmem:[#allocation4 + $0xf70] ss:$8 sps:$4 sm:$0xff]  }
 0xce2   :  { %5459 = vmatpush1.bf16.msra.mxu1 %v9495_v63  ;;  %v9533_v63 = vld [vmem:[#allocation4 + $0xf84] ss:$8 sps:$4 sm:$0xff]  }
 0xce3   :  { %5460 = vmatprep.subr.bf16.mxu1 %v9500_v28  ;;  %v9531_v28 = vld [vmem:[#allocation4 + $0xf80] ss:$8 sps:$4 sm:$0xff]  }
 0xce6   :  { %5461 = vmatpush1.bf16.msra.mxu1 %v9498_v61  ;;  %v9539_v61 = vld [vmem:[#allocation4 + $0xfa4] ss:$8 sps:$4 sm:$0xff]  }
 0xce7   :  { %5710 = vmatprep.subr.bf16.mxu1 %v9503_v53  ;;  %v9537_v53 = vld [vmem:[#allocation4 + $0xfa0] ss:$8 sps:$4 sm:$0xff]  }
 0xce9   :  { %5463 = vmatmul.mubr.bf16.vlgmr.msra.gmra.mrb[96].mxu1 %v4988_v39  ;;  %v9545_v39 = vld [vmem:[#allocation4 + $0xfc4] ss:$8 sps:$4 sm:$0xff]  }
 0xcea   :  { %5711 = vmatpush1.bf16.msra.mxu1 %v9501_v10  ;;  %5742 = vmatprep.mubr.bf16.mxu1 %v5549_v19  ;;  %v9542_v10 = vld [vmem:[#allocation4 + $0xfb4] ss:$8 sps:$4 sm:$0xff]   ;;  %v9540_v19 = vld [vmem:[#allocation4 + $0xfb0] ss:$8 sps:$4 sm:$0xff]  }
 0xceb   :  { %5712 = vmatprep.subr.bf16.mxu1 %v9506_v40  ;;  %v9543_v40 = vld [vmem:[#allocation4 + $0xfc0] ss:$8 sps:$4 sm:$0xff]  }
 0xcee   :  { %5713 = vmatpush1.bf16.msra.mxu1 %v9504_v15  ;;  %v9548_v15 = vld [vmem:[#allocation4 + $0xfd4] ss:$8 sps:$4 sm:$0xff]  }
 0xcef   :  { %5714 = vmatprep.subr.bf16.mxu1 %v9509_v27  ;;  %v9546_v27 = vld [vmem:[#allocation4 + $0xfd0] ss:$8 sps:$4 sm:$0xff]  }
 0xcf2   :  { %5715 = vmatpush1.bf16.msra.mxu1 %v9507_v29  ;;  %v9561_v29 = vld [vmem:[#allocation4 + $0x1030] ss:$8 sps:$4 sm:$0xff]  }
 0xcf3   :  { %5716 = vmatprep.subr.bf16.mxu1 %v9512_v23  ;;  %v9567_v23 = vld [vmem:[#allocation4 + $0x1050] ss:$8 sps:$4 sm:$0xff]  }
 0xcf6   :  { %5717 = vmatpush1.bf16.msra.mxu1 %v9510_v47  ;;  %v9575_v47 = vld [vmem:[#allocation4 + $0x1074] ss:$8 sps:$4 sm:$0xff]  }
 0xcf7   :  { %5718 = vmatprep.subr.bf16.mxu1 %v9515_v1  ;;  %v9576_v1 = vld [vmem:[#allocation4 + $0x1080] ss:$8 sps:$4 sm:$0xff]  }
 0xcfa   :  { %5719 = vmatpush1.bf16.msra.mxu1 %v9513_v21  ;;  %v9584_v21 = vld [vmem:[#allocation4 + $0x10a4] ss:$8 sps:$4 sm:$0xff]  }
 0xcfb   :  { %5720 = vmatprep.subr.bf16.mxu1 %v9518_v55  ;;  %v9585_v55 = vld [vmem:[#allocation4 + $0x10b0] ss:$8 sps:$4 sm:$0xff]  }
 0xcfe   :  { %5721 = vmatpush1.bf16.msra.mxu1 %v9516_v51  ;;  %v9590_v51 = vld [vmem:[#allocation4 + $0x10c4] ss:$8 sps:$4 sm:$0xff]  }
 0xcff   :  { %5722 = vmatprep.subr.bf16.mxu1 %v9521_v18  ;;  %v9588_v18 = vld [vmem:[#allocation4 + $0x10c0] ss:$8 sps:$4 sm:$0xff]  }
 0xd02   :  { %5723 = vmatpush1.bf16.msra.mxu1 %v9519_v24  ;;  %v9593_v24 = vld [vmem:[#allocation4 + $0x10d4] ss:$8 sps:$4 sm:$0xff]  }
 0xd03   :  { %5724 = vmatprep.subr.bf16.mxu1 %v9524_v44  ;;  %v9591_v44 = vld [vmem:[#allocation4 + $0x10d0] ss:$8 sps:$4 sm:$0xff]  }
 0xd06   :  { %5725 = vmatpush1.bf16.msra.mxu1 %v9522_v45  ;;  %v9596_v45 = vld [vmem:[#allocation4 + $0x10e4] ss:$8 sps:$4 sm:$0xff]  }
 0xd07   :  { %5726 = vmatprep.subr.bf16.mxu1 %v9527_v3  ;;  %v9594_v3 = vld [vmem:[#allocation4 + $0x10e0] ss:$8 sps:$4 sm:$0xff]  }
 0xd0a   :  { %5727 = vmatpush1.bf16.msra.mxu1 %v9525_v49  ;;  %v5830_v49 = vpack.c.bf16 %v10799_v62, %v10799_v62  ;;  %v6063_v62 = vld [vmem:[%s11182_s4 + $0x2f0] sm:$0xff] }
 0xd0b   :  { %5728 = vmatprep.subr.bf16.mxu1 %v9530_v6  ;;  %v6061_v6 = vld [vmem:[%s11182_s4 + $0x2e0] sm:$0xff] }
 0xd0e   :  { %5729 = vmatpush1.bf16.msra.mxu1 %v9528_v37  ;;  %v6062_v37 = vld [vmem:[%s11182_s4 + $0x2e8] sm:$0xff] }
 0xd0f   :  { %5730 = vmatprep.subr.bf16.mxu1 %v9533_v63  ;;  %v8540_v63 = vpack.c.bf16 %v6062_v37, %v6061_v6  ;;  %v6076_v6 = vld [vmem:[#allocation6 + $0xa8] sm:$0xff]  ;;  %v6078_v37 = vld [vmem:[#allocation6 + $0xb8] sm:$0xff] }
 0xd11   :  { %8541 = vmatprep.subr.bf16.mxu0 %v8540_v63 }
 0xd12   :  { %5731 = vmatpush1.bf16.msra.mxu1 %v9531_v28  ;;  %v6045_v28 = vld [vmem:[%s11182_s4 + $0x260] sm:$0xff] }
 0xd13   :  { %5732 = vmatprep.subr.bf16.mxu1 %v9536_v31  ;;  %v6046_v31 = vld [vmem:[%s11182_s4 + $0x268] sm:$0xff] }
 0xd16   :  { %5733 = vmatpush1.bf16.msra.mxu1 %v9534_v42  ;;  %v8542_v42 = vpack.c.bf16 %v6046_v31, %v6045_v28  ;;  %v8592_v28 = vpack.c.bf16 %v6078_v37, %v6076_v6  ;;  %v6077_v31 = vld [vmem:[#allocation6 + $0xb0] sm:$0xff] }
 0xd17   :  { %5734 = vmatprep.subr.bf16.mxu1 %v9539_v61  ;;  %v6064_v61 = vld [vmem:[%s11182_s4 + $0x2f8] sm:$0xff] }
 0xd18   :  { %8543 = vmatpush3.bf16.msra.mxu0 %v8542_v42 }
 0xd1a   :  { %5735 = vmatpush1.bf16.msra.mxu1 %v9537_v53  ;;  %v8544_v53 = vpack.c.bf16 %v6064_v61, %v6063_v62  ;;  %v6082_v62 = vld [vmem:[#allocation6 + $0xd8] sm:$0xff] }
 0xd1b   :  { %5736 = vmatprep.subr.bf16.mxu1 %v9542_v10  ;;  %v6047_v10 = vld [vmem:[%s11182_s4 + $0x270] sm:$0xff] }
 0xd1c   :  { %8545 = vmatprep.subr.bf16.mxu0 %v8544_v53 }
 0xd1e   :  { %5737 = vmatpush1.bf16.msra.mxu1 %v9540_v19  ;;  %v6048_v19 = vld [vmem:[%s11182_s4 + $0x278] sm:$0xff] }
 0xd1f   :  { %5738 = vmatprep.subr.bf16.mxu1 %v9545_v39  ;;  %v8546_v39 = vpack.c.bf16 %v6048_v19, %v6047_v10  ;;  %v6079_v10 = vld [vmem:[#allocation6 + $0xc0] sm:$0xff]  ;;  %v6081_v19 = vld [vmem:[#allocation6 + $0xd0] sm:$0xff] }
 0xd21   :  { %8547 = vmatpush3.bf16.msra.mxu0 %v8546_v39 }
 0xd22   :  { %5739 = vmatpush1.bf16.msra.mxu1 %v9543_v40  ;;  %v6065_v40 = vld [vmem:[%s11182_s4 + $0x300] sm:$0xff] }
 0xd23   :  { %5740 = vmatprep.subr.bf16.mxu1 %v9548_v15  ;;  %v6066_v15 = vld [vmem:[%s11182_s4 + $0x308] sm:$0xff] }
 0xd26   :  { %5741 = vmatpush1.bf16.msra.mxu1 %v9546_v27  ;;  %v6049_v27 = vld [vmem:[%s11182_s4 + $0x280] sm:$0xff] }
 0xd27   :  { %5992 = vmatprep.subr.bf16.mxu1 %v9551_v41  ;;  %v8548_v41 = vpack.c.bf16 %v6066_v15, %v6065_v40 }
 0xd29   :  { %5743 = vmatmul.mubr.bf16.vlgmr.msra.gmra.mrb[96].mxu1 %v5548_v7  ;;  %v6050_v7 = vld [vmem:[%s11182_s4 + $0x288] sm:$0xff]  ;;  %8549 = vmatprep.subr.bf16.mxu0 %v8548_v41 }
 0xd2a   :  { %5993 = vmatpush1.bf16.msra.mxu1 %v9549_v5  ;;  %6024 = vmatprep.mubr.bf16.mxu1 %v5831_v52  ;;  %v8550_v5 = vpack.c.bf16 %v6050_v7, %v6049_v27 }
 0xd2b   :  { %5994 = vmatprep.subr.bf16.mxu1 %v9554_v43 }
 0xd2c   :  { %8551 = vmatpush3.bf16.msra.mxu0 %v8550_v5 }
 0xd2d   :  { %8553 = vmatprep.subr.bf16.mxu0 %v10816_v2 }
 0xd2e   :  { %5995 = vmatpush1.bf16.msra.mxu1 %v9552_v8 }
 0xd2f   :  { %5996 = vmatprep.subr.bf16.mxu1 %v9557_v22 }
 0xd32   :  { %5997 = vmatpush1.bf16.msra.mxu1 %v9555_v48 }
 0xd33   :  { %5998 = vmatprep.subr.bf16.mxu1 %v9560_v54 }
 0xd36   :  { %5999 = vmatpush1.bf16.msra.mxu1 %v9558_v17 }
 0xd37   :  { %6000 = vmatprep.subr.bf16.mxu1 %v9563_v34 }
 0xd3a   :  { %6001 = vmatpush1.bf16.msra.mxu1 %v9561_v29 }
 0xd3b   :  { %6002 = vmatprep.subr.bf16.mxu1 %v9566_v36 }
 0xd3e   :  { %6003 = vmatpush1.bf16.msra.mxu1 %v9564_v16 }
 0xd3f   :  { %6004 = vmatprep.subr.bf16.mxu1 %v9569_v11 }
 0xd42   :  { %6005 = vmatpush1.bf16.msra.mxu1 %v9567_v23 }
 0xd43   :  { %6006 = vmatprep.subr.bf16.mxu1 %v9572_v12 }
 0xd46   :  { %6007 = vmatpush1.bf16.msra.mxu1 %v9570_v33 }
 0xd47   :  { %6008 = vmatprep.subr.bf16.mxu1 %v9575_v47 }
 0xd4a   :  { %6009 = vmatpush1.bf16.msra.mxu1 %v9573_v30 }
 0xd4b   :  { %6010 = vmatprep.subr.bf16.mxu1 %v9578_v46 }
 0xd4e   :  { %6011 = vmatpush1.bf16.msra.mxu1 %v9576_v1 }
 0xd4f   :  { %6012 = vmatprep.subr.bf16.mxu1 %v9581_v14 }
 0xd52   :  { %6013 = vmatpush1.bf16.msra.mxu1 %v9579_v59 }
 0xd53   :  { %6014 = vmatprep.subr.bf16.mxu1 %v9584_v21 }
 0xd56   :  { %6015 = vmatpush1.bf16.msra.mxu1 %v9582_v13 }
 0xd57   :  { %6016 = vmatprep.subr.bf16.mxu1 %v9587_v35 }
 0xd5a   :  { %6017 = vmatpush1.bf16.msra.mxu1 %v9585_v55 }
 0xd5b   :  { %6018 = vmatprep.subr.bf16.mxu1 %v9590_v51  ;;  %v6067_v51 = vld [vmem:[#allocation6 + $0x60] sm:$0xff] }
 0xd5e   :  { %6019 = vmatpush1.bf16.msra.mxu1 %v9588_v18 }
 0xd5f   :  { %6020 = vmatprep.subr.bf16.mxu1 %v9593_v24  ;;  %v6074_v24 = vld [vmem:[#allocation6 + $0x98] sm:$0xff] }
 0xd62   :  { %6021 = vmatpush1.bf16.msra.mxu1 %v9591_v44 }
 0xd63   :  { %6022 = vmatprep.subr.bf16.mxu1 %v9596_v45  ;;  %v6071_v45 = vld [vmem:[#allocation6 + $0x80] sm:$0xff] }
 0xd66   :  { %6023 = vmatpush1.bf16.msra.mxu1 %v9594_v3  ;;  %v6073_v3 = vld [vmem:[#allocation6 + $0x90] sm:$0xff] }
 0xd69   :  { %6025 = vmatmul.mubr.bf16.vlgmr.msra.gmra.mrb[96].mxu1 %v5830_v49  ;;  %v8590_v49 = vpack.c.bf16 %v6073_v3, %v6071_v45 }
 0xe3c   :  { %v10940_v52 = vpop.f32.mrb[96].mxu1 }
 0xe3d   :  { %v6084_v43 = vrot.slane %v10940_v52, 4  ;;  %v10943_v8 = vpop.f32.mrb[97].mxu1  ;;  %v6096_v13 = vmul.f32 %v10940_v52, %v10940_v52 }
 0xe3e   :  { %v6090_v22 = vrot.slane %v10943_v8, 4  ;;  %v6097_v48 = vmul.f32 %v10943_v8, %v10943_v8  ;;  %v6030_v54 = vpop.f32.mrb[98].mxu1 }
 0xe3f   :  { %v6085_v17 = vadd.f32 %v6084_v43, %v10940_v52  ;;  %v6031_v34 = vpop.f32.mrb[99].mxu1  ;;  %v6098_v35 = vrot.slane %v6096_v13, 4 }
 0xe40   :  { %v6091_v29 = vadd.f32 %v6090_v22, %v10943_v8  ;;  %v6104_v36 = vrot.slane %v6097_v48, 4 }
 0xe41   :  { %v6086_v16 = vrot.slane %v6085_v17, 2  ;;  %v6099_v55 = vadd.f32 %v6098_v35, %v6096_v13  ;;  %v9602_v13 = vld [vmem:[#allocation4 + $0x1214] ss:$8 sps:$4 sm:$0xff]   ;;  %v9600_v35 = vld [vmem:[#allocation4 + $0x1210] ss:$8 sps:$4 sm:$0xff]  }
 0xe42   :  { %v6092_v2 = vrot.slane %v6091_v29, 2  ;;  %v6105_v11 = vadd.f32 %v6104_v36, %v6097_v48 }
 0xe43   :  { %v6087_v23 = vadd.f32 %v6086_v16, %v6085_v17  ;;  %v6083_v17 = vld [vmem:[%s11182_s4 + $0x310] sm:$0x3] }
 0xe44   :  { %v6093_v12 = vadd.f32 %v6092_v2, %v6091_v29  ;;  %v6106_v33 = vrot.slane %v6105_v11, 2 }
 0xe45   :  { %v6088_v47 = vrot.slane %v6087_v23, 1 }
 0xe46   :  { %v6094_v30 = vrot.slane %v6093_v12, 1  ;;  %v6107_v46 = vadd.f32 %v6106_v33, %v6105_v11  ;;  %v6434_v11 = vld [vmem:[%s11182_s4 + $0x420] sm:$0xff] }
 0xe47   :  { %v6089_v59 = vadd.f32 %v6088_v47, %v6087_v23  ;;  %v6435_v23 = vld [vmem:[%s11182_s4 + $0x428] sm:$0xff]  ;;  %v9748_v47 = vmov 0.0|0.0  }
 0xe48   :  { %v6095_v1 = vadd.f32 %v6094_v30, %v6093_v12  ;;  %v6108_v14 = vrot.slane %v6107_v46, 1  ;;  %v8617_v12 = vpack.c.bf16 %v6435_v23, %v6434_v11  ;;  %v6436_v30 = vld [vmem:[%s11182_s4 + $0x430] sm:$0xff] }
 0xe4a   :  { %6174 = vmatprep.mubr.f32.mxu0 %v6095_v1  ;;  %v6109_v21 = vadd.f32 %v6108_v14, %v6107_v46  ;;  %v6437_v46 = vld [vmem:[%s11182_s4 + $0x438] sm:$0xff]  ;;  %v6439_v14 = vld [vmem:[#allocation2] sm:$0x3] }
 0xe4b   :  { %6175 = vmatmul.mubr.f32.vlgmr.msra.gmra.mrb[70].mxu0 %v6089_v59  ;;  %v8620_v1 = vpack.c.bf16 %v6437_v46, %v6436_v30  ;;  %v9599_v59 = vld [vmem:[#allocation4 + $0x1204] ss:$8 sps:$4 sm:$0xff]  }
 0xe4c   :  { %8555 = vmatpush3.bf16.msra.mxu0 %v10827_v50  ;;  %6244 = vmatprep.mubr.f32.mxu0 %v6109_v21  ;;  %v6100_v50 = vrot.slane %v6099_v55, 2  ;;  %v9597_v21 = vld [vmem:[#allocation4 + $0x1200] ss:$8 sps:$4 sm:$0xff]  }
 0xe4d   :  { %8557 = vmatprep.subr.bf16.mxu0 %v10829_v38 }
 0xe4e   :  { %v6101_v38 = vadd.f32 %v6100_v50, %v6099_v55  ;;  %v9605_v55 = vld [vmem:[#allocation4 + $0x1224] ss:$8 sps:$4 sm:$0xff]   ;;  %v9603_v50 = vld [vmem:[#allocation4 + $0x1220] ss:$8 sps:$4 sm:$0xff]  }
 0xe50   :  { %8559 = vmatpush3.bf16.msra.mxu0 %v10845_v26  ;;  %v6102_v26 = vrot.slane %v6101_v38, 1 }
 0xe51   :  { %8561 = vmatprep.subr.bf16.mxu0 %v10848_v20 }
 0xe52   :  { %v6103_v20 = vadd.f32 %v6102_v26, %v6101_v38  ;;  %v9608_v38 = vld [vmem:[#allocation4 + $0x1234] ss:$8 sps:$4 sm:$0xff]   ;;  %v9606_v26 = vld [vmem:[#allocation4 + $0x1230] ss:$8 sps:$4 sm:$0xff]  }
 0xe54   :  { %8563 = vmatpush3.bf16.msra.mxu0 %v10863_v56  ;;  %v6068_v56 = vld [vmem:[#allocation6 + $0x68] sm:$0xff] }
 0xe55   :  { %8565 = vmatprep.subr.bf16.mxu0 %v10866_v57  ;;  %v6070_v57 = vld [vmem:[#allocation6 + $0x78] sm:$0xff] }
 0xe58   :  { %8567 = vmatpush3.bf16.msra.mxu0 %v10881_v4  ;;  %v8584_v4 = vpack.c.bf16 %v6070_v57, %v6068_v56 }
 0xe59   :  { %8569 = vmatprep.subr.bf16.mxu0 %v10884_v58  ;;  %v6069_v58 = vld [vmem:[#allocation6 + $0x70] sm:$0xff] }
 0xe5a   :  { %v8586_v18 = vpack.c.bf16 %v6069_v58, %v6067_v51 }
 0xe5c   :  { %8571 = vmatpush3.bf16.msra.mxu0 %v10893_v9  ;;  %v6072_v9 = vld [vmem:[#allocation6 + $0x88] sm:$0xff] }
 0xe5d   :  { %8573 = vmatprep.subr.bf16.mxu0 %v8540_v63  ;;  %v8588_v44 = vpack.c.bf16 %v6074_v24, %v6072_v9  ;;  %v6075_v63 = vld [vmem:[#allocation6 + $0xa0] sm:$0xff] }
 0xe5e   :  { %v8594_v61 = vpack.c.bf16 %v6077_v31, %v6075_v63 }
 0xe60   :  { %8575 = vmatpush3.bf16.msra.mxu0 %v8542_v42  ;;  %v6080_v42 = vld [vmem:[#allocation6 + $0xc8] sm:$0xff] }
 0xe61   :  { %8577 = vmatprep.subr.bf16.mxu0 %v8544_v53  ;;  %v8596_v53 = vpack.c.bf16 %v6082_v62, %v6080_v42 }
 0xe64   :  { %8579 = vmatpush3.bf16.msra.mxu0 %v8546_v39  ;;  %v8598_v39 = vpack.c.bf16 %v6081_v19, %v6079_v10 }
 0xe65   :  { %8581 = vmatprep.subr.bf16.mxu0 %v8548_v41 }
 0xe68   :  { %8583 = vmatpush3.bf16.msra.mxu0 %v8550_v5 }
 0xe69   :  { %8585 = vmatprep.subr.bf16.mxu0 %v8584_v4 }
 0xe6b   :  { %6245 = vmatmul.mubr.f32.vlgmr.msra.gmra.mrb[80].mxu0 %v6103_v20 }
 0xe6c   :  { %6328 = vmatprep.mubr.f32.mxu0 %v9747_v25  ;;  %8587 = vmatpush1.bf16.msra.mxu0 %v8586_v18 }
 0xe6d   :  { %8589 = vmatprep.subr.bf16.mxu0 %v8588_v44 }
 0xe70   :  { %8591 = vmatpush1.bf16.msra.mxu0 %v8590_v49 }
 0xe71   :  { %8593 = vmatprep.subr.bf16.mxu0 %v8592_v28 }
 0xe74   :  { %8595 = vmatpush1.bf16.msra.mxu0 %v8594_v61 }
 0xe75   :  { %8597 = vmatprep.subr.bf16.mxu0 %v8596_v53 }
 0xe78   :  { %8599 = vmatpush1.bf16.msra.mxu0 %v8598_v39 }
 0xe79   :  { %8601 = vmatprep.subr.bf16.mxu0 %v8584_v4 }
 0xf1e   :  { %v8237_v40 = vpop.f32.mrb[70].mxu0 }
 0xf1f   :  { %v8238_v15 = vpop.f32.mrb[71].mxu0 }
 0xf20   :  { %v8239_v27 = vadd.f32 %v8238_v15, %v8237_v40 }
 0xf22   :  { %v6250_v5 = vmul.f32 %v8239_v27, %v8239_v27 }
 0xf3e   :  { %v8272_v41 = vpop.f32.mrb[80].mxu0 }
 0xf3f   :  { %v8273_v7 = vpop.f32.mrb[81].mxu0 }
 0xf40   :  { %v8274_v43 = vadd.f32 %v8273_v7, %v8272_v41 }
 0xf42   :  { %v6251_v22 = vsub.f32 %v8274_v43, %v6250_v5 }
 0xf44   :  { %v6252_v48 = vmax.f32 %v6251_v22, 0.0  ;;  %v6438_v22 = vld [vmem:[%s11182_s4 + $0x440] sm:$0x3] }
 0xf46   :  { %v6253_v54 = vadd.f32 1e-05, %v6252_v48  ;;  %v6546_v48 = vsub.s32 1, %v10538_v60  ;;  %v9611_v60 = vld [vmem:[#allocation4 + $0x1104] ss:$8 sps:$4 sm:$0xff]  }
 0xf48   :  { %9661 = vrsqrt.f32 %v6253_v54 }
 0xf52   :  { %v9662_v34 = vpop.eup %9661 }
 0xf53   :  { %v6255_v29 = vmul.f32 %v9662_v34, %v6083_v17 }
 0xf55   :  { %v6256_v36 = vmul.f32 %v8239_v27, %v6255_v29  ;;  %8015 = vmatmul.mubr.msk.f32.vlgmr.msra.gmra.mrb[82].mxu0 %vm550_vm0, %v6255_v29 }
 0xf56   :  { %8603 = vmatpush1.bf16.msra.mxu0 %v8586_v18  ;;  %6403 = vmatprep.mubr.f32.mxu0 %v9747_v25 }
 0xf57   :  { %8605 = vmatprep.subr.bf16.mxu0 %v8588_v44  ;;  %v6258_v16 = vrot.slane %v6256_v36, 7  ;;  %v6547_v36 = vrot.slane %v6438_v22, %v6546_v48 }
 0xf59   :  { %v6260_v2 = vsub.f32 %v6083_v17, %v6258_v16  ;;  %v6542_v17 = vrot.slane %v6438_v22, %v10541_v32 }
 0xf5a   :  { %8607 = vmatpush1.bf16.msra.mxu0 %v8590_v49 }
 0xf5b   :  { %8609 = vmatprep.subr.bf16.mxu0 %v8592_v28  ;;  %v6336_v33 = vrot.slane %v6260_v2, 1 }
 0xf5e   :  { %8611 = vmatpush1.bf16.msra.mxu0 %v8594_v61 }
 0xf5f   :  { %8613 = vmatprep.subr.bf16.mxu0 %v8596_v53 }
 0xf62   :  { %8615 = vmatpush1.bf16.msra.mxu0 %v8598_v39 }
 0xf63   :  { %8616 = vmatprep.subr.bf16.mxu0 %v9748_v47 }
 0xf65   :  { %8016 = vmatmul.mubr.msk.f32.vlgmr.msra.gmra.mrb[84].mxu0 %vm550_vm0, %v6336_v33 }
 0xf66   :  { %8618 = vmatpush3.bf16.msra.mxu0 %v8617_v12  ;;  %8360 = vmatprep.mubr.msk.f32.mxu0 %vm9749_vm3, %v9747_v25 }
 0xf67   :  { %8619 = vmatprep.subr.bf16.mxu0 %v9748_v47 }
 0xf6a   :  { %8621 = vmatpush3.bf16.msra.mxu0 %v8620_v1  ;;  %v6591_v1 = vld [vmem:[%s11182_s4 + $0x448] sm:$0xff] }
 0xf6b   :  { %6636 = vmatprep.subr.bf16.mxu0 %v9599_v59 }
 0xf6d   :  { %8361 = vmatmul.mubr.msk.f32.vlgmr.msra.gmra.mrb[86].mxu0 %vm3374_vm2, %v6439_v14  ;;  %v9609_v14 = vld [vmem:[#allocation4 + $0x1100] ss:$8 sps:$4 sm:$0xff]  }
 0xf6e   :  { %6668 = vmatprep.mubr.bf16.mxu0 %v9746_v0  ;;  %6637 = vmatpush1.bf16.msra.mxu0 %v9597_v21  ;;  %v9614_v21 = vld [vmem:[#allocation4 + $0x1114] ss:$8 sps:$4 sm:$0xff]  }
 0xf6f   :  { %6638 = vmatprep.subr.bf16.mxu0 %v9602_v13 }
 0xf72   :  { %6639 = vmatpush1.bf16.msra.mxu0 %v9600_v35 }
 0xf73   :  { %6640 = vmatprep.subr.bf16.mxu0 %v9605_v55  ;;  %v9612_v55 = vld [vmem:[#allocation4 + $0x1110] ss:$8 sps:$4 sm:$0xff]  }
 0xf76   :  { %6641 = vmatpush1.bf16.msra.mxu0 %v9603_v50  ;;  %v9617_v50 = vld [vmem:[#allocation4 + $0x1124] ss:$8 sps:$4 sm:$0xff]  }
 0xf77   :  { %6642 = vmatprep.subr.bf16.mxu0 %v9608_v38  ;;  %v9615_v38 = vld [vmem:[#allocation4 + $0x1120] ss:$8 sps:$4 sm:$0xff]  }
 0xf7a   :  { %6643 = vmatpush1.bf16.msra.mxu0 %v9606_v26  ;;  %v9620_v26 = vld [vmem:[#allocation4 + $0x1134] ss:$8 sps:$4 sm:$0xff]  }
0x1028   :  { %v6330_v20 = vpop.f32.mrb[82].mxu0 }
0x1029   :  { %v6413_v56 = vrot.slane %v6330_v20, %v10541_v32  ;;  %v6332_v0 = vpop.f32.mrb[83].mxu0  ;;  %v9618_v20 = vld [vmem:[#allocation4 + $0x1130] ss:$8 sps:$4 sm:$0xff]  }
0x102a   :  { %v6417_v57 = vrot.slane %v6332_v0, %v10541_v32  ;;  %v9621_v0 = vld [vmem:[#allocation4 + $0x1140] ss:$8 sps:$4 sm:$0xff]  }
0x102b   :  { %v6418_v4 = vmul.f32 %v6413_v56, %v10940_v52  ;;  %v9623_v56 = vld [vmem:[#allocation4 + $0x1144] ss:$8 sps:$4 sm:$0xff]  }
0x102c   :  { %v6419_v51 = vmul.f32 %v6417_v57, %v10943_v8  ;;  %v9626_v57 = vld [vmem:[#allocation4 + $0x1154] ss:$8 sps:$4 sm:$0xff]  }
0x1038   :  { %v6405_v58 = vpop.f32.mrb[84].mxu0 }
0x1039   :  { %v6423_v18 = vrot.slane %v6405_v58, %v10541_v32  ;;  %v6407_v9 = vpop.f32.mrb[85].mxu0  ;;  %v9627_v58 = vld [vmem:[#allocation4 + $0x1160] ss:$8 sps:$4 sm:$0xff]  }
0x103a   :  { %v6427_v24 = vrot.slane %v6407_v9, %v10541_v32  ;;  %v9630_v9 = vld [vmem:[#allocation4 + $0x1170] ss:$8 sps:$4 sm:$0xff]  }
0x103b   :  { %v10990_v44 = vadd.f32 %v6423_v18, %v6418_v4  ;;  %v9624_v4 = vld [vmem:[#allocation4 + $0x1150] ss:$8 sps:$4 sm:$0xff]   ;;  %v9632_v18 = vld [vmem:[#allocation4 + $0x1174] ss:$8 sps:$4 sm:$0xff]  }
0x103c   :  { %v6429_v45 = vadd.f32 %v6427_v24, %v6419_v51  ;;  %v9629_v51 = vld [vmem:[#allocation4 + $0x1164] ss:$8 sps:$4 sm:$0xff]  }
0x103d   :  { %v9635_v24 = vld [vmem:[#allocation4 + $0x1184] ss:$8 sps:$4 sm:$0xff]  }
0x103e   :  { %v6431_v33 = vmul.f32 0.2, %v6429_v45 }
0x1040   :  { %v6509_v3 = vpop.f32.mrb[86].mxu0  ;;  %v6433_v47 = vmax.f32 %v6429_v45, %v6431_v33  ;;  %v9633_v45 = vld [vmem:[#allocation4 + $0x1180] ss:$8 sps:$4 sm:$0xff]  }
0x1041   :  { %v6514_v49 = vsel %vm6513_vm4, %v6509_v3, 0.0  ;;  %v6523_v6 = vmul.f32 %v6509_v3, %v6509_v3  ;;  %v8362_v37 = vpop.f32.mrb[87].mxu0 }
0x1042   :  { %v6515_v63 = vrot.slane %v6514_v49, 4  ;;  %v6678_v35 = vpack.c.bf16 %v6433_v47, %v6433_v47  ;;  %v9639_v37 = vld [vmem:[#allocation4 + $0x11a0] ss:$8 sps:$4 sm:$0xff]  }
0x1043   :  { %v6524_v28 = vsel %vm6513_vm4, %v6523_v6, 0.0  ;;  %v9641_v6 = vld [vmem:[#allocation4 + $0x11a4] ss:$8 sps:$4 sm:$0xff]  }
0x1044   :  { %v6516_v31 = vadd.f32 %v6515_v63, %v6514_v49  ;;  %v6525_v52 = vrot.slane %v6524_v28, 4  ;;  %v9636_v49 = vld [vmem:[#allocation4 + $0x1190] ss:$8 sps:$4 sm:$0xff]   ;;  %v9644_v63 = vld [vmem:[#allocation4 + $0x11b4] ss:$8 sps:$4 sm:$0xff]  }
0x1046   :  { %v6517_v42 = vrot.slane %v6516_v31, 2  ;;  %v6526_v8 = vadd.f32 %v6525_v52, %v6524_v28  ;;  %v9642_v28 = vld [vmem:[#allocation4 + $0x11b0] ss:$8 sps:$4 sm:$0xff]   ;;  %v9645_v52 = vld [vmem:[#allocation4 + $0x11c0] ss:$8 sps:$4 sm:$0xff]  }
0x1048   :  { %v6518_v62 = vadd.f32 %v6517_v42, %v6516_v31  ;;  %v6527_v61 = vrot.slane %v6526_v8, 2  ;;  %v9647_v31 = vld [vmem:[#allocation4 + $0x11c4] ss:$8 sps:$4 sm:$0xff]   ;;  %v9650_v42 = vld [vmem:[#allocation4 + $0x11d4] ss:$8 sps:$4 sm:$0xff]  }
0x104a   :  { %v6519_v53 = vrot.slane %v6518_v62, 1  ;;  %v6528_v10 = vadd.f32 %v6527_v61, %v6526_v8  ;;  %v9648_v8 = vld [vmem:[#allocation4 + $0x11d0] ss:$8 sps:$4 sm:$0xff]   ;;  %v9651_v61 = vld [vmem:[#allocation4 + $0x11e0] ss:$8 sps:$4 sm:$0xff]  }
0x104c   :  { %v6520_v19 = vadd.f32 %v6519_v53, %v6518_v62  ;;  %v6529_v39 = vrot.slane %v6528_v10, 1  ;;  %v9653_v62 = vld [vmem:[#allocation4 + $0x11e4] ss:$8 sps:$4 sm:$0xff]   ;;  %v6430_v53 = vmul.f32 0.2, %v10990_v44 }
0x104e   :  { %v6522_v40 = vmul.f32 0.5, %v6520_v19  ;;  %v6530_v15 = vadd.f32 %v6529_v39, %v6528_v10  ;;  %v9656_v10 = vld [vmem:[#allocation4 + $0x11f4] ss:$8 sps:$4 sm:$0xff]   ;;  %v9654_v19 = vld [vmem:[#allocation4 + $0x11f0] ss:$8 sps:$4 sm:$0xff]   ;;  %v6432_v39 = vmax.f32 %v10990_v44, %v6430_v53 }
0x104f   :  { %v6963_v44 = vld [vmem:[%s11182_s4 + $0x320] sm:$0xff] }
0x1050   :  { %v6531_v27 = vmul.f32 0.5, %v6530_v15  ;;  %v6532_v41 = vmul.f32 %v6522_v40, %v6522_v40  ;;  %v6535_v54 = vsub.f32 %v6509_v3, %v6522_v40  ;;  %v9638_v3 = vld [vmem:[#allocation4 + $0x1194] ss:$8 sps:$4 sm:$0xff]   ;;  %v6677_v40 = vpack.c.bf16 %v6432_v39, %v6432_v39 }
0x1051   :  { %v6978_v15 = vld [vmem:[%s11182_s4 + $0x398] sm:$0xff] }
0x1052   :  { %v6533_v7 = vsub.f32 %v6531_v27, %v6532_v41  ;;  %v6979_v27 = vld [vmem:[%s11182_s4 + $0x3a0] sm:$0xff]  ;;  %v6962_v41 = vld [vmem:[%s11182_s4 + $0x318] sm:$0xff] }
0x1053   :  { %v11023_v22 = vpack.c.bf16 %v6963_v44, %v6962_v41 }
0x1054   :  { %v6534_v5 = vmax.f32 %v6533_v7, 0.0  ;;  %v8622_v7 = vpack.c.bf16 %v6979_v27, %v6978_v15 }
0x1056   :  { %v6536_v43 = vadd.f32 1e-05, %v6534_v5  ;;  %v6980_v5 = vld [vmem:[%s11182_s4 + $0x3a8] sm:$0xff]  ;;  %8623 = vmatprep.subr.bf16.mxu1 %v8622_v7 }
0x1057   :  { %8625 = vmatpush3.bf16.msra.mxu1 %v11023_v22 }
0x1058   :  { %9663 = vrsqrt.f32 %v6536_v43  ;;  %v6981_v43 = vld [vmem:[%s11182_s4 + $0x3b0] sm:$0xff] }
0x1059   :  { %v11025_v48 = vpack.c.bf16 %v6981_v43, %v6980_v5 }
0x105b   :  { %8627 = vmatprep.subr.bf16.mxu1 %v11025_v48 }
0x1062   :  { %v9664_v34 = vpop.eup %9663 }
0x1063   :  { %v6538_v29 = vmul.f32 %v9664_v34, %v6535_v54  ;;  %v6964_v54 = vld [vmem:[%s11182_s4 + $0x328] sm:$0xff]  ;;  %v6982_v34 = vld [vmem:[%s11182_s4 + $0x3b8] sm:$0xff] }
0x1065   :  { %v6543_v16 = vmul.f32 %v6542_v17, %v6538_v29  ;;  %v6965_v17 = vld [vmem:[%s11182_s4 + $0x330] sm:$0xff]  ;;  %v6983_v29 = vld [vmem:[%s11182_s4 + $0x3c0] sm:$0xff] }
0x1067   :  { %v6548_v2 = vadd.f32 %v6547_v36, %v6543_v16  ;;  %v11040_v36 = vpack.c.bf16 %v6965_v17, %v6964_v54  ;;  %v11043_v16 = vpack.c.bf16 %v6983_v29, %v6982_v34 }
0x1069   :  { %v6549_v11 = vmul.f32 0.2, %v6548_v2  ;;  %8629 = vmatpush3.bf16.msra.mxu1 %v11040_v36 }
0x106a   :  { %8631 = vmatprep.subr.bf16.mxu1 %v11043_v16 }
0x106b   :  { %v6550_v23 = vmax.f32 %v6548_v2, %v6549_v11  ;;  %v6966_v2 = vld [vmem:[%s11182_s4 + $0x338] sm:$0xff]  ;;  %v6967_v11 = vld [vmem:[%s11182_s4 + $0x340] sm:$0xff] }
0x106c   :  { %v11058_v33 = vpack.c.bf16 %v6967_v11, %v6966_v2 }
0x106d   :  { %v6592_v12 = vpack.c.bf16 %v6550_v23, %v6550_v23  ;;  %v6984_v23 = vld [vmem:[%s11182_s4 + $0x3c8] sm:$0xff] }
0x106e   :  { %8633 = vmatpush3.bf16.msra.mxu1 %v11058_v33 }
0x106f   :  { %8026 = vmatmul.mubr.msk.bf16.vlgmr.msra.gmra.mrb[88].mxu0 %vm550_vm0, %v6592_v12  ;;  %v6985_v12 = vld [vmem:[%s11182_s4 + $0x3d0] sm:$0xff] }
0x1070   :  { %6754 = vmatprep.mubr.f32.mxu0 %v9747_v25  ;;  %v11061_v47 = vpack.c.bf16 %v6985_v12, %v6984_v23 }
0x1072   :  { %8635 = vmatprep.subr.bf16.mxu1 %v11061_v47 }
0x1142   :  { %v6670_v30 = vpop.f32.mrb[88].mxu0 }
0x1143   :  { %v6672_v46 = vpop.f32.mrb[89].mxu0 }
0x1144   :  { %v6674_v59 = vpop.f32.mrb[90].mxu0  ;;  %8027 = vmatprep.subr.msk.mxu0 %vm6683_vm5, %v6672_v46 }
0x1145   :  { %v6675_v13 = vpop.f32.mrb[91].mxu0  ;;  %8028 = vmatpush1.msk.msra.mxu0 %vm6683_vm5, %v6670_v30  ;;  %v6968_v30 = vld [vmem:[%s11182_s4 + $0x348] sm:$0xff] }
0x1146   :  { %8029 = vmatmul.mubr.msk.f32.vlgmr.msra.gmra.mrb[92].mxu0 %vm6679_vm6, %v6591_v1  ;;  %6921 = vmatprep.subr.bf16.mxu0 %v9611_v60  ;;  %v6969_v60 = vld [vmem:[%s11182_s4 + $0x350] sm:$0xff]  ;;  %v6986_v1 = vld [vmem:[%s11182_s4 + $0x3d8] sm:$0xff]  ;;  %v6971_v13 = vld [vmem:[%s11182_s4 + $0x360] sm:$0xff] }
0x1147   :  { %6922 = vmatpush1.bf16.msra.mxu0 %v9609_v14  ;;  %6953 = vmatprep.mubr.bf16.mxu0 %v6678_v35  ;;  %v11070_v46 = vpack.c.bf16 %v6969_v60, %v6968_v30  ;;  %v6987_v14 = vld [vmem:[%s11182_s4 + $0x3e0] sm:$0xff] }
0x1148   :  { %6923 = vmatprep.subr.bf16.mxu0 %v9614_v21  ;;  %v11080_v59 = vpack.c.bf16 %v6987_v14, %v6986_v1  ;;  %v6970_v21 = vld [vmem:[%s11182_s4 + $0x358] sm:$0xff] }
0x1149   :  { %8637 = vmatpush3.bf16.msra.mxu1 %v11070_v46  ;;  %v11088_v35 = vpack.c.bf16 %v6971_v13, %v6970_v21  ;;  %v6996_v1 = vld [vmem:[#allocation6 + $0xf0] sm:$0xff]  ;;  %v7001_v21 = vld [vmem:[#allocation6 + $0x118] sm:$0xff] }
0x114a   :  { %8639 = vmatprep.subr.bf16.mxu1 %v11080_v59 }
0x114b   :  { %6924 = vmatpush1.bf16.msra.mxu0 %v9612_v55  ;;  %v6988_v55 = vld [vmem:[%s11182_s4 + $0x3e8] sm:$0xff] }
0x114c   :  { %6925 = vmatprep.subr.bf16.mxu0 %v9617_v50  ;;  %v6989_v50 = vld [vmem:[%s11182_s4 + $0x3f0] sm:$0xff] }
0x114d   :  { %8641 = vmatpush3.bf16.msra.mxu1 %v11088_v35 }
0x114f   :  { %6926 = vmatpush1.bf16.msra.mxu0 %v9615_v38  ;;  %v11098_v38 = vpack.c.bf16 %v6989_v50, %v6988_v55  ;;  %v7000_v55 = vld [vmem:[#allocation6 + $0x110] sm:$0xff] }
0x1150   :  { %6927 = vmatprep.subr.bf16.mxu0 %v9620_v26  ;;  %v6972_v26 = vld [vmem:[%s11182_s4 + $0x368] sm:$0xff] }
0x1151   :  { %8643 = vmatprep.subr.bf16.mxu1 %v11098_v38 }
0x1153   :  { %6928 = vmatpush1.bf16.msra.mxu0 %v9618_v20  ;;  %v6973_v20 = vld [vmem:[%s11182_s4 + $0x370] sm:$0xff] }
0x1154   :  { %6929 = vmatprep.subr.bf16.mxu0 %v9623_v56  ;;  %v11106_v56 = vpack.c.bf16 %v6973_v20, %v6972_v26  ;;  %v7005_v26 = vld [vmem:[#allocation6 + $0x138] sm:$0xff]  ;;  %v7002_v20 = vld [vmem:[#allocation6 + $0x120] sm:$0xff] }
0x1156   :  { %8645 = vmatpush3.bf16.msra.mxu1 %v11106_v56 }
0x1157   :  { %6930 = vmatpush1.bf16.msra.mxu0 %v9621_v0  ;;  %v6990_v0 = vld [vmem:[%s11182_s4 + $0x3f8] sm:$0xff] }
0x1158   :  { %6931 = vmatprep.subr.bf16.mxu0 %v9626_v57  ;;  %v6991_v57 = vld [vmem:[%s11182_s4 + $0x400] sm:$0xff] }
0x115b   :  { %6932 = vmatpush1.bf16.msra.mxu0 %v9624_v4  ;;  %v8646_v4 = vpack.c.bf16 %v6991_v57, %v6990_v0  ;;  %v7004_v0 = vld [vmem:[#allocation6 + $0x130] sm:$0xff]  ;;  %v7007_v57 = vld [vmem:[#allocation6 + $0x148] sm:$0xff] }
0x115c   :  { %6933 = vmatprep.subr.bf16.mxu0 %v9629_v51  ;;  %v6974_v51 = vld [vmem:[%s11182_s4 + $0x378] sm:$0xff] }
0x115d   :  { %8647 = vmatprep.subr.bf16.mxu1 %v8646_v4 }
0x115f   :  { %6934 = vmatpush1.bf16.msra.mxu0 %v9627_v58  ;;  %v6975_v58 = vld [vmem:[%s11182_s4 + $0x380] sm:$0xff] }
0x1160   :  { %6935 = vmatprep.subr.bf16.mxu0 %v9632_v18  ;;  %v8648_v18 = vpack.c.bf16 %v6975_v58, %v6974_v51  ;;  %v8696_v51 = vpack.c.bf16 %v7004_v0, %v7002_v20 }
0x1162   :  { %8649 = vmatpush3.bf16.msra.mxu1 %v8648_v18 }
0x1163   :  { %6936 = vmatpush1.bf16.msra.mxu0 %v9630_v9  ;;  %v6992_v9 = vld [vmem:[%s11182_s4 + $0x408] sm:$0xff] }
0x1164   :  { %6937 = vmatprep.subr.bf16.mxu0 %v9635_v24  ;;  %v6993_v24 = vld [vmem:[%s11182_s4 + $0x410] sm:$0xff] }
0x1167   :  { %6938 = vmatpush1.bf16.msra.mxu0 %v9633_v45  ;;  %v6976_v45 = vld [vmem:[%s11182_s4 + $0x388] sm:$0xff] }
0x1168   :  { %6939 = vmatprep.subr.bf16.mxu0 %v9638_v3  ;;  %v8650_v3 = vpack.c.bf16 %v6993_v24, %v6992_v9  ;;  %v7008_v9 = vld [vmem:[#allocation6 + $0x150] sm:$0xff] }
0x116a   :  { %8651 = vmatprep.subr.bf16.mxu1 %v8650_v3 }
0x116b   :  { %6940 = vmatpush1.bf16.msra.mxu0 %v9636_v49  ;;  %v6977_v49 = vld [vmem:[%s11182_s4 + $0x390] sm:$0xff] }
0x116c   :  { %6941 = vmatprep.subr.bf16.mxu0 %v9641_v6  ;;  %v8652_v6 = vpack.c.bf16 %v6977_v49, %v6976_v45 }
0x116e   :  { %8653 = vmatpush3.bf16.msra.mxu1 %v8652_v6 }
0x116f   :  { %6942 = vmatpush1.bf16.msra.mxu0 %v9639_v37  ;;  %8655 = vmatprep.subr.bf16.mxu1 %v8622_v7 }
0x1170   :  { %6943 = vmatprep.subr.bf16.mxu0 %v9644_v63 }
0x1173   :  { %6944 = vmatpush1.bf16.msra.mxu0 %v9642_v28 }
0x1174   :  { %6945 = vmatprep.subr.bf16.mxu0 %v9647_v31 }
0x1177   :  { %6946 = vmatpush1.bf16.msra.mxu0 %v9645_v52 }
0x1178   :  { %6947 = vmatprep.subr.bf16.mxu0 %v9650_v42 }
0x117b   :  { %6948 = vmatpush1.bf16.msra.mxu0 %v9648_v8 }
0x117c   :  { %6949 = vmatprep.subr.bf16.mxu0 %v9653_v62 }
0x117f   :  { %6950 = vmatpush1.bf16.msra.mxu0 %v9651_v61 }
0x1180   :  { %6951 = vmatprep.subr.bf16.mxu0 %v9656_v10 }
0x1183   :  { %6952 = vmatpush1.bf16.msra.mxu0 %v9654_v19 }
0x1186   :  { %6954 = vmatmul.mubr.bf16.vlgmr.msra.gmra.mrb[96].mxu0 %v6677_v40 }
0x1187   :  { %7255 = vmatprep.mubr.f32.mxu0 %v9747_v25 }
0x1219   :  { %v6756_v37 = vpop.f32.mrb[92].mxu0 }
0x121a   :  { %v6758_v63 = vpop.f32.mrb[93].mxu0 }
0x1259   :  { %v6955_v28 = vpop.f32.mrb[96].mxu0 }
0x125a   :  { %v11134_v31 = vadd.f32 %v6955_v28, %v6756_v37  ;;  %v6957_v52 = vpop.f32.mrb[97].mxu0 }
0x125b   :  { %v11136_v42 = vadd.f32 %v6957_v52, %v6758_v63  ;;  %v6959_v8 = vpop.f32.mrb[98].mxu0 }
0x125c   :  { %v7011_v62 = vrot.slane %v11134_v31, 4  ;;  %v6960_v61 = vpop.f32.mrb[99].mxu0  ;;  %v7023_v23 = vmul.f32 %v11134_v31, %v11134_v31 }
0x125d   :  { %v7017_v53 = vrot.slane %v11136_v42, 4  ;;  %v7024_v10 = vmul.f32 %v11136_v42, %v11136_v42  ;;  %v7010_v61 = vld [vmem:[%s11182_s4 + $0x418] sm:$0x3] }
0x125e   :  { %v7012_v19 = vadd.f32 %v7011_v62, %v11134_v31  ;;  %v7025_v12 = vrot.slane %v7023_v23, 4 }
0x125f   :  { %v7018_v39 = vadd.f32 %v7017_v53, %v11136_v42  ;;  %v7031_v40 = vrot.slane %v7024_v10, 4 }
0x1260   :  { %v7013_v15 = vrot.slane %v7012_v19, 2  ;;  %v7026_v30 = vadd.f32 %v7025_v12, %v7023_v23  ;;  %v7361_v12 = vld [vmem:[#allocation6 + $0x160] sm:$0xff] }
0x1261   :  { %v7019_v27 = vrot.slane %v7018_v39, 2  ;;  %v7032_v41 = vadd.f32 %v7031_v40, %v7024_v10 }
0x1262   :  { %v7014_v7 = vadd.f32 %v7013_v15, %v7012_v19 }
0x1263   :  { %v7020_v44 = vadd.f32 %v7019_v27, %v7018_v39  ;;  %v7033_v5 = vrot.slane %v7032_v41, 2 }
0x1264   :  { %v7015_v43 = vrot.slane %v7014_v7, 1 }
0x1265   :  { %v7021_v54 = vrot.slane %v7020_v44, 1  ;;  %v7034_v17 = vadd.f32 %v7033_v5, %v7032_v41 }
0x1266   :  { %v7016_v2 = vadd.f32 %v7015_v43, %v7014_v7 }
0x1267   :  { %v7022_v34 = vadd.f32 %v7021_v54, %v7020_v44  ;;  %v7035_v29 = vrot.slane %v7034_v17, 1 }
0x1269   :  { %7101 = vmatprep.mubr.f32.mxu1 %v7022_v34  ;;  %v7036_v11 = vadd.f32 %v7035_v29, %v7034_v17 }
0x126a   :  { %7102 = vmatmul.mubr.f32.vlgmr.msra.gmra.mrb[86].mxu1 %v7016_v2 }
0x126b   :  { %8657 = vmatpush3.bf16.msra.mxu1 %v11023_v22  ;;  %7171 = vmatprep.mubr.f32.mxu1 %v7036_v11  ;;  %v7027_v22 = vrot.slane %v7026_v30, 2 }
0x126c   :  { %8659 = vmatprep.subr.bf16.mxu1 %v11025_v48 }
0x126d   :  { %v7028_v48 = vadd.f32 %v7027_v22, %v7026_v30  ;;  %v7362_v22 = vld [vmem:[#allocation6 + $0x168] sm:$0xff] }
0x126f   :  { %8661 = vmatpush3.bf16.msra.mxu1 %v11040_v36  ;;  %v7029_v36 = vrot.slane %v7028_v48, 1 }
0x1270   :  { %8663 = vmatprep.subr.bf16.mxu1 %v11043_v16 }
0x1271   :  { %v7030_v16 = vadd.f32 %v7029_v36, %v7028_v48 }
0x1273   :  { %8665 = vmatpush3.bf16.msra.mxu1 %v11058_v33  ;;  %v6995_v33 = vld [vmem:[#allocation6 + $0xe8] sm:$0xff] }
0x1274   :  { %8667 = vmatprep.subr.bf16.mxu1 %v11061_v47  ;;  %v6997_v47 = vld [vmem:[#allocation6 + $0xf8] sm:$0xff] }
0x1275   :  { %v8686_v60 = vpack.c.bf16 %v6997_v47, %v6995_v33 }
0x1277   :  { %8669 = vmatpush3.bf16.msra.mxu1 %v11070_v46  ;;  %v6994_v46 = vld [vmem:[#allocation6 + $0xe0] sm:$0xff]  ;;  %8687 = vmatprep.subr.bf16.mxu0 %v8686_v60 }
0x1278   :  { %8671 = vmatprep.subr.bf16.mxu1 %v11080_v59  ;;  %v8688_v14 = vpack.c.bf16 %v6996_v1, %v6994_v46  ;;  %v6999_v59 = vld [vmem:[#allocation6 + $0x108] sm:$0xff] }
0x1279   :  { %v8690_v13 = vpack.c.bf16 %v7001_v21, %v6999_v59 }
0x127a   :  { %8689 = vmatpush1.bf16.msra.mxu0 %v8688_v14 }
0x127b   :  { %8673 = vmatpush3.bf16.msra.mxu1 %v11088_v35  ;;  %v6998_v35 = vld [vmem:[#allocation6 + $0x100] sm:$0xff]  ;;  %8691 = vmatprep.subr.bf16.mxu0 %v8690_v13 }
0x127c   :  { %8675 = vmatprep.subr.bf16.mxu1 %v11098_v38  ;;  %v8692_v50 = vpack.c.bf16 %v7000_v55, %v6998_v35  ;;  %v7003_v38 = vld [vmem:[#allocation6 + $0x128] sm:$0xff] }
0x127e   :  { %8693 = vmatpush1.bf16.msra.mxu0 %v8692_v50 }
0x127f   :  { %8677 = vmatpush3.bf16.msra.mxu1 %v11106_v56  ;;  %v8694_v56 = vpack.c.bf16 %v7005_v26, %v7003_v38 }
0x1280   :  { %8679 = vmatprep.subr.bf16.mxu1 %v8646_v4  ;;  %v7009_v4 = vld [vmem:[#allocation6 + $0x158] sm:$0xff] }
0x1281   :  { %8695 = vmatprep.subr.bf16.mxu0 %v8694_v56  ;;  %v8698_v58 = vpack.c.bf16 %v7009_v4, %v7007_v57 }
0x1282   :  { %8697 = vmatpush1.bf16.msra.mxu0 %v8696_v51 }
0x1283   :  { %8681 = vmatpush3.bf16.msra.mxu1 %v8648_v18  ;;  %v7006_v18 = vld [vmem:[#allocation6 + $0x140] sm:$0xff]  ;;  %8699 = vmatprep.subr.bf16.mxu0 %v8698_v58 }
0x1284   :  { %8683 = vmatprep.subr.bf16.mxu1 %v8650_v3  ;;  %v8700_v24 = vpack.c.bf16 %v7008_v9, %v7006_v18 }
0x1286   :  { %8701 = vmatpush1.bf16.msra.mxu0 %v8700_v24 }
0x1287   :  { %8685 = vmatpush3.bf16.msra.mxu1 %v8652_v6  ;;  %8363 = vmatprep.subr.mxu0 %v9747_v25 }
0x1288   :  { %8703 = vmatprep.subr.bf16.mxu1 %v8686_v60 }
0x128a   :  { %7172 = vmatmul.mubr.f32.vlgmr.msra.gmra.mrb[100].mxu1 %v7030_v16 }
0x128b   :  { %7330 = vmatprep.mubr.f32.mxu1 %v9747_v25  ;;  %8705 = vmatpush1.bf16.msra.mxu1 %v8688_v14 }
0x128c   :  { %8707 = vmatprep.subr.bf16.mxu1 %v8690_v13 }
0x128f   :  { %8709 = vmatpush1.bf16.msra.mxu1 %v8692_v50 }
0x1290   :  { %8711 = vmatprep.subr.bf16.mxu1 %v8694_v56 }
0x1293   :  { %8713 = vmatpush1.bf16.msra.mxu1 %v8696_v51 }
0x1294   :  { %8715 = vmatprep.subr.bf16.mxu1 %v8698_v58 }
0x1297   :  { %8717 = vmatpush1.bf16.msra.mxu1 %v8700_v24 }
0x133d   :  { %v8312_v45 = vpop.f32.mrb[86].mxu1 }
0x133e   :  { %v8313_v3 = vpop.f32.mrb[87].mxu1 }
0x133f   :  { %v8314_v49 = vadd.f32 %v8313_v3, %v8312_v45 }
0x1341   :  { %v7177_v63 = vmul.f32 %v8314_v49, %v8314_v49 }
0x135d   :  { %v8347_v6 = vpop.f32.mrb[100].mxu1 }
0x135e   :  { %v8348_v37 = vpop.f32.mrb[101].mxu1 }
0x135f   :  { %v8349_v28 = vadd.f32 %v8348_v37, %v8347_v6 }
0x1361   :  { %v7178_v52 = vsub.f32 %v8349_v28, %v7177_v63 }
0x1363   :  { %v7179_v8 = vmax.f32 %v7178_v52, 0.0 }
0x1365   :  { %v7180_v62 = vadd.f32 1e-05, %v7179_v8 }
0x1367   :  { %9665 = vrsqrt.f32 %v7180_v62 }
0x1371   :  { %v9666_v53 = vpop.eup %9665 }
0x1372   :  { %v7182_v10 = vmul.f32 %v9666_v53, %v7010_v61 }
0x1374   :  { %v7183_v19 = vmul.f32 %v8314_v49, %v7182_v10  ;;  %8062 = vmatmul.mubr.msk.f32.vlgmr.msra.gmra.mrb[94].mxu0 %vm550_vm0, %v7182_v10 }
0x1375   :  { %8365 = vmatprep.mubr.msk.f32.mxu0 %vm9749_vm3, %v9747_v25 }
0x1376   :  { %v7185_v39 = vrot.slane %v7183_v19, 7 }
0x1378   :  { %v7187_v40 = vsub.f32 %v7010_v61, %v7185_v39 }
0x137a   :  { %v7263_v15 = vrot.slane %v7187_v40, 1 }
0x137c   :  { %8063 = vmatmul.mubr.msk.f32.vlgmr.msra.gmra.mrb[102].mxu1 %vm550_vm0, %v7263_v15 }
0x1447   :  { %v7257_v27 = vpop.f32.mrb[94].mxu0 }
0x1448   :  { %v7259_v41 = vpop.f32.mrb[95].mxu0  ;;  %v7340_v7 = vrot.slane %v7257_v27, %v10541_v32 }
0x1449   :  { %v7344_v44 = vrot.slane %v7259_v41, %v10541_v32 }
0x144a   :  { %v7345_v43 = vmul.f32 %v7340_v7, %v11134_v31  ;;  %v7363_v31 = vld [vmem:[%s11182_s4 + $0x450] sm:$0x3] }
0x144b   :  { %v7346_v34 = vmul.f32 %v7344_v44, %v11136_v42 }
0x144f   :  { %v7332_v5 = vpop.f32.mrb[102].mxu1 }
0x1450   :  { %v7350_v54 = vrot.slane %v7332_v5, %v10541_v32  ;;  %v7334_v17 = vpop.f32.mrb[103].mxu1 }
0x1451   :  { %v7354_v25 = vrot.slane %v7334_v17, %v10541_v32 }
0x1452   :  { %v7355_v29 = vadd.f32 %v7350_v54, %v7345_v43 }
0x1453   :  { %v7356_v2 = vadd.f32 %v7354_v25, %v7346_v34 }
0x1454   :  { %v7357_v11 = vmul.f32 0.2, %v7355_v29 }
0x1455   :  { %v7358_v23 = vmul.f32 0.2, %v7356_v2 }
0x1456   :  { %v7359_v30 = vmax.f32 %v7355_v29, %v7357_v11 }
0x1457   :  { %v7360_v48 = vmax.f32 %v7356_v2, %v7358_v23 }
0x1458   :  { %v7364_v36 = vmul.f32 %v7361_v12, %v7359_v30 }
0x1459   :  { %v7365_v16 = vmul.f32 %v7362_v22, %v7360_v48 }
0x145b   :  { %v7366_v33 = vadd.f32 %v7365_v16, %v7364_v36 }
0x145d   :  { %7367 = vadd.xlane.f32.xlu0 %v7366_v33 }
0x14ea   :  { %v7368_v42 = vpop.xlane.xlu0 %7367 }
0x14eb   :  { %8364 = vmatpush3.msra.mxu0 %v7368_v42 }
0x14ec   :  { %8366 = vmatmul.mubr.msk.f32.vlgmr.msra.gmra.mrb[100].mxu0 %vm7369_vm7, %v7363_v31 }
0x15bf   :  { %v7439_v32 = vpop.f32.mrb[100].mxu0 }
0x15c0   :  { %v7443_v47 = vmul.f32 0.5, %v7439_v32  ;;  %v8367_v60 = vpop.f32.mrb[101].mxu0 }
0x15c2   :  { %9667 = vtanh.f32 %v7443_v47 }
0x15cc   :  { %v9668_v46 = vpop.eup %9667 }
0x15cd   :  { %v7445_v1 = vadd.f32 1.0, %v9668_v46 }
0x15cf   :  { %v7446_v14 = vmul.f32 0.5, %v7445_v1 }
0x15d1   :  { %7448 = vst.msk [vmem:[%s11183_s5] sm:$0x3] %vm7447_vm8, %v7446_v14 }
0x15d2   :  { %7453 = vsyncpa [#allocation3], 1 }
0x15d3   :  { %7454 = vsyncpa [#allocation5], 1 }

</bundles_post_ra>
